<compile_context>
chip_gen: v7x
topology: tpu7x:2x2x1
jax: 0.10.0
libtpu: 0.0.40
codegen_flags: <defaults>
</compile_context>

<pallas_src>
import functools

import jax
import jax.numpy as jnp
from jax.experimental import pallas as pl
from jax.experimental.pallas import tpu as pltpu

LANE = 128


def _round_up(x, m):
    return (x + m - 1) // m * m


def _pick_row_tile(H, W, target=256):
    """Smallest divisor TH of H with TH*W >= target (else the largest, i.e. H)."""
    best = 1
    for d in range(1, H + 1):
        if H % d:
            continue
        best = d
        if d * W >= target:
            break
    return best


# ---------------------------------------------------------------------------
# Fused bottleneck kernel
# ---------------------------------------------------------------------------
def _bottleneck_kernel(x_ref, w1_ref, b1_ref, w2_ref, b2_ref, w3_ref, b3_ref,
                       o_ref, y1h, *, H, W, TH, Cm, Cp):
    """One grid step = TH output rows of one image.

    x_ref  : (1, H, W, Cp)        bf16  full image (block index ignores the row
                                        axis -> DMA'd once per image; also the
                                        residual source)
    w1_ref : (Cp, Cm)             bf16  conv1 1x1 weight, BN1 scale folded
    w2_ref : (9, Cm, Cm)          bf16  conv2 3x3 weight, tap-major, BN2 folded
    w3_ref : (Cm, Cp)             bf16  conv3 1x1 weight, BN3 scale folded
    b*_ref : (1, C)               f32   folded BN biases
    o_ref  : (1, TH, W, Cp)             output row tile (lane-dense, 128-wide)
    y1h    : (TH+2, W+2, Cm)      bf16  VMEM scratch: stage-1 output for this
                                        tile with a 1-pixel zero halo.
    """
    r = pl.program_id(1)
    nr = pl.num_programs(1)
    row0 = pl.multiple_of(r * TH, TH)

    w1 = w1_ref[...]
    b1 = b1_ref[...]

    def conv1(x_rows):                      # (m, Cp) bf16 -> (m, Cm) bf16
        a = jnp.dot(x_rows, w1, preferred_element_type=jnp.float32)
        return jnp.maximum(a + b1, 0.0).astype(jnp.bfloat16)

    # ---- keep the column halo (cols 0 and W+1) at zero (tiny, per-step safe
    #      under megacore grid splitting; never written elsewhere).
    zcol = jnp.zeros((TH + 2, 1, Cm), jnp.bfloat16)
    y1h[:, 0:1] = zcol
    y1h[:, W + 1:W + 2] = zcol

    # ---- stage 1 (per tile): 1x1 conv + bias + ReLU on this tile's TH rows
    x_t = x_ref[0, pl.ds(row0, TH)]                       # (TH, W, Cp) bf16
    x_flat = x_t.reshape(TH * W, Cp)
    y1h[1:TH + 1, 1:W + 1] = conv1(x_flat).reshape(TH, W, Cm)

    # stage-1 halo rows: recompute the row above/below the tile (zero at the
    # image border).  ~2/TH extra stage-1 FLOPs; keeps scratch O(TH), not O(H).
    zrow = jnp.zeros((1, W, Cm), jnp.bfloat16)

    @pl.when(r == 0)
    def _():
        y1h[0:1, 1:W + 1] = zrow

    @pl.when(r > 0)
    def _():
        xr = x_ref[0, pl.ds(row0 - 1, 1)].reshape(W, Cp)
        y1h[0:1, 1:W + 1] = conv1(xr).reshape(1, W, Cm)

    @pl.when(r == nr - 1)
    def _():
        y1h[TH + 1:TH + 2, 1:W + 1] = zrow

    @pl.when(r < nr - 1)
    def _():
        xr = x_ref[0, pl.ds(row0 + TH, 1)].reshape(W, Cp)
        y1h[TH + 1:TH + 2, 1:W + 1] = conv1(xr).reshape(1, W, Cm)

    # ---- stage 2: 3x3 conv (stride 1, pad 1) as 9 accumulating K=Cm matmuls
    #      over statically shifted bf16 views of the halo scratch.
    acc2 = jnp.zeros((TH * W, Cm), jnp.float32)
    for k in range(9):
        dy, dx = divmod(k, 3)
        patch = y1h[dy:dy + TH, dx:dx + W].reshape(TH * W, Cm)      # bf16
        acc2 = acc2 + jnp.dot(patch, w2_ref[k],
                              preferred_element_type=jnp.float32)
    y2 = jnp.maximum(acc2 + b2_ref[...], 0.0).astype(jnp.bfloat16)

    # ---- stage 3: 1x1 conv + bias + residual + ReLU, one lane-dense store
    a3 = jnp.dot(y2, w3_ref[...], preferred_element_type=jnp.float32)
    y3 = jnp.maximum(a3 + b3_ref[...] + x_flat.astype(jnp.float32), 0.0)
    o_ref[0] = y3.reshape(TH, W, Cp).astype(o_ref.dtype)


# ---------------------------------------------------------------------------
# Wrapper
# ---------------------------------------------------------------------------
def _fold_bn(gamma, beta, mean, var, eps=1e-5):
    scale = gamma / jnp.sqrt(var + eps)
    bias = beta - mean * scale
    return scale, bias


def block_forward(x_nchw, params, *, stride=1, out_dtype=jnp.float32):
    N, Cin, H, W = x_nchw.shape
    cm = params["w1"].shape[0]
    co = params["w3"].shape[0]
    assert stride == 1 and Cin == co, (
        "identity_downsample=None path requires stride==1 and "
        "in_channels == 4 * intermediate_channels")

    Cp = _round_up(Cin, LANE)          # padded in/out channels (Cin == co)
    Cm = _round_up(cm, LANE)           # padded intermediate channels
    TH = _pick_row_tile(H, W)          # M = TH*W targeted at ~256 (MXU fill)
    # NOTE: W % 8 keeps the (TH, W, C) <-> (TH*W, C) reshapes layout-free.

    # Fold eval-mode BN into weights (scale) + bias, pad channels to lane width,
    # cast matmul operands to bf16 (biases stay f32).
    s1, b1 = _fold_bn(*params["bn1"])
    s2, b2 = _fold_bn(*params["bn2"])
    s3, b3 = _fold_bn(*params["bn3"])

    w1 = params["w1"][:, :, 0, 0].T * s1[None, :]                      # (Cin, cm)
    w1p = jnp.pad(w1, ((0, Cp - Cin), (0, Cm - cm))).astype(jnp.bfloat16)
    b1p = jnp.pad(b1, (0, Cm - cm)).reshape(1, Cm).astype(jnp.float32)

    w2 = jnp.transpose(params["w2"], (2, 3, 1, 0)) * s2[None, None, None, :]
    w2 = w2.reshape(9, cm, cm)                                         # tap-major
    w2p = jnp.pad(w2, ((0, 0), (0, Cm - cm), (0, Cm - cm))).astype(jnp.bfloat16)
    b2p = jnp.pad(b2, (0, Cm - cm)).reshape(1, Cm).astype(jnp.float32)

    w3 = params["w3"][:, :, 0, 0].T * s3[None, :]                      # (cm, co)
    w3p = jnp.pad(w3, ((0, Cm - cm), (0, Cp - co))).astype(jnp.bfloat16)
    b3p = jnp.pad(b3, (0, Cp - co)).reshape(1, Cp).astype(jnp.float32)

    # NCHW -> NHWC, channel-pad to 128 lanes, bf16 activations.
    x = jnp.transpose(x_nchw, (0, 2, 3, 1)).astype(jnp.bfloat16)
    xp = jnp.pad(x, ((0, 0), (0, 0), (0, 0), (0, Cp - Cin)))

    out_bytes = jnp.dtype(out_dtype).itemsize

    # Explicit VMEM budget (double-buffered blocks + scratch) with headroom,
    # kept under the v7x 64 MiB ceiling.
    blk_bytes = (2 * H * W * Cp * 2                                   # x block
                 + 2 * TH * W * Cp * out_bytes                        # out block
                 + 2 * 2 * (Cp * Cm + 9 * Cm * Cm + Cm * Cp)          # weights
                 + 2 * 4 * (2 * Cm + Cp)                              # biases
                 + (TH + 8) * (W + 8) * Cm * 2)                       # scratch
    vmem_limit = int(min(max(2 * blk_bytes + (8 << 20), 16 << 20), 48 << 20))

    flops = 2 * N * H * W * (Cp * Cm + 9 * Cm * Cm + Cm * Cp)
    bytes_accessed = int(N * H * W * Cp * (2 + out_bytes)
                         + 2 * (Cp * Cm + 9 * Cm * Cm + Cm * Cp)
                         + 4 * (2 * Cm + Cp))

    kern = functools.partial(_bottleneck_kernel, H=H, W=W, TH=TH, Cm=Cm, Cp=Cp)
    y = pl.pallas_call(
        kern,
        out_shape=jax.ShapeDtypeStruct((N, H, W, Cp), out_dtype),
        grid=(N, H // TH),
        in_specs=[
            pl.BlockSpec((1, H, W, Cp), lambda n, r: (n, 0, 0, 0)),
            pl.BlockSpec((Cp, Cm), lambda n, r: (0, 0)),
            pl.BlockSpec((1, Cm), lambda n, r: (0, 0)),
            pl.BlockSpec((9, Cm, Cm), lambda n, r: (0, 0, 0)),
            pl.BlockSpec((1, Cm), lambda n, r: (0, 0)),
            pl.BlockSpec((Cm, Cp), lambda n, r: (0, 0)),
            pl.BlockSpec((1, Cp), lambda n, r: (0, 0)),
        ],
        out_specs=pl.BlockSpec((1, TH, W, Cp), lambda n, r: (n, r, 0, 0)),
        scratch_shapes=[pltpu.VMEM((TH + 2, W + 2, Cm), jnp.bfloat16)],
        compiler_params=pltpu.CompilerParams(
            dimension_semantics=("parallel", "parallel"),
            vmem_limit_bytes=vmem_limit),
        cost_estimate=pl.CostEstimate(flops=flops, transcendentals=0,
                                      bytes_accessed=bytes_accessed),
    )(xp, w1p, b1p, w2p, b2p, w3p, b3p)

    out = y[..., :co]
    return jnp.transpose(out, (0, 3, 1, 2)).astype(jnp.float32)        # back to NCHW


# ---------------------------------------------------------------------------
# Parameter construction (deterministic, synthetic)
# ---------------------------------------------------------------------------
def init_block_params(key, in_channels, intermediate_channels):
    exp = 4
    ks = jax.random.split(key, 15)
    cm, co = intermediate_channels, intermediate_channels * exp

    def bn_params(k0, k1, k2, k3, c):
        gamma = jax.random.uniform(k0, (c,), minval=0.5, maxval=1.5)
        beta = jax.random.normal(k1, (c,)) * 0.1
        mean = jax.random.normal(k2, (c,)) * 0.1
        var = jax.random.uniform(k3, (c,), minval=0.5, maxval=1.5)
        return gamma, beta, mean, var

    p = {
        # conv weights in PyTorch OIHW shapes
        "w1": jax.random.normal(ks[0], (cm, in_channels, 1, 1)) * 0.1,
        "w2": jax.random.normal(ks[1], (cm, cm, 3, 3)) * 0.1,
        "w3": jax.random.normal(ks[2], (co, cm, 1, 1)) * 0.1,
        "bn1": bn_params(ks[3], ks[4], ks[5], ks[6], cm),
        "bn2": bn_params(ks[7], ks[8], ks[9], ks[10], cm),
        "bn3": bn_params(ks[11], ks[12], ks[13], ks[14], co),
    }
    return jax.tree.map(lambda a: a.astype(jnp.float32), p)


# ---------------------------------------------------------------------------
# Pure-JAX reference (mirrors the PyTorch forward, eval-mode BN, f32)
# ---------------------------------------------------------------------------
def block_reference(x, p, *, stride=1, eps=1e-5):
    def conv(x, w, s, pad):
        return jax.lax.conv_general_dilated(
            x, w, window_strides=(s, s), padding=[(pad, pad), (pad, pad)],
            dimension_numbers=("NCHW", "OIHW", "NCHW"))

    def bn(x, prm):
        gamma, beta, mean, var = prm
        g = gamma[None, :, None, None]
        return g * (x - mean[None, :, None, None]) / jnp.sqrt(
            var[None, :, None, None] + eps) + beta[None, :, None, None]

    identity = x
    x = jax.nn.relu(bn(conv(x, p["w1"], 1, 0), p["bn1"]))
    x = jax.nn.relu(bn(conv(x, p["w2"], stride, 1), p["bn2"]))
    x = bn(conv(x, p["w3"], 1, 0), p["bn3"])
    x = x + identity
    return jax.nn.relu(x)


# ---------------------------------------------------------------------------
if __name__ == "__main__":
    key = jax.random.PRNGKey(0)
    k_x, k_p = jax.random.split(key)

    N, Cin, H, W = 2, 16, 16, 16        # in_channels = 4 * intermediate_channels
    intermediate = 4
    stride = 1                          # identity_downsample=None requires stride=1

    x = jax.random.normal(k_x, (N, Cin, H, W), dtype=jnp.float32)
    params = init_block_params(k_p, Cin, intermediate)

    fwd = jax.jit(functools.partial(block_forward, stride=stride))
    out = jax.block_until_ready(fwd(x, params))

    ref = block_reference(x, params, stride=stride)
    assert out.shape == ref.shape == (N, intermediate * 4, H, W)
    # bf16 MXU operands with f32 accumulation -> compare at bf16-level tolerance.
    err = jnp.max(jnp.abs(out - ref) / (jnp.abs(ref) + 1.0))
    assert err < 5e-2, err
    print("KERNEL_OK")
</pallas_src>

<mosaic_0001>
module attributes {stable_mosaic.version = 11 : i64} {
  func.func @_bottleneck_kernel(%arg0: i32, %arg1: i32, %arg2: memref<1x16x16x128xbf16, #tpu.memory_space<vmem>>, %arg3: memref<128x128xbf16, #tpu.memory_space<vmem>>, %arg4: memref<1x128xf32, #tpu.memory_space<vmem>>, %arg5: memref<9x128x128xbf16, #tpu.memory_space<vmem>>, %arg6: memref<1x128xf32, #tpu.memory_space<vmem>>, %arg7: memref<128x128xbf16, #tpu.memory_space<vmem>>, %arg8: memref<1x128xf32, #tpu.memory_space<vmem>>, %arg9: memref<1x16x16x128xf32, #tpu.memory_space<vmem>>, %arg10: memref<18x18x128xbf16, #tpu.memory_space<vmem>>) attributes {dimension_semantics = [#tpu.dimension_semantics<parallel>, #tpu.dimension_semantics<parallel>], iteration_bounds = array<i64: 2, 1>, scalar_prefetch = 0 : i64, scratch_operands = 1 : i64, tpu.core_type = #tpu.core_type<tc>, window_params = [{transform_indices = @transform_0, window_bounds = array<i64: 1, 16, 16, 128>}, {pipeline_mode = #tpu.pipeline_mode<synchronous>, transform_indices = @transform_1, window_bounds = array<i64: 128, 128>}, {pipeline_mode = #tpu.pipeline_mode<synchronous>, transform_indices = @transform_2, window_bounds = array<i64: 1, 128>}, {pipeline_mode = #tpu.pipeline_mode<synchronous>, transform_indices = @transform_3, window_bounds = array<i64: 9, 128, 128>}, {pipeline_mode = #tpu.pipeline_mode<synchronous>, transform_indices = @transform_4, window_bounds = array<i64: 1, 128>}, {pipeline_mode = #tpu.pipeline_mode<synchronous>, transform_indices = @transform_5, window_bounds = array<i64: 128, 128>}, {pipeline_mode = #tpu.pipeline_mode<synchronous>, transform_indices = @transform_6, window_bounds = array<i64: 1, 128>}, {transform_indices = @transform_7, window_bounds = array<i64: 1, 16, 16, 128>}]} {
    %c16_i32 = arith.constant 16 : i32
    %0 = arith.muli %arg1, %c16_i32 : i32
    %1 = tpu.assume_multiple %0, 16 : i32
    %c0 = arith.constant 0 : index
    %c0_0 = arith.constant 0 : index
    %2 = vector.load %arg3[%c0, %c0_0] : memref<128x128xbf16, #tpu.memory_space<vmem>>, vector<128x128xbf16>
    %c0_1 = arith.constant 0 : index
    %c0_2 = arith.constant 0 : index
    %3 = vector.load %arg4[%c0_1, %c0_2] : memref<1x128xf32, #tpu.memory_space<vmem>>, vector<1x128xf32>
    %cst = arith.constant 0.000000e+00 : bf16
    %4 = vector.broadcast %cst : bf16 to vector<18x1x128xbf16>
    %c0_3 = arith.constant 0 : index
    %c0_4 = arith.constant 0 : index
    %c0_5 = arith.constant 0 : index
    %5 = vector.load %arg10[%c0_3, %c0_4, %c0_5] : memref<18x18x128xbf16, #tpu.memory_space<vmem>>, vector<18x1x128xbf16>
    tpu.vector_store %arg10[%c0_3, %c0_4, %c0_5], %4 {strides = array<i32>} : memref<18x18x128xbf16, #tpu.memory_space<vmem>>, vector<18x1x128xbf16>,
    %c0_6 = arith.constant 0 : index
    %c17 = arith.constant 17 : index
    %c0_7 = arith.constant 0 : index
    %6 = vector.load %arg10[%c0_6, %c17, %c0_7] : memref<18x18x128xbf16, #tpu.memory_space<vmem>>, vector<18x1x128xbf16>
    tpu.vector_store %arg10[%c0_6, %c17, %c0_7], %4 {strides = array<i32>} : memref<18x18x128xbf16, #tpu.memory_space<vmem>>, vector<18x1x128xbf16>,
    %c0_8 = arith.constant 0 : index
    %7 = arith.index_cast %1 : i32 to index
    %c0_9 = arith.constant 0 : index
    %c0_10 = arith.constant 0 : index
    %8 = vector.load %arg2[%c0_8, %7, %c0_9, %c0_10] : memref<1x16x16x128xbf16, #tpu.memory_space<vmem>>, vector<1x16x16x128xbf16>
    %9 = vector.shape_cast %8 : vector<1x16x16x128xbf16> to vector<16x16x128xbf16>
    %10 = vector.shape_cast %9 : vector<16x16x128xbf16> to vector<256x128xbf16>
    %cst_11 = arith.constant dense<0.000000e+00> : vector<256x128xf32>
    %11 = tpu.matmul %10, %2, %cst_11 {dimension_numbers = #tpu.dot_dimension_numbers<[1], [0], [0], [1], [0, 0, 1, 1], [], []>} : vector<256x128xbf16>, vector<128x128xbf16>, vector<256x128xf32> -> vector<256x128xf32>
    %12 = vector.broadcast %3 : vector<1x128xf32> to vector<256x128xf32>
    %13 = arith.addf %11, %12 : vector<256x128xf32>
    %cst_12 = arith.constant 0.000000e+00 : f32
    %14 = vector.broadcast %cst_12 : f32 to vector<256x128xf32>
    %15 = arith.maximumf %13, %14 : vector<256x128xf32>
    %16 = arith.truncf %15 : vector<256x128xf32> to vector<256x128xbf16>
    %17 = vector.shape_cast %16 : vector<256x128xbf16> to vector<16x16x128xbf16>
    %c1 = arith.constant 1 : index
    %c1_13 = arith.constant 1 : index
    %c0_14 = arith.constant 0 : index
    %18 = vector.load %arg10[%c1, %c1_13, %c0_14] : memref<18x18x128xbf16, #tpu.memory_space<vmem>>, vector<16x16x128xbf16>
    tpu.vector_store %arg10[%c1, %c1_13, %c0_14], %17 {strides = array<i32>} : memref<18x18x128xbf16, #tpu.memory_space<vmem>>, vector<16x16x128xbf16>,
    %cst_15 = arith.constant 0.000000e+00 : bf16
    %19 = vector.broadcast %cst_15 : bf16 to vector<1x16x128xbf16>
    %c0_i32 = arith.constant 0 : i32
    %20 = arith.cmpi eq, %arg1, %c0_i32 : i32
    %21 = arith.extui %20 : i1 to i32
    %c0_i32_16 = arith.constant 0 : i32
    %22 = arith.cmpi ne, %21, %c0_i32_16 : i32
    scf.if %22 {
      %c0_93 = arith.constant 0 : index
      %c1_94 = arith.constant 1 : index
      %c0_95 = arith.constant 0 : index
      %106 = vector.load %arg10[%c0_93, %c1_94, %c0_95] : memref<18x18x128xbf16, #tpu.memory_space<vmem>>, vector<1x16x128xbf16>
      tpu.vector_store %arg10[%c0_93, %c1_94, %c0_95], %19 {strides = array<i32>} : memref<18x18x128xbf16, #tpu.memory_space<vmem>>, vector<1x16x128xbf16>,
    } else {
    }
    %c0_i32_17 = arith.constant 0 : i32
    %23 = arith.cmpi sgt, %arg1, %c0_i32_17 : i32
    %24 = arith.extui %23 : i1 to i32
    %c0_i32_18 = arith.constant 0 : i32
    %25 = arith.cmpi ne, %24, %c0_i32_18 : i32
    scf.if %25 {
      %c1_i32 = arith.constant 1 : i32
      %106 = arith.subi %1, %c1_i32 : i32
      %c0_93 = arith.constant 0 : index
      %107 = arith.index_cast %106 : i32 to index
      %c0_94 = arith.constant 0 : index
      %c0_95 = arith.constant 0 : index
      %108 = vector.load %arg2[%c0_93, %107, %c0_94, %c0_95] : memref<1x16x16x128xbf16, #tpu.memory_space<vmem>>, vector<1x1x16x128xbf16>
      %109 = vector.shape_cast %108 : vector<1x1x16x128xbf16> to vector<1x16x128xbf16>
      %110 = vector.shape_cast %109 : vector<1x16x128xbf16> to vector<16x128xbf16>
      %cst_96 = arith.constant dense<0.000000e+00> : vector<16x128xf32>
      %111 = tpu.matmul %110, %2, %cst_96 {dimension_numbers = #tpu.dot_dimension_numbers<[1], [0], [0], [1], [0, 0, 1, 1], [], []>} : vector<16x128xbf16>, vector<128x128xbf16>, vector<16x128xf32> -> vector<16x128xf32>
      %112 = vector.broadcast %3 : vector<1x128xf32> to vector<16x128xf32>
      %113 = arith.addf %111, %112 : vector<16x128xf32>
      %cst_97 = arith.constant 0.000000e+00 : f32
      %114 = vector.broadcast %cst_97 : f32 to vector<16x128xf32>
      %115 = arith.maximumf %113, %114 : vector<16x128xf32>
      %116 = arith.truncf %115 : vector<16x128xf32> to vector<16x128xbf16>
      %117 = vector.shape_cast %116 : vector<16x128xbf16> to vector<1x16x128xbf16>
      %c0_98 = arith.constant 0 : index
      %c1_99 = arith.constant 1 : index
      %c0_100 = arith.constant 0 : index
      %118 = vector.load %arg10[%c0_98, %c1_99, %c0_100] : memref<18x18x128xbf16, #tpu.memory_space<vmem>>, vector<1x16x128xbf16>
      tpu.vector_store %arg10[%c0_98, %c1_99, %c0_100], %117 {strides = array<i32>} : memref<18x18x128xbf16, #tpu.memory_space<vmem>>, vector<1x16x128xbf16>,
    } else {
    }
    %c0_i32_19 = arith.constant 0 : i32
    %26 = arith.cmpi eq, %arg1, %c0_i32_19 : i32
    %27 = arith.extui %26 : i1 to i32
    %c0_i32_20 = arith.constant 0 : i32
    %28 = arith.cmpi ne, %27, %c0_i32_20 : i32
    scf.if %28 {
      %c17_93 = arith.constant 17 : index
      %c1_94 = arith.constant 1 : index
      %c0_95 = arith.constant 0 : index
      %106 = vector.load %arg10[%c17_93, %c1_94, %c0_95] : memref<18x18x128xbf16, #tpu.memory_space<vmem>>, vector<1x16x128xbf16>
      tpu.vector_store %arg10[%c17_93, %c1_94, %c0_95], %19 {strides = array<i32>} : memref<18x18x128xbf16, #tpu.memory_space<vmem>>, vector<1x16x128xbf16>,
    } else {
    }
    %c0_i32_21 = arith.constant 0 : i32
    %29 = arith.cmpi slt, %arg1, %c0_i32_21 : i32
    %30 = arith.extui %29 : i1 to i32
    %c0_i32_22 = arith.constant 0 : i32
    %31 = arith.cmpi ne, %30, %c0_i32_22 : i32
    scf.if %31 {
      %c16_i32_93 = arith.constant 16 : i32
      %106 = arith.addi %1, %c16_i32_93 : i32
      %c0_94 = arith.constant 0 : index
      %107 = arith.index_cast %106 : i32 to index
      %c0_95 = arith.constant 0 : index
      %c0_96 = arith.constant 0 : index
      %108 = vector.load %arg2[%c0_94, %107, %c0_95, %c0_96] : memref<1x16x16x128xbf16, #tpu.memory_space<vmem>>, vector<1x1x16x128xbf16>
      %109 = vector.shape_cast %108 : vector<1x1x16x128xbf16> to vector<1x16x128xbf16>
      %110 = vector.shape_cast %109 : vector<1x16x128xbf16> to vector<16x128xbf16>
      %cst_97 = arith.constant dense<0.000000e+00> : vector<16x128xf32>
      %111 = tpu.matmul %110, %2, %cst_97 {dimension_numbers = #tpu.dot_dimension_numbers<[1], [0], [0], [1], [0, 0, 1, 1], [], []>} : vector<16x128xbf16>, vector<128x128xbf16>, vector<16x128xf32> -> vector<16x128xf32>
      %112 = vector.broadcast %3 : vector<1x128xf32> to vector<16x128xf32>
      %113 = arith.addf %111, %112 : vector<16x128xf32>
      %cst_98 = arith.constant 0.000000e+00 : f32
      %114 = vector.broadcast %cst_98 : f32 to vector<16x128xf32>
      %115 = arith.maximumf %113, %114 : vector<16x128xf32>
      %116 = arith.truncf %115 : vector<16x128xf32> to vector<16x128xbf16>
      %117 = vector.shape_cast %116 : vector<16x128xbf16> to vector<1x16x128xbf16>
      %c17_99 = arith.constant 17 : index
      %c1_100 = arith.constant 1 : index
      %c0_101 = arith.constant 0 : index
      %118 = vector.load %arg10[%c17_99, %c1_100, %c0_101] : memref<18x18x128xbf16, #tpu.memory_space<vmem>>, vector<1x16x128xbf16>
      tpu.vector_store %arg10[%c17_99, %c1_100, %c0_101], %117 {strides = array<i32>} : memref<18x18x128xbf16, #tpu.memory_space<vmem>>, vector<1x16x128xbf16>,
    } else {
    }
    %cst_23 = arith.constant 0.000000e+00 : f32
    %32 = vector.broadcast %cst_23 : f32 to vector<256x128xf32>
    %c0_24 = arith.constant 0 : index
    %c0_25 = arith.constant 0 : index
    %c0_26 = arith.constant 0 : index
    %33 = vector.load %arg10[%c0_24, %c0_25, %c0_26] : memref<18x18x128xbf16, #tpu.memory_space<vmem>>, vector<16x16x128xbf16>
    %34 = vector.shape_cast %33 : vector<16x16x128xbf16> to vector<256x128xbf16>
    %c0_27 = arith.constant 0 : index
    %c0_28 = arith.constant 0 : index
    %c0_29 = arith.constant 0 : index
    %35 = vector.load %arg5[%c0_27, %c0_28, %c0_29] : memref<9x128x128xbf16, #tpu.memory_space<vmem>>, vector<1x128x128xbf16>
    %36 = vector.shape_cast %35 : vector<1x128x128xbf16> to vector<128x128xbf16>
    %cst_30 = arith.constant dense<0.000000e+00> : vector<256x128xf32>
    %37 = tpu.matmul %34, %36, %cst_30 {dimension_numbers = #tpu.dot_dimension_numbers<[1], [0], [0], [1], [0, 0, 1, 1], [], []>} : vector<256x128xbf16>, vector<128x128xbf16>, vector<256x128xf32> -> vector<256x128xf32>
    %38 = arith.addf %32, %37 : vector<256x128xf32>
    %c0_31 = arith.constant 0 : index
    %c1_32 = arith.constant 1 : index
    %c0_33 = arith.constant 0 : index
    %39 = vector.load %arg10[%c0_31, %c1_32, %c0_33] : memref<18x18x128xbf16, #tpu.memory_space<vmem>>, vector<16x16x128xbf16>
    %40 = vector.shape_cast %39 : vector<16x16x128xbf16> to vector<256x128xbf16>
    %c1_34 = arith.constant 1 : index
    %c0_35 = arith.constant 0 : index
    %c0_36 = arith.constant 0 : index
    %41 = vector.load %arg5[%c1_34, %c0_35, %c0_36] : memref<9x128x128xbf16, #tpu.memory_space<vmem>>, vector<1x128x128xbf16>
    %42 = vector.shape_cast %41 : vector<1x128x128xbf16> to vector<128x128xbf16>
    %cst_37 = arith.constant dense<0.000000e+00> : vector<256x128xf32>
    %43 = tpu.matmul %40, %42, %cst_37 {dimension_numbers = #tpu.dot_dimension_numbers<[1], [0], [0], [1], [0, 0, 1, 1], [], []>} : vector<256x128xbf16>, vector<128x128xbf16>, vector<256x128xf32> -> vector<256x128xf32>
    %44 = arith.addf %38, %43 : vector<256x128xf32>
    %c0_38 = arith.constant 0 : index
    %c2 = arith.constant 2 : index
    %c0_39 = arith.constant 0 : index
    %45 = vector.load %arg10[%c0_38, %c2, %c0_39] : memref<18x18x128xbf16, #tpu.memory_space<vmem>>, vector<16x16x128xbf16>
    %46 = vector.shape_cast %45 : vector<16x16x128xbf16> to vector<256x128xbf16>
    %c2_40 = arith.constant 2 : index
    %c0_41 = arith.constant 0 : index
    %c0_42 = arith.constant 0 : index
    %47 = vector.load %arg5[%c2_40, %c0_41, %c0_42] : memref<9x128x128xbf16, #tpu.memory_space<vmem>>, vector<1x128x128xbf16>
    %48 = vector.shape_cast %47 : vector<1x128x128xbf16> to vector<128x128xbf16>
    %cst_43 = arith.constant dense<0.000000e+00> : vector<256x128xf32>
    %49 = tpu.matmul %46, %48, %cst_43 {dimension_numbers = #tpu.dot_dimension_numbers<[1], [0], [0], [1], [0, 0, 1, 1], [], []>} : vector<256x128xbf16>, vector<128x128xbf16>, vector<256x128xf32> -> vector<256x128xf32>
    %50 = arith.addf %44, %49 : vector<256x128xf32>
    %c1_44 = arith.constant 1 : index
    %c0_45 = arith.constant 0 : index
    %c0_46 = arith.constant 0 : index
    %51 = vector.load %arg10[%c1_44, %c0_45, %c0_46] : memref<18x18x128xbf16, #tpu.memory_space<vmem>>, vector<16x16x128xbf16>
    %52 = vector.shape_cast %51 : vector<16x16x128xbf16> to vector<256x128xbf16>
    %c3 = arith.constant 3 : index
    %c0_47 = arith.constant 0 : index
    %c0_48 = arith.constant 0 : index
    %53 = vector.load %arg5[%c3, %c0_47, %c0_48] : memref<9x128x128xbf16, #tpu.memory_space<vmem>>, vector<1x128x128xbf16>
    %54 = vector.shape_cast %53 : vector<1x128x128xbf16> to vector<128x128xbf16>
    %cst_49 = arith.constant dense<0.000000e+00> : vector<256x128xf32>
    %55 = tpu.matmul %52, %54, %cst_49 {dimension_numbers = #tpu.dot_dimension_numbers<[1], [0], [0], [1], [0, 0, 1, 1], [], []>} : vector<256x128xbf16>, vector<128x128xbf16>, vector<256x128xf32> -> vector<256x128xf32>
    %56 = arith.addf %50, %55 : vector<256x128xf32>
    %c1_50 = arith.constant 1 : index
    %c1_51 = arith.constant 1 : index
    %c0_52 = arith.constant 0 : index
    %57 = vector.load %arg10[%c1_50, %c1_51, %c0_52] : memref<18x18x128xbf16, #tpu.memory_space<vmem>>, vector<16x16x128xbf16>
    %58 = vector.shape_cast %57 : vector<16x16x128xbf16> to vector<256x128xbf16>
    %c4 = arith.constant 4 : index
    %c0_53 = arith.constant 0 : index
    %c0_54 = arith.constant 0 : index
    %59 = vector.load %arg5[%c4, %c0_53, %c0_54] : memref<9x128x128xbf16, #tpu.memory_space<vmem>>, vector<1x128x128xbf16>
    %60 = vector.shape_cast %59 : vector<1x128x128xbf16> to vector<128x128xbf16>
    %cst_55 = arith.constant dense<0.000000e+00> : vector<256x128xf32>
    %61 = tpu.matmul %58, %60, %cst_55 {dimension_numbers = #tpu.dot_dimension_numbers<[1], [0], [0], [1], [0, 0, 1, 1], [], []>} : vector<256x128xbf16>, vector<128x128xbf16>, vector<256x128xf32> -> vector<256x128xf32>
    %62 = arith.addf %56, %61 : vector<256x128xf32>
    %c1_56 = arith.constant 1 : index
    %c2_57 = arith.constant 2 : index
    %c0_58 = arith.constant 0 : index
    %63 = vector.load %arg10[%c1_56, %c2_57, %c0_58] : memref<18x18x128xbf16, #tpu.memory_space<vmem>>, vector<16x16x128xbf16>
    %64 = vector.shape_cast %63 : vector<16x16x128xbf16> to vector<256x128xbf16>
    %c5 = arith.constant 5 : index
    %c0_59 = arith.constant 0 : index
    %c0_60 = arith.constant 0 : index
    %65 = vector.load %arg5[%c5, %c0_59, %c0_60] : memref<9x128x128xbf16, #tpu.memory_space<vmem>>, vector<1x128x128xbf16>
    %66 = vector.shape_cast %65 : vector<1x128x128xbf16> to vector<128x128xbf16>
    %cst_61 = arith.constant dense<0.000000e+00> : vector<256x128xf32>
    %67 = tpu.matmul %64, %66, %cst_61 {dimension_numbers = #tpu.dot_dimension_numbers<[1], [0], [0], [1], [0, 0, 1, 1], [], []>} : vector<256x128xbf16>, vector<128x128xbf16>, vector<256x128xf32> -> vector<256x128xf32>
    %68 = arith.addf %62, %67 : vector<256x128xf32>
    %c2_62 = arith.constant 2 : index
    %c0_63 = arith.constant 0 : index
    %c0_64 = arith.constant 0 : index
    %69 = vector.load %arg10[%c2_62, %c0_63, %c0_64] : memref<18x18x128xbf16, #tpu.memory_space<vmem>>, vector<16x16x128xbf16>
    %70 = vector.shape_cast %69 : vector<16x16x128xbf16> to vector<256x128xbf16>
    %c6 = arith.constant 6 : index
    %c0_65 = arith.constant 0 : index
    %c0_66 = arith.constant 0 : index
    %71 = vector.load %arg5[%c6, %c0_65, %c0_66] : memref<9x128x128xbf16, #tpu.memory_space<vmem>>, vector<1x128x128xbf16>
    %72 = vector.shape_cast %71 : vector<1x128x128xbf16> to vector<128x128xbf16>
    %cst_67 = arith.constant dense<0.000000e+00> : vector<256x128xf32>
    %73 = tpu.matmul %70, %72, %cst_67 {dimension_numbers = #tpu.dot_dimension_numbers<[1], [0], [0], [1], [0, 0, 1, 1], [], []>} : vector<256x128xbf16>, vector<128x128xbf16>, vector<256x128xf32> -> vector<256x128xf32>
    %74 = arith.addf %68, %73 : vector<256x128xf32>
    %c2_68 = arith.constant 2 : index
    %c1_69 = arith.constant 1 : index
    %c0_70 = arith.constant 0 : index
    %75 = vector.load %arg10[%c2_68, %c1_69, %c0_70] : memref<18x18x128xbf16, #tpu.memory_space<vmem>>, vector<16x16x128xbf16>
    %76 = vector.shape_cast %75 : vector<16x16x128xbf16> to vector<256x128xbf16>
    %c7 = arith.constant 7 : index
    %c0_71 = arith.constant 0 : index
    %c0_72 = arith.constant 0 : index
    %77 = vector.load %arg5[%c7, %c0_71, %c0_72] : memref<9x128x128xbf16, #tpu.memory_space<vmem>>, vector<1x128x128xbf16>
    %78 = vector.shape_cast %77 : vector<1x128x128xbf16> to vector<128x128xbf16>
    %cst_73 = arith.constant dense<0.000000e+00> : vector<256x128xf32>
    %79 = tpu.matmul %76, %78, %cst_73 {dimension_numbers = #tpu.dot_dimension_numbers<[1], [0], [0], [1], [0, 0, 1, 1], [], []>} : vector<256x128xbf16>, vector<128x128xbf16>, vector<256x128xf32> -> vector<256x128xf32>
    %80 = arith.addf %74, %79 : vector<256x128xf32>
    %c2_74 = arith.constant 2 : index
    %c2_75 = arith.constant 2 : index
    %c0_76 = arith.constant 0 : index
    %81 = vector.load %arg10[%c2_74, %c2_75, %c0_76] : memref<18x18x128xbf16, #tpu.memory_space<vmem>>, vector<16x16x128xbf16>
    %82 = vector.shape_cast %81 : vector<16x16x128xbf16> to vector<256x128xbf16>
    %c8 = arith.constant 8 : index
    %c0_77 = arith.constant 0 : index
    %c0_78 = arith.constant 0 : index
    %83 = vector.load %arg5[%c8, %c0_77, %c0_78] : memref<9x128x128xbf16, #tpu.memory_space<vmem>>, vector<1x128x128xbf16>
    %84 = vector.shape_cast %83 : vector<1x128x128xbf16> to vector<128x128xbf16>
    %cst_79 = arith.constant dense<0.000000e+00> : vector<256x128xf32>
    %85 = tpu.matmul %82, %84, %cst_79 {dimension_numbers = #tpu.dot_dimension_numbers<[1], [0], [0], [1], [0, 0, 1, 1], [], []>} : vector<256x128xbf16>, vector<128x128xbf16>, vector<256x128xf32> -> vector<256x128xf32>
    %86 = arith.addf %80, %85 : vector<256x128xf32>
    %c0_80 = arith.constant 0 : index
    %c0_81 = arith.constant 0 : index
    %87 = vector.load %arg6[%c0_80, %c0_81] : memref<1x128xf32, #tpu.memory_space<vmem>>, vector<1x128xf32>
    %88 = vector.broadcast %87 : vector<1x128xf32> to vector<256x128xf32>
    %89 = arith.addf %86, %88 : vector<256x128xf32>
    %cst_82 = arith.constant 0.000000e+00 : f32
    %90 = vector.broadcast %cst_82 : f32 to vector<256x128xf32>
    %91 = arith.maximumf %89, %90 : vector<256x128xf32>
    %92 = arith.truncf %91 : vector<256x128xf32> to vector<256x128xbf16>
    %c0_83 = arith.constant 0 : index
    %c0_84 = arith.constant 0 : index
    %93 = vector.load %arg7[%c0_83, %c0_84] : memref<128x128xbf16, #tpu.memory_space<vmem>>, vector<128x128xbf16>
    %cst_85 = arith.constant dense<0.000000e+00> : vector<256x128xf32>
    %94 = tpu.matmul %92, %93, %cst_85 {dimension_numbers = #tpu.dot_dimension_numbers<[1], [0], [0], [1], [0, 0, 1, 1], [], []>} : vector<256x128xbf16>, vector<128x128xbf16>, vector<256x128xf32> -> vector<256x128xf32>
    %c0_86 = arith.constant 0 : index
    %c0_87 = arith.constant 0 : index
    %95 = vector.load %arg8[%c0_86, %c0_87] : memref<1x128xf32, #tpu.memory_space<vmem>>, vector<1x128xf32>
    %96 = vector.broadcast %95 : vector<1x128xf32> to vector<256x128xf32>
    %97 = arith.addf %94, %96 : vector<256x128xf32>
    %98 = arith.extf %10 : vector<256x128xbf16> to vector<256x128xf32>
    %99 = arith.addf %97, %98 : vector<256x128xf32>
    %cst_88 = arith.constant 0.000000e+00 : f32
    %100 = vector.broadcast %cst_88 : f32 to vector<256x128xf32>
    %101 = arith.maximumf %99, %100 : vector<256x128xf32>
    %102 = vector.shape_cast %101 : vector<256x128xf32> to vector<16x16x128xf32>
    %c0_89 = arith.constant 0 : index
    %c0_90 = arith.constant 0 : index
    %c0_91 = arith.constant 0 : index
    %c0_92 = arith.constant 0 : index
    %103 = vector.load %arg9[%c0_89, %c0_90, %c0_91, %c0_92] : memref<1x16x16x128xf32, #tpu.memory_space<vmem>>, vector<1x16x16x128xf32>
    %104 = vector.shape_cast %103 : vector<1x16x16x128xf32> to vector<16x16x128xf32>
    %105 = vector.shape_cast %102 : vector<16x16x128xf32> to vector<1x16x16x128xf32>
    tpu.vector_store %arg9[%c0_89, %c0_90, %c0_91, %c0_92], %105 {strides = array<i32>} : memref<1x16x16x128xf32, #tpu.memory_space<vmem>>, vector<1x16x16x128xf32>,
    return
  }
  func.func @transform_0(%arg0: i32, %arg1: i32) -> (i32, i32, i32, i32) {
    %c0_i32 = arith.constant 0 : i32
    %c0_i32_0 = arith.constant 0 : i32
    %c0_i32_1 = arith.constant 0 : i32
    %c0_i32_2 = arith.constant 0 : i32
    return %arg0, %c0_i32, %c0_i32_0, %c0_i32_1 : i32, i32, i32, i32
  }
  func.func @transform_1(%arg0: i32, %arg1: i32) -> (i32, i32) {
    %c0_i32 = arith.constant 0 : i32
    %c0_i32_0 = arith.constant 0 : i32
    %c0_i32_1 = arith.constant 0 : i32
    return %c0_i32, %c0_i32_0 : i32, i32
  }
  func.func @transform_2(%arg0: i32, %arg1: i32) -> (i32, i32) {
    %c0_i32 = arith.constant 0 : i32
    %c0_i32_0 = arith.constant 0 : i32
    %c0_i32_1 = arith.constant 0 : i32
    return %c0_i32, %c0_i32_0 : i32, i32
  }
  func.func @transform_3(%arg0: i32, %arg1: i32) -> (i32, i32, i32) {
    %c0_i32 = arith.constant 0 : i32
    %c0_i32_0 = arith.constant 0 : i32
    %c0_i32_1 = arith.constant 0 : i32
    %c0_i32_2 = arith.constant 0 : i32
    return %c0_i32, %c0_i32_0, %c0_i32_1 : i32, i32, i32
  }
  func.func @transform_4(%arg0: i32, %arg1: i32) -> (i32, i32) {
    %c0_i32 = arith.constant 0 : i32
    %c0_i32_0 = arith.constant 0 : i32
    %c0_i32_1 = arith.constant 0 : i32
    return %c0_i32, %c0_i32_0 : i32, i32
  }
  func.func @transform_5(%arg0: i32, %arg1: i32) -> (i32, i32) {
    %c0_i32 = arith.constant 0 : i32
    %c0_i32_0 = arith.constant 0 : i32
    %c0_i32_1 = arith.constant 0 : i32
    return %c0_i32, %c0_i32_0 : i32, i32
  }
  func.func @transform_6(%arg0: i32, %arg1: i32) -> (i32, i32) {
    %c0_i32 = arith.constant 0 : i32
    %c0_i32_0 = arith.constant 0 : i32
    %c0_i32_1 = arith.constant 0 : i32
    return %c0_i32, %c0_i32_0 : i32, i32
  }
  func.func @transform_7(%arg0: i32, %arg1: i32) -> (i32, i32, i32, i32) {
    %c0_i32 = arith.constant 0 : i32
    %c0_i32_0 = arith.constant 0 : i32
    %c0_i32_1 = arith.constant 0 : i32
    return %arg0, %arg1, %c0_i32, %c0_i32_0 : i32, i32, i32, i32
  }
}

</mosaic_0001>

<bundles_post_ra>
// kernel: block_forward.1
= control target key start
LH: loop header
LB: loop body
LE: loop exit
PB: predicated region body
PF: predicated region fallthrough
CT: control target
= control target key end

     0   :  { %s8811_s24 = smov 0   ;;  %s8813_s25 = smov 0   ;;  %s10751_s0 = inlined_call_operand.vmem [shape: bf16[2,16,16,128], index: 0, kind: input, shape index: {}]   ;;  %s10752_s1 = inlined_call_operand.vmem [shape: bf16[128,128], index: 1, kind: input, shape index: {}]   ;;  %s10753_s2 = inlined_call_operand.vmem [shape: f32[1,128], index: 2, kind: input, shape index: {}]   ;;  %s10754_s3 = inlined_call_operand.vmem [shape: bf16[9,128,128], index: 3, kind: input, shape index: {}]   ;;  %s10755_s4 = inlined_call_operand.vmem [shape: f32[1,128], index: 4, kind: input, shape index: {}]   ;;  %s10756_s5 = inlined_call_operand.vmem [shape: bf16[128,128], index: 5, kind: input, shape index: {}]   ;;  %s10757_s6 = inlined_call_operand.vmem [shape: f32[1,128], index: 6, kind: input, shape index: {}]   ;;  %s10758_s7 = inlined_call_operand.vmem [shape: f32[2,16,16,128], index: 7, kind: output, shape index: {}]  }
   0x1   :  { %s8815_s26 = smov 0  }
   0x2 LB: > { %s29_s27 = sadd.s32 1, %s8764_s25  ;;  %p6908_p0 = scmp.ge.s32.totalorder %s8768_s26, 1  ;;  %s8768_s26 = sphi %s8815_s26, %s17_s26   ;;  %s8764_s25 = sphi %s8813_s25, %s10865_s25   ;;  %s8760_s24 = sphi %s8811_s24, %s10864_s24  }
   0x3   : > { %p31_p1 = scmp.ge.s32.totalorder %s29_s27, 2  ;;  %p251_p2 = scmp.lt.s32.totalorder %s8768_s26, 3 }
   0x5   : > { %s10867_s27 = smov (%p31_p1, %s29_s27), 0  ;;  %p252_p3 = pnand %p6908_p0, %p251_p2 }
   0x7   : > { %255 = sbr.rel (%p252_p3) target bundleno = 1184 (0x4a0), region = 48 }
   0xe   : > { %v8511_v0 = vld [vmem:[%s10752_s1] sm:$0xff]   ;;  %p288_p4 = scmp.lt.s32.totalorder %s8760_s24, 1  ;;  %v8512_v1 = vld [vmem:[%s10752_s1 + $0x8] sm:$0xff]   ;;  %v8513_v2 = vld [vmem:[%s10752_s1 + $0x10] sm:$0xff]   ;;  %vm323_vm0 = vcmask 1040384   ;;  %v10783_v6 = vmov 0 }
   0xf   : > { %7686 = vmatprep.subr.bf16.mxu0 %v8511_v0  ;;  %v8514_v3 = vld [vmem:[%s10752_s1 + $0x18] sm:$0xff]   ;;  %vm324_vm1 = vsmask.f32 256  ;;  %v8515_v5 = vld [vmem:[%s10752_s1 + $0x20] sm:$0xff]   ;;  %v8516_v8 = vld [vmem:[%s10752_s1 + $0x28] sm:$0xff]   ;;  %v10786_v30 = vmov 0 }
  0x10   : > { %s10869_s24 = smov (!%p288_p4, %s8760_s24), 1  ;;  %7687 = vmatpush3.bf16.msra.mxu0 %v8511_v0  ;;  %vm8855_vm2 = vmand %vm323_vm0, %vm324_vm1  ;;  %v332_v7 = vld [vmem:[#allocation2 + $0x18] sm:$0x1]  ;;  %v8517_v10 = vld [vmem:[%s10752_s1 + $0x30] sm:$0xff]   ;;  %vm380_vm3 = vsmask.f32 7938 }
  0x11   : > { %7688 = vmatprep.subr.bf16.mxu0 %v8512_v1  ;;  %s7384_s11 = sshll.u32 %s10869_s24, 7  ;;  %v10784_v6 = vsel %vm8855_vm2, 4294967295, %v10783_v6  ;;  %v333_v9 = vsel %vm8855_vm2, 0, %v332_v7  ;;  %v8518_v11 = vld [vmem:[%s10752_s1 + $0x38] sm:$0xff]   ;;  %v8535_v27 = vld [vmem:[%s10754_s3 + $0x40] sm:$0xff]   ;;  %vm8892_vm4 = vmand %vm323_vm0, %vm380_vm3  ;;  %vm1233_vm5 = vcmask 1043456  }
  0x12   : > { %s8844_s14 = scalar_lea.vmem %s10751_s0, %s7384_s11  ;;  %10785 = vst [vmem:[#allocation3_spill] sm:$0xff] %v10784_v6  ;;  %334 = vst [vmem:[#allocation2 + $0x18] sm:$0x1] %v333_v9  ;;  %v329_v28 = vld [vmem:[#allocation2 + $0xc] sm:$0x1]  ;;  %v10787_v30 = vsel %vm8892_vm4, 4294967295, %v10786_v30 }
  0x13   : > { %v439_v4 = vld [vmem:[%s8844_s14] sm:$0xff]   ;;  %v441_v12 = vld [vmem:[%s8844_s14 + $0x8] sm:$0xff]   ;;  %v443_v13 = vld [vmem:[%s8844_s14 + $0x10] sm:$0xff]   ;;  %v330_v29 = vsel %vm8855_vm2, 0, %v329_v28  ;;  %10788 = vst [vmem:[#allocation4_spill] sm:$0xff] %v10787_v30  ;;  %v10789_v50 = vmov 0 }
  0x14   : > { %7689 = vmatpush3.bf16.msra.mxu0 %v8512_v1  ;;  %7702 = vmatprep.mubr.bf16.mxu0 %v439_v4  ;;  %v445_v14 = vld [vmem:[%s8844_s14 + $0x18] sm:$0xff]   ;;  %v447_v15 = vld [vmem:[%s8844_s14 + $0x20] sm:$0xff]   ;;  %v449_v16 = vld [vmem:[%s8844_s14 + $0x28] sm:$0xff]   ;;  %331 = vst [vmem:[#allocation2 + $0xc] sm:$0x1] %v330_v29  ;;  %v8770_v59 = vmov 0  }
  0x15   : > { %7690 = vmatprep.subr.bf16.mxu0 %v8513_v2  ;;  %v451_v17 = vld [vmem:[%s8844_s14 + $0x30] sm:$0xff]   ;;  %v453_v18 = vld [vmem:[%s8844_s14 + $0x38] sm:$0xff]   ;;  %v455_v19 = vld [vmem:[%s8844_s14 + $0x40] sm:$0xff]   ;;  %1354 = vst [vmem:[#allocation2 + $0x4] sm:$0xf] %v8770_v59  ;;  %vm2648_vm12 = vcmask 1042432  }
  0x16   : > { %v457_v20 = vld [vmem:[%s8844_s14 + $0x48] sm:$0xff]   ;;  %v459_v21 = vld [vmem:[%s8844_s14 + $0x50] sm:$0xff]   ;;  %v461_v22 = vld [vmem:[%s8844_s14 + $0x58] sm:$0xff]   ;;  %1457 = vst [vmem:[#allocation2 + $0xd0] sm:$0xf] %v8770_v59  ;;  %vm2649_vm13 = vcmask 1046532  }
  0x17   : > { %v463_v23 = vld [vmem:[%s8844_s14 + $0x60] sm:$0xff]   ;;  %v465_v24 = vld [vmem:[%s8844_s14 + $0x68] sm:$0xff]   ;;  %v467_v25 = vld [vmem:[%s8844_s14 + $0x70] sm:$0xff]   ;;  %vm1618_vm7 = vsmask.f32 3328  ;;  %s7385_s10 = sshll.u32 %s10869_s24, 8 }
  0x18   : > { %7691 = vmatpush3.bf16.msra.mxu0 %v8513_v2  ;;  %v469_v26 = vld [vmem:[%s8844_s14 + $0x78] sm:$0xff]   ;;  %v388_v31 = vld [vmem:[#allocation2 + $0x20] sm:$0x1]  ;;  %v385_v33 = vld [vmem:[#allocation2 + $0x14] sm:$0x1]  ;;  %s10665_s13 = scalar_lea.vmem %s10758_s7, %s7385_s10 }
  0x19   : > { %7692 = vmatprep.subr.bf16.mxu0 %v8514_v3  ;;  %v389_v32 = vsel %vm8892_vm4, 0, %v388_v31  ;;  %v8536_v34 = vld [vmem:[%s10754_s3 + $0x48] sm:$0xff]   ;;  %v386_v35 = vsel %vm8892_vm4, 0, %v385_v33  ;;  %v338_v36 = vld [vmem:[#allocation2 + $0x30] sm:$0x1]  ;;  %v8538_v46 = vld [vmem:[%s10754_s3 + $0x58] sm:$0xff]  }
  0x1a   : > { %390 = vst [vmem:[#allocation2 + $0x20] sm:$0x1] %v389_v32  ;;  %387 = vst [vmem:[#allocation2 + $0x14] sm:$0x1] %v386_v35  ;;  %v339_v37 = vsel %vm8855_vm2, 0, %v338_v36  ;;  %v8537_v42 = vld [vmem:[%s10754_s3 + $0x50] sm:$0xff]  }
  0x1b   : > { %v335_v38 = vld [vmem:[#allocation2 + $0x24] sm:$0x1]  ;;  %340 = vst [vmem:[#allocation2 + $0x30] sm:$0x1] %v339_v37  ;;  %v394_v40 = vld [vmem:[#allocation2 + $0x38] sm:$0x1]  ;;  %vm8922_vm6 = vmand %vm1233_vm5, %vm380_vm3 }
  0x1c   : > { %7693 = vmatpush3.bf16.msra.mxu0 %v8514_v3  ;;  %v336_v39 = vsel %vm8855_vm2, 0, %v335_v38  ;;  %v395_v41 = vsel %vm8892_vm4, 0, %v394_v40  ;;  %v326_v43 = vld [vmem:[#allocation2] sm:$0x1]  ;;  %v391_v45 = vld [vmem:[#allocation2 + $0x2c] sm:$0x1]  ;;  %vm9676_vm14 = vmor %vm2648_vm12, %vm2649_vm13 }
  0x1d   : > { %7694 = vmatprep.subr.bf16.mxu0 %v8515_v5  ;;  %337 = vst [vmem:[#allocation2 + $0x24] sm:$0x1] %v336_v39  ;;  %396 = vst [vmem:[#allocation2 + $0x38] sm:$0x1] %v395_v41  ;;  %v327_v44 = vsel %vm8855_vm2, 0, %v326_v43  ;;  %v392_v47 = vsel %vm8892_vm4, 0, %v391_v45 }
  0x1e   : > { %328 = vst [vmem:[#allocation2] sm:$0x1] %v327_v44  ;;  %v382_v48 = vld [vmem:[#allocation2 + $0x8] sm:$0x1]  ;;  %393 = vst [vmem:[#allocation2 + $0x2c] sm:$0x1] %v392_v47 }
  0x1f   : > { %v383_v49 = vsel %vm8892_vm4, 0, %v382_v48  ;;  %v10790_v50 = vsel %vm8922_vm6, 4294967295, %v10789_v50  ;;  %v344_v51 = vld [vmem:[#allocation2 + $0x48] sm:$0x1]  ;;  %v8539_v52 = vld [vmem:[%s10754_s3 + $0x60] sm:$0xff]   ;;  %v8542_v3 = vld [vmem:[%s10754_s3 + $0x70] sm:$0xff]  }
  0x20   : > { %7695 = vmatpush3.bf16.msra.mxu0 %v8515_v5  ;;  %384 = vst [vmem:[#allocation2 + $0x8] sm:$0x1] %v383_v49  ;;  %10791 = vst [vmem:[#allocation5_spill] sm:$0xff] %v10790_v50  ;;  %v345_v54 = vsel %vm8855_vm2, 0, %v344_v51  ;;  %v341_v55 = vld [vmem:[#allocation2 + $0x3c] sm:$0x1] }
  0x21   : > { %7696 = vmatprep.subr.bf16.mxu0 %v8516_v8  ;;  %346 = vst [vmem:[#allocation2 + $0x48] sm:$0x1] %v345_v54  ;;  %v342_v57 = vsel %vm8855_vm2, 0, %v341_v55  ;;  %v400_v58 = vld [vmem:[#allocation2 + $0x50] sm:$0x1]  ;;  %v8540_v62 = vld [vmem:[%s10754_s3 + $0x68] sm:$0xff]  }
  0x22   : > { %343 = vst [vmem:[#allocation2 + $0x3c] sm:$0x1] %v342_v57  ;;  %v401_v60 = vsel %vm8892_vm4, 0, %v400_v58  ;;  %v397_v61 = vld [vmem:[#allocation2 + $0x44] sm:$0x1]  ;;  %v8545_v39 = vld [vmem:[%s10754_s3 + $0xd0] sm:$0xff]  }
  0x23   : > { %402 = vst [vmem:[#allocation2 + $0x50] sm:$0x1] %v401_v60  ;;  %v398_v63 = vsel %vm8892_vm4, 0, %v397_v61  ;;  %v8541_v2 = vld [vmem:[%s10754_s3 + $0xc0] sm:$0xff]   ;;  %vm1619_vm8 = vsmask.f32 7440 }
  0x24   : > { %7697 = vmatpush3.bf16.msra.mxu0 %v8516_v8  ;;  %399 = vst [vmem:[#allocation2 + $0x44] sm:$0x1] %v398_v63  ;;  %v350_v4 = vld [vmem:[#allocation2 + $0x60] sm:$0x1]  ;;  %8214 = vmatprep.subr.bf16.mxu1 %v8541_v2  ;;  %v347_v8 = vld [vmem:[#allocation2 + $0x54] sm:$0x1]  ;;  %vm8971_vm9 = vmor %vm1618_vm7, %vm1619_vm8 }
  0x25   : > { %7698 = vmatprep.subr.bf16.mxu0 %v8517_v10  ;;  %v1351_v53 = vld [vmem:[#allocation2] sm:$0xf]  ;;  %v351_v7 = vsel %vm8855_vm2, 0, %v350_v4  ;;  %8222 = vmatpush3.bf16.msra.mxu1 %v8541_v2  ;;  %v353_v31 = vld [vmem:[#allocation2 + $0x6c] sm:$0x1] }
  0x26   : > { %v1352_v56 = vsel %vm8922_vm6, 0, %v1351_v53  ;;  %352 = vst [vmem:[#allocation2 + $0x60] sm:$0x1] %v351_v7  ;;  %v354_v32 = vsel %vm8855_vm2, 0, %v353_v31  ;;  %v412_v33 = vld [vmem:[#allocation2 + $0x80] sm:$0x1] }
  0x27   : > { %1353 = vst [vmem:[#allocation2] sm:$0xf] %v1352_v56  ;;  %v1355_v0 = vld [vmem:[#allocation2 + $0x8] sm:$0x1]  ;;  %355 = vst [vmem:[#allocation2 + $0x6c] sm:$0x1] %v354_v32 }
  0x28   : > { %7699 = vmatpush3.bf16.msra.mxu0 %v8517_v10  ;;  %v1356_v1 = vsel %vm8855_vm2, 0, %v1355_v0  ;;  %v348_v10 = vsel %vm8855_vm2, 0, %v347_v8  ;;  %v413_v37 = vsel %vm8892_vm4, 0, %v412_v33  ;;  %v409_v43 = vld [vmem:[#allocation2 + $0x74] sm:$0x1]  ;;  %v8547_v55 = vld [vmem:[%s10754_s3 + $0xe0] sm:$0xff]  }
  0x29   : > { %7700 = vmatprep.subr.bf16.mxu0 %v8518_v11  ;;  %1357 = vst [vmem:[#allocation2 + $0x8] sm:$0x1] %v1356_v1  ;;  %349 = vst [vmem:[#allocation2 + $0x54] sm:$0x1] %v348_v10  ;;  %v410_v45 = vsel %vm8892_vm4, 0, %v409_v43  ;;  %v8548_v57 = vld [vmem:[%s10754_s3 + $0xe8] sm:$0xff]  }
  0x2a   : > { %414 = vst [vmem:[#allocation2 + $0x80] sm:$0x1] %v413_v37  ;;  %411 = vst [vmem:[#allocation2 + $0x74] sm:$0x1] %v410_v45  ;;  %v362_v47 = vld [vmem:[#allocation2 + $0x90] sm:$0x1] }
  0x2b   : > { %v363_v48 = vsel %vm8855_vm2, 0, %v362_v47  ;;  %v359_v49 = vld [vmem:[#allocation2 + $0x84] sm:$0x1]  ;;  %v418_v51 = vld [vmem:[#allocation2 + $0x98] sm:$0x1]  ;;  %v8549_v1 = vld [vmem:[%s10754_s3 + $0xf0] sm:$0xff]  }
  0x2c   : > { %7701 = vmatpush3.bf16.msra.mxu0 %v8518_v11  ;;  %v406_v11 = vld [vmem:[#allocation2 + $0x68] sm:$0x1]  ;;  %364 = vst [vmem:[#allocation2 + $0x90] sm:$0x1] %v363_v48  ;;  %v419_v53 = vsel %vm8892_vm4, 0, %v418_v51 }
  0x2d   : > { %7734 = vmatprep.subr.bf16.mxu0 %v8535_v27  ;;  %v415_v54 = vld [vmem:[#allocation2 + $0x8c] sm:$0x1]  ;;  %420 = vst [vmem:[#allocation2 + $0x98] sm:$0x1] %v419_v53  ;;  %v368_v58 = vld [vmem:[#allocation2 + $0xa8] sm:$0x1] }
  0x2e   : > { %v1554_v5 = vld [vmem:[#allocation2] sm:$0xf]  ;;  %v416_v56 = vsel %vm8892_vm4, 0, %v415_v54  ;;  %v369_v59 = vsel %vm8855_vm2, 0, %v368_v58  ;;  %v365_v60 = vld [vmem:[#allocation2 + $0x9c] sm:$0x1] }
  0x2f   : > { %7703 = vmatmul.mubr.bf16.vlgmr.msra.gmra.mrb[0].mxu0 %v441_v12  ;;  %v1622_v9 = vshrl.u32 %v1554_v5, 16  ;;  %v8543_v12 = vld [vmem:[%s10754_s3 + $0xc8] sm:$0xff]   ;;  %417 = vst [vmem:[#allocation2 + $0x8c] sm:$0x1] %v416_v56  ;;  %370 = vst [vmem:[#allocation2 + $0xa8] sm:$0x1] %v369_v59 }
  0x30   : > { %7706 = vmatprep.mubr.bf16.mxu0 %v443_v13  ;;  %7735 = vmatpush3.bf16.msra.mxu0 %v8535_v27  ;;  %v1555_v13 = vld [vmem:[#allocation2 + $0x4] sm:$0xf]  ;;  %v424_v61 = vld [vmem:[#allocation2 + $0xb0] sm:$0x1]  ;;  %v374_v4 = vld [vmem:[#allocation2 + $0xc0] sm:$0x1] }
  0x31   : > { %7736 = vmatprep.subr.bf16.mxu0 %v8536_v34  ;;  %8215 = vmatprep.subr.bf16.mxu1 %v8543_v12  ;;  %v425_v63 = vsel %vm8892_vm4, 0, %v424_v61  ;;  %v421_v0 = vld [vmem:[#allocation2 + $0xa4] sm:$0x1]  ;;  %v371_v7 = vld [vmem:[#allocation2 + $0xb4] sm:$0x1] }
  0x32   : > { %8223 = vmatpush3.bf16.msra.mxu1 %v8543_v12  ;;  %426 = vst [vmem:[#allocation2 + $0xb0] sm:$0x1] %v425_v63  ;;  %v422_v2 = vsel %vm8892_vm4, 0, %v421_v0  ;;  %v372_v8 = vsel %vm8855_vm2, 0, %v371_v7  ;;  %vm910_vm10 = vsmask.f32 4368 }
  0x33   : > { %8216 = vmatprep.subr.bf16.mxu1 %v8545_v39  ;;  %423 = vst [vmem:[#allocation2 + $0xa4] sm:$0x1] %v422_v2  ;;  %373 = vst [vmem:[#allocation2 + $0xb4] sm:$0x1] %v372_v8  ;;  %v1235_v53 = vld [vmem:[#allocation2 + $0xc] sm:$0xf] }
  0x34   : > { %7737 = vmatpush3.bf16.msra.mxu0 %v8536_v34  ;;  %vm9048_vm11 = vmor %vm324_vm1, %vm910_vm10  ;;  %v1239_v2 = vld [vmem:[#allocation2 + $0x14] sm:$0x1] }
  0x35   : > { %7738 = vmatprep.subr.bf16.mxu0 %v8537_v42 }
  0x36   : > { %8224 = vmatpush3.bf16.msra.mxu1 %v8545_v39 }
  0x37   : > { %7707 = vmatmul.mubr.bf16.gmra.mrb[4].mxu0 %v445_v14  ;;  %v407_v14 = vsel %vm8892_vm4, 0, %v406_v11  ;;  %v427_v11 = vld [vmem:[#allocation2 + $0xbc] sm:$0x1] }
  0x38   : > { %7710 = vmatprep.mubr.bf16.mxu0 %v447_v15  ;;  %7739 = vmatpush3.bf16.msra.mxu0 %v8537_v42  ;;  %v403_v15 = vld [vmem:[#allocation2 + $0x5c] sm:$0x1]  ;;  %408 = vst [vmem:[#allocation2 + $0x68] sm:$0x1] %v407_v14  ;;  %v428_v12 = vsel %vm8892_vm4, 0, %v427_v11 }
  0x39   : > { %7740 = vmatprep.subr.bf16.mxu0 %v8538_v46  ;;  %429 = vst [vmem:[#allocation2 + $0xbc] sm:$0x1] %v428_v12  ;;  %v9032_v14 = vld [vmem:[%s10753_s2] ss:$0 sm:$0xff] }
  0x3c   : > { %7741 = vmatpush3.bf16.msra.mxu0 %v8538_v46  ;;  %v8546_v46 = vld [vmem:[%s10754_s3 + $0xd8] sm:$0xff]  }
  0x3d   : > { %7742 = vmatprep.subr.bf16.mxu0 %v8539_v52  ;;  %8217 = vmatprep.subr.bf16.mxu1 %v8546_v46 }
  0x3e   : > { %8225 = vmatpush3.bf16.msra.mxu1 %v8546_v46 }
  0x3f   : > { %7711 = vmatmul.mubr.bf16.gmra.mrb[8].mxu0 %v449_v16  ;;  %v8544_v16 = vld [vmem:[%s10754_s3 + $0x78] sm:$0xff]   ;;  %8218 = vmatprep.subr.bf16.mxu1 %v8547_v55 }
  0x40   : > { %7714 = vmatprep.mubr.bf16.mxu0 %v451_v17  ;;  %7743 = vmatpush3.bf16.msra.mxu0 %v8539_v52  ;;  %v404_v17 = vsel %vm8892_vm4, 0, %v403_v15  ;;  %v360_v52 = vsel %vm8855_vm2, 0, %v359_v49  ;;  %v9037_v15 = vld [vmem:[%s10754_s3] sm:$0xff]  }
  0x41   : > { %7744 = vmatprep.subr.bf16.mxu0 %v8540_v62  ;;  %405 = vst [vmem:[#allocation2 + $0x5c] sm:$0x1] %v404_v17  ;;  %361 = vst [vmem:[#allocation2 + $0x84] sm:$0x1] %v360_v52 }
  0x42   : > { %8226 = vmatpush3.bf16.msra.mxu1 %v8547_v55 }
  0x43   : > { %8219 = vmatprep.subr.bf16.mxu1 %v8548_v57 }
  0x44   : > { %7745 = vmatpush3.bf16.msra.mxu0 %v8540_v62  ;;  %v366_v62 = vsel %vm8855_vm2, 0, %v365_v60  ;;  %v1246_v60 = vld [vmem:[#allocation2 + $0x20] sm:$0x1] }
  0x45   : > { %7746 = vmatprep.subr.bf16.mxu0 %v8542_v3  ;;  %367 = vst [vmem:[#allocation2 + $0x9c] sm:$0x1] %v366_v62 }
  0x46   : > { %8227 = vmatpush3.bf16.msra.mxu1 %v8548_v57 }
  0x47   : > { %7715 = vmatmul.mubr.bf16.gmra.mrb[12].mxu0 %v453_v18  ;;  %v1624_v18 = vrot.slane %v1622_v9, 4  ;;  %8220 = vmatprep.subr.bf16.mxu1 %v8549_v1  ;;  %v430_v9 = vld [vmem:[#allocation2 + $0xc8] sm:$0x1] }
  0x48   : > { %7718 = vmatprep.mubr.bf16.mxu0 %v455_v19  ;;  %7747 = vmatpush3.bf16.msra.mxu0 %v8542_v3  ;;  %v1625_v19 = vshll.u32 %v1554_v5, 16  ;;  %v8550_v3 = vld [vmem:[%s10754_s3 + $0xf8] sm:$0xff]   ;;  %v375_v5 = vsel %vm8855_vm2, 0, %v374_v4  ;;  %v431_v10 = vsel %vm8892_vm4, 0, %v430_v9 }
  0x49   : > { %7748 = vmatprep.subr.bf16.mxu0 %v8544_v16  ;;  %376 = vst [vmem:[#allocation2 + $0xc0] sm:$0x1] %v375_v5  ;;  %432 = vst [vmem:[#allocation2 + $0xc8] sm:$0x1] %v431_v10 }
  0x4a   : > { %8228 = vmatpush3.bf16.msra.mxu1 %v8549_v1 }
  0x4b   : > { %8221 = vmatprep.subr.bf16.mxu1 %v8550_v3 }
  0x4c   : > { %7749 = vmatpush3.bf16.msra.mxu0 %v8544_v16 }
  0x4d   : > { %7782 = vmatprep.subr.bf16.mxu0 %v9037_v15 }
  0x4e   : > { %8229 = vmatpush3.bf16.msra.mxu1 %v8550_v3 }
  0x4f   : > { %7719 = vmatmul.mubr.bf16.gmra.mrb[16].mxu0 %v457_v20  ;;  %v1631_v20 = vshll.u32 %v1555_v13, 16 }
  0x50   : > { %7722 = vmatprep.mubr.bf16.mxu0 %v459_v21  ;;  %v1602_v21 = vld [vmem:[#allocation2 + $0x8] sm:$0x1] }
  0x57   : > { %7723 = vmatmul.mubr.bf16.gmra.mrb[20].mxu0 %v461_v22  ;;  %v1627_v22 = vrot.slane %v1625_v19, 5 }
  0x58   : > { %7726 = vmatprep.mubr.bf16.mxu0 %v463_v23  ;;  %v1633_v23 = vrot.slane %v1631_v20, 5 }
  0x59   : > { %v1628_v27 = vor.u32 %v1627_v22, %v1624_v18 }
  0x5b   : > { %v1629_v34 = vrot.slane %v1628_v27, 4 }
  0x5d   : > { %v1634_v40 = vsel %vm8971_vm9, %v1629_v34, %v1633_v23 }
  0x5f   : > { %7727 = vmatmul.mubr.bf16.gmra.mrb[24].mxu0 %v465_v24  ;;  %v1635_v24 = vshrl.u32 %v1555_v13, 16  ;;  %v9026_v13 = vld [vmem:[%s10754_s3 + $0x100] sm:$0xff]  }
  0x60   : > { %7730 = vmatprep.mubr.bf16.mxu0 %v467_v25  ;;  %v1641_v25 = vshll.u32 %v1602_v21, 16  ;;  %7926 = vmatprep.subr.bf16.mxu1 %v9026_v13 }
  0x61   : > { %v1637_v28 = vrot.slane %v1635_v24, 4 }
  0x62   : > { %v1643_v36 = vrot.slane %v1641_v25, 5 }
  0x63   : > { %v1638_v35 = vor.u32 %v1637_v28, %v1633_v23 }
  0x65   : > { %v1639_v41 = vrot.slane %v1638_v35, 4 }
  0x67   : > { %7731 = vmatmul.mubr.bf16.gmra.mrb[28].mxu0 %v469_v26  ;;  %v356_v26 = vld [vmem:[#allocation2 + $0x78] sm:$0x1]  ;;  %v1644_v42 = vsel %vm8971_vm9, %v1639_v41, %v1643_v36 }
  0x68   : > { %v357_v29 = vsel %vm8855_vm2, 0, %v356_v26  ;;  %v6996_v44 = vcombine.low %v1634_v40, %v1644_v42 }
  0x69   : > { %358 = vst [vmem:[#allocation2 + $0x78] sm:$0x1] %v357_v29 }
  0x6a   : > { %7750 = vmatprep.mubr.bf16.mxu0 %v6996_v44  ;;  %v1242_v44 = vld [vmem:[#allocation2 + $0x18] sm:$0xf] }
 0x102   : > { %v7704_v16 = vpop.f32.mrb[0].mxu0 }
 0x103   : > { %v664_v17 = vadd.f32 %v7704_v16, %v9032_v14  ;;  %v655_v18 = vpop.f32.mrb[1].mxu0 }
 0x104   : > { %v656_v19 = vadd.f32 %v9032_v14, %v655_v18  ;;  %v7705_v20 = vpop.f32.mrb[2].mxu0 }
 0x105   : > { %v784_v21 = vmax.f32 %v664_v17, 0.0  ;;  %v667_v22 = vadd.f32 %v7705_v20, %v9032_v14  ;;  %v658_v23 = vpop.f32.mrb[3].mxu0 }
 0x106   : > { %v782_v24 = vmax.f32 %v656_v19, 0.0  ;;  %v659_v25 = vadd.f32 %v9032_v14, %v658_v23 }
 0x107   : > { %v7388_v26 = vpack.c.bf16 %v784_v21, %v784_v21  ;;  %v785_v27 = vmax.f32 %v667_v22, 0.0 }
 0x108   : > { %v7386_v28 = vpack.c.bf16 %v782_v24, %v782_v24  ;;  %v783_v29 = vmax.f32 %v659_v25, 0.0  ;;  %v1256_v25 = vld [vmem:[#allocation2 + $0x30] sm:$0xf] }
 0x109   : > { %v930_v31 = vshrl.u32 %v7388_v26, 16  ;;  %v7389_v32 = vpack.c.bf16 %v785_v27, %v785_v27  ;;  %v933_v33 = vshll.u32 %v7388_v26, 16 }
 0x10a   : > { %v913_v34 = vshrl.u32 %v7386_v28, 16  ;;  %v916_v35 = vshll.u32 %v7386_v28, 16  ;;  %v7387_v36 = vpack.c.bf16 %v783_v29, %v783_v29  ;;  %v7708_v37 = vpop.f32.mrb[4].mxu0 }
 0x10b   : > { %v932_v39 = vrot.slane %v930_v31, 7  ;;  %v938_v40 = vshrl.u32 %v7389_v32, 16  ;;  %v941_v41 = vshll.u32 %v7389_v32, 16  ;;  %v680_v42 = vadd.f32 %v7708_v37, %v9032_v14  ;;  %v671_v43 = vpop.f32.mrb[5].mxu0 }
 0x10c   : > { %v915_v45 = vrot.slane %v913_v34, 7  ;;  %v921_v46 = vshrl.u32 %v7387_v36, 16  ;;  %v924_v47 = vshll.u32 %v7387_v36, 16  ;;  %v672_v48 = vadd.f32 %v9032_v14, %v671_v43  ;;  %v7709_v49 = vpop.f32.mrb[6].mxu0 }
 0x10d   : > { %v935_v51 = vor.u32 %v933_v33, %v932_v39  ;;  %v936_v52 = vrot.slane %v932_v39, 4  ;;  %v940_v54 = vrot.slane %v938_v40, 7  ;;  %v788_v55 = vmax.f32 %v680_v42, 0.0  ;;  %v674_v56 = vpop.f32.mrb[7].mxu0  ;;  %v1249_v33 = vld [vmem:[#allocation2 + $0x24] sm:$0xf] }
 0x10e   : > { %v918_v57 = vor.u32 %v916_v35, %v915_v45  ;;  %v919_v58 = vrot.slane %v915_v45, 4  ;;  %v923_v61 = vrot.slane %v921_v46, 7  ;;  %v786_v62 = vmax.f32 %v672_v48, 0.0 }
 0x10f   : > { %v1243_v63 = vsel %vm8922_vm6, %v935_v51, %v1242_v44  ;;  %v943_v0 = vor.u32 %v941_v41, %v940_v54  ;;  %v945_v1 = vrot.slane %v940_v54, 4  ;;  %v7392_v3 = vpack.c.bf16 %v788_v55, %v788_v55  ;;  %v1260_v55 = vld [vmem:[#allocation2 + $0x38] sm:$0x1] }
 0x110   : > { %1244 = vst [vmem:[#allocation2 + $0x18] sm:$0xf] %v1243_v63  ;;  %v1236_v4 = vsel %vm8922_vm6, %v918_v57, %v1235_v53  ;;  %v926_v5 = vor.u32 %v924_v47, %v923_v61  ;;  %v928_v7 = vrot.slane %v923_v61, 4  ;;  %v7390_v8 = vpack.c.bf16 %v786_v62, %v786_v62 }
 0x111   : > { %1237 = vst [vmem:[#allocation2 + $0xc] sm:$0xf] %v1236_v4  ;;  %v944_v9 = vsel %vm9048_vm11, %v936_v52, %v943_v0  ;;  %v1247_v10 = vsel %vm8855_vm2, %v945_v1, %v1246_v60  ;;  %v964_v11 = vshrl.u32 %v7392_v3, 16  ;;  %v967_v17 = vshll.u32 %v7392_v3, 16 }
 0x112   : > { %1245 = vst [vmem:[#allocation2 + $0x1c] sm:$0xf] %v944_v9  ;;  %1248 = vst [vmem:[#allocation2 + $0x20] sm:$0x1] %v1247_v10  ;;  %v927_v12 = vsel %vm9048_vm11, %v919_v58, %v926_v5  ;;  %v1240_v16 = vsel %vm8855_vm2, %v928_v7, %v1239_v2  ;;  %v947_v18 = vshrl.u32 %v7390_v8, 16  ;;  %v7712_v19 = vpop.f32.mrb[8].mxu0  ;;  %v683_v21 = vadd.f32 %v7709_v49, %v9032_v14 }
 0x113   : > { %1238 = vst [vmem:[#allocation2 + $0x10] sm:$0xf] %v927_v12  ;;  %1241 = vst [vmem:[#allocation2 + $0x14] sm:$0x1] %v1240_v16  ;;  %v9064_v20 = vrot.slane %v964_v11, 7  ;;  %v675_v22 = vadd.f32 %v9032_v14, %v674_v56  ;;  %v696_v23 = vadd.f32 %v7712_v19, %v9032_v14  ;;  %v687_v24 = vpop.f32.mrb[9].mxu0 }
 0x114   : > { %v949_v26 = vrot.slane %v947_v18, 7  ;;  %v950_v27 = vshll.u32 %v7390_v8, 16  ;;  %v688_v28 = vadd.f32 %v9032_v14, %v687_v24  ;;  %v7713_v29 = vpop.f32.mrb[10].mxu0  ;;  %v789_v34 = vmax.f32 %v683_v21, 0.0  ;;  %v1253_v56 = vld [vmem:[#allocation2 + $0x2c] sm:$0x1] }
 0x115   : > { %v969_v31 = vor.u32 %v967_v17, %v9064_v20  ;;  %v970_v32 = vrot.slane %v9064_v20, 4  ;;  %v787_v35 = vmax.f32 %v675_v22, 0.0  ;;  %v690_v36 = vpop.f32.mrb[11].mxu0  ;;  %v792_v40 = vmax.f32 %v696_v23, 0.0  ;;  %v1270_v5 = vld [vmem:[#allocation2 + $0x48] sm:$0xf] }
 0x116   : > { %v952_v37 = vor.u32 %v950_v27, %v949_v26  ;;  %v953_v39 = vrot.slane %v949_v26, 4  ;;  %v790_v41 = vmax.f32 %v688_v28, 0.0  ;;  %v7393_v43 = vpack.c.bf16 %v789_v34, %v789_v34  ;;  %v1263_v18 = vld [vmem:[#allocation2 + $0x3c] sm:$0xf] }
 0x117   : > { %v1257_v42 = vsel %vm8922_vm6, %v969_v31, %v1256_v25  ;;  %v7391_v44 = vpack.c.bf16 %v787_v35, %v787_v35  ;;  %v699_v45 = vadd.f32 %v7713_v29, %v9032_v14  ;;  %v7396_v47 = vpack.c.bf16 %v792_v40, %v792_v40 }
 0x118   : > { %1258 = vst [vmem:[#allocation2 + $0x30] sm:$0xf] %v1257_v42  ;;  %v1250_v46 = vsel %vm8922_vm6, %v952_v37, %v1249_v33  ;;  %v7394_v48 = vpack.c.bf16 %v790_v41, %v790_v41  ;;  %v691_v49 = vadd.f32 %v9032_v14, %v690_v36  ;;  %v972_v51 = vshrl.u32 %v7393_v43, 16 }
 0x119   : > { %1251 = vst [vmem:[#allocation2 + $0x24] sm:$0xf] %v1250_v46  ;;  %v975_v52 = vshll.u32 %v7393_v43, 16  ;;  %v955_v53 = vshrl.u32 %v7391_v44, 16  ;;  %v958_v54 = vshll.u32 %v7391_v44, 16  ;;  %v998_v57 = vshrl.u32 %v7396_v47, 16 }
 0x11a   : > { %v1001_v58 = vshll.u32 %v7396_v47, 16  ;;  %v981_v60 = vshrl.u32 %v7394_v48, 16  ;;  %v984_v61 = vshll.u32 %v7394_v48, 16  ;;  %v7716_v62 = vpop.f32.mrb[12].mxu0  ;;  %v974_v63 = vrot.slane %v972_v51, 7 }
 0x11b   : > { %v957_v0 = vrot.slane %v955_v53, 7  ;;  %v793_v1 = vmax.f32 %v699_v45, 0.0  ;;  %v791_v2 = vmax.f32 %v691_v49, 0.0  ;;  %v703_v3 = vpop.f32.mrb[13].mxu0  ;;  %v9078_v4 = vrot.slane %v998_v57, 7 }
 0x11c   : > { %v9080_v7 = vrot.slane %v981_v60, 7  ;;  %v712_v8 = vadd.f32 %v7716_v62, %v9032_v14  ;;  %v704_v9 = vadd.f32 %v9032_v14, %v703_v3  ;;  %v7717_v10 = vpop.f32.mrb[14].mxu0  ;;  %v977_v11 = vor.u32 %v975_v52, %v974_v63  ;;  %v1274_v43 = vld [vmem:[#allocation2 + $0x50] sm:$0x1]  ;;  %v1267_v44 = vld [vmem:[#allocation2 + $0x44] sm:$0x1] }
 0x11d   : > { %v979_v12 = vrot.slane %v974_v63, 4  ;;  %v960_v16 = vor.u32 %v958_v54, %v957_v0  ;;  %v962_v17 = vrot.slane %v957_v0, 4  ;;  %v706_v19 = vpop.f32.mrb[15].mxu0  ;;  %v1003_v20 = vor.u32 %v1001_v58, %v9078_v4 }
 0x11e   : > { %v1004_v21 = vrot.slane %v9078_v4, 4  ;;  %v986_v22 = vor.u32 %v984_v61, %v9080_v7  ;;  %v987_v23 = vrot.slane %v9080_v7, 4  ;;  %v978_v24 = vsel %vm9048_vm11, %v970_v32, %v977_v11  ;;  %v1284_v11 = vld [vmem:[#allocation2 + $0x60] sm:$0xf] }
 0x11f   : > { %v1261_v25 = vsel %vm8855_vm2, %v979_v12, %v1260_v55  ;;  %v961_v26 = vsel %vm9048_vm11, %v953_v39, %v960_v16  ;;  %v1254_v27 = vsel %vm8855_vm2, %v962_v17, %v1253_v56  ;;  %1259 = vst [vmem:[#allocation2 + $0x34] sm:$0xf] %v978_v24  ;;  %v1271_v28 = vsel %vm8922_vm6, %v1003_v20, %v1270_v5  ;;  %v1277_v12 = vld [vmem:[#allocation2 + $0x54] sm:$0xf]  ;;  %v1556_v20 = vld [vmem:[#allocation2 + $0xc] sm:$0xf] }
 0x120   : > { %1262 = vst [vmem:[#allocation2 + $0x38] sm:$0x1] %v1261_v25  ;;  %1252 = vst [vmem:[#allocation2 + $0x28] sm:$0xf] %v961_v26  ;;  %v1264_v29 = vsel %vm8922_vm6, %v986_v22, %v1263_v18  ;;  %v7397_v31 = vpack.c.bf16 %v793_v1, %v793_v1  ;;  %v7395_v32 = vpack.c.bf16 %v791_v2, %v791_v2  ;;  %v796_v33 = vmax.f32 %v712_v8, 0.0 }
 0x121   : > { %1255 = vst [vmem:[#allocation2 + $0x2c] sm:$0x1] %v1254_v27  ;;  %1272 = vst [vmem:[#allocation2 + $0x48] sm:$0xf] %v1271_v28  ;;  %v794_v34 = vmax.f32 %v704_v9, 0.0  ;;  %v715_v35 = vadd.f32 %v7717_v10, %v9032_v14  ;;  %v707_v36 = vadd.f32 %v9032_v14, %v706_v19 }
 0x122   : > { %1265 = vst [vmem:[#allocation2 + $0x3c] sm:$0xf] %v1264_v29  ;;  %v1006_v37 = vshrl.u32 %v7397_v31, 16  ;;  %v1009_v39 = vshll.u32 %v7397_v31, 16  ;;  %v989_v40 = vshrl.u32 %v7395_v32, 16  ;;  %v992_v41 = vshll.u32 %v7395_v32, 16 }
 0x123   : > { %v7720_v42 = vpop.f32.mrb[16].mxu0  ;;  %v7400_v45 = vpack.c.bf16 %v796_v33, %v796_v33  ;;  %v7398_v46 = vpack.c.bf16 %v794_v34, %v794_v34  ;;  %v797_v47 = vmax.f32 %v715_v35, 0.0  ;;  %v795_v48 = vmax.f32 %v707_v36, 0.0  ;;  %v1288_v33 = vld [vmem:[#allocation2 + $0x68] sm:$0x1] }
 0x124   : > { %v719_v49 = vpop.f32.mrb[17].mxu0  ;;  %v1008_v51 = vrot.slane %v1006_v37, 7  ;;  %v991_v52 = vrot.slane %v989_v40, 7  ;;  %v728_v53 = vadd.f32 %v7720_v42, %v9032_v14  ;;  %v1646_v42 = vshrl.u32 %v1556_v20, 16 }
 0x125   : > { %v720_v54 = vadd.f32 %v9032_v14, %v719_v49  ;;  %v7721_v55 = vpop.f32.mrb[18].mxu0  ;;  %v1032_v56 = vshrl.u32 %v7400_v45, 16  ;;  %v1035_v57 = vshll.u32 %v7400_v45, 16  ;;  %v1015_v58 = vshrl.u32 %v7398_v46, 16 }
 0x126   : > { %v1018_v60 = vshll.u32 %v7398_v46, 16  ;;  %v722_v61 = vpop.f32.mrb[19].mxu0  ;;  %v1011_v62 = vor.u32 %v1009_v39, %v1008_v51  ;;  %v1013_v63 = vrot.slane %v1008_v51, 4  ;;  %v994_v0 = vor.u32 %v992_v41, %v991_v52  ;;  %v1281_v39 = vld [vmem:[#allocation2 + $0x5c] sm:$0x1] }
 0x127   : > { %v996_v1 = vrot.slane %v991_v52, 4  ;;  %v1034_v2 = vrot.slane %v1032_v56, 7  ;;  %v1017_v3 = vrot.slane %v1015_v58, 7  ;;  %v7401_v4 = vpack.c.bf16 %v797_v47, %v797_v47 }
 0x128   : > { %v7399_v5 = vpack.c.bf16 %v795_v48, %v795_v48  ;;  %v1012_v7 = vsel %vm9048_vm11, %v1004_v21, %v1011_v62  ;;  %v1275_v8 = vsel %vm8855_vm2, %v1013_v63, %v1274_v43  ;;  %v995_v9 = vsel %vm9048_vm11, %v987_v23, %v994_v0 }
 0x129   : > { %v1268_v10 = vsel %vm8855_vm2, %v996_v1, %v1267_v44  ;;  %1273 = vst [vmem:[#allocation2 + $0x4c] sm:$0xf] %v1012_v7  ;;  %1276 = vst [vmem:[#allocation2 + $0x50] sm:$0x1] %v1275_v8  ;;  %v1037_v16 = vor.u32 %v1035_v57, %v1034_v2  ;;  %v1038_v17 = vrot.slane %v1034_v2, 4  ;;  %v1020_v18 = vor.u32 %v1018_v60, %v1017_v3 }
 0x12a   : > { %1266 = vst [vmem:[#allocation2 + $0x40] sm:$0xf] %v995_v9  ;;  %1269 = vst [vmem:[#allocation2 + $0x44] sm:$0x1] %v1268_v10  ;;  %v1021_v19 = vrot.slane %v1017_v3, 4  ;;  %v1040_v21 = vshrl.u32 %v7401_v4, 16  ;;  %v731_v35 = vadd.f32 %v7721_v55, %v9032_v14  ;;  %v723_v36 = vadd.f32 %v9032_v14, %v722_v61 }
 0x12b   : > { %v1043_v22 = vshll.u32 %v7401_v4, 16  ;;  %v1023_v24 = vshrl.u32 %v7399_v5, 16  ;;  %v1026_v25 = vshll.u32 %v7399_v5, 16  ;;  %v9112_v26 = vpop.f32.mrb[20].mxu0  ;;  %v1285_v23 = vsel %vm8922_vm6, %v1037_v16, %v1284_v11  ;;  %v1298_v60 = vld [vmem:[#allocation2 + $0x78] sm:$0xf] }
 0x12c   : > { %v1278_v27 = vsel %vm8922_vm6, %v1020_v18, %v1277_v12  ;;  %v800_v28 = vmax.f32 %v728_v53, 0.0  ;;  %v798_v29 = vmax.f32 %v720_v54, 0.0  ;;  %v9118_v31 = vpop.f32.mrb[21].mxu0  ;;  %1286 = vst [vmem:[#allocation2 + $0x60] sm:$0xf] %v1285_v23  ;;  %v1042_v32 = vrot.slane %v1040_v21, 7 }
 0x12d   : > { %1279 = vst [vmem:[#allocation2 + $0x54] sm:$0xf] %v1278_v27  ;;  %v1025_v34 = vrot.slane %v1023_v24, 7  ;;  %v9122_v37 = vpop.f32.mrb[22].mxu0  ;;  %v1649_v43 = vshll.u32 %v1556_v20, 16  ;;  %v801_v0 = vmax.f32 %v731_v35, 0.0 }
 0x12e   : > { %v7404_v40 = vpack.c.bf16 %v800_v28, %v800_v28  ;;  %v7402_v41 = vpack.c.bf16 %v798_v29, %v798_v29  ;;  %v9124_v44 = vpop.f32.mrb[23].mxu0  ;;  %v1045_v45 = vor.u32 %v1043_v22, %v1042_v32  ;;  %v1047_v46 = vrot.slane %v1042_v32, 4  ;;  %v1557_v54 = vld [vmem:[#allocation2 + $0x10] sm:$0xf]  ;;  %v1291_v61 = vld [vmem:[#allocation2 + $0x6c] sm:$0xf] }
 0x12f   : > { %v1028_v47 = vor.u32 %v1026_v25, %v1025_v34  ;;  %v1030_v48 = vrot.slane %v1025_v34, 4  ;;  %v799_v1 = vmax.f32 %v723_v36, 0.0  ;;  %v1603_v2 = vld [vmem:[#allocation2 + $0x14] sm:$0x1]  ;;  %v1648_v3 = vrot.slane %v1646_v42, 4 }
 0x130   : > { %v1066_v49 = vshrl.u32 %v7404_v40, 16  ;;  %v1069_v51 = vshll.u32 %v7404_v40, 16  ;;  %v1049_v52 = vshrl.u32 %v7402_v41, 16  ;;  %v1052_v53 = vshll.u32 %v7402_v41, 16  ;;  %v1558_v21 = vld [vmem:[#allocation2 + $0x18] sm:$0xf] }
 0x131   : > { %v1046_v55 = vsel %vm9048_vm11, %v1038_v17, %v1045_v45  ;;  %v1289_v56 = vsel %vm8855_vm2, %v1047_v46, %v1288_v33  ;;  %v1029_v57 = vsel %vm9048_vm11, %v1021_v19, %v1028_v47  ;;  %v1282_v58 = vsel %vm8855_vm2, %v1030_v48, %v1281_v39  ;;  %v1559_v28 = vld [vmem:[#allocation2 + $0x1c] sm:$0xf]  ;;  %v1295_v48 = vld [vmem:[#allocation2 + $0x74] sm:$0x1] }
 0x132   : > { %1287 = vst [vmem:[#allocation2 + $0x64] sm:$0xf] %v1046_v55  ;;  %1290 = vst [vmem:[#allocation2 + $0x68] sm:$0x1] %v1289_v56  ;;  %v1068_v62 = vrot.slane %v1066_v49, 7  ;;  %v1051_v63 = vrot.slane %v1049_v52, 7  ;;  %v7405_v17 = vpack.c.bf16 %v801_v0, %v801_v0  ;;  %v7403_v18 = vpack.c.bf16 %v799_v1, %v799_v1 }
 0x133   : > { %1280 = vst [vmem:[#allocation2 + $0x58] sm:$0xf] %v1029_v57  ;;  %1283 = vst [vmem:[#allocation2 + $0x5c] sm:$0x1] %v1282_v58  ;;  %v1651_v4 = vrot.slane %v1649_v43, 5  ;;  %v1655_v5 = vshll.u32 %v1557_v54, 16 }
 0x134   : > { %v1659_v7 = vshrl.u32 %v1557_v54, 16  ;;  %v9134_v8 = vpop.f32.mrb[24].mxu0  ;;  %v1071_v9 = vor.u32 %v1069_v51, %v1068_v62  ;;  %v1072_v10 = vrot.slane %v1068_v62, 4  ;;  %v1054_v11 = vor.u32 %v1052_v53, %v1051_v63  ;;  %v1302_v43 = vld [vmem:[#allocation2 + $0x80] sm:$0x1] }
 0x135   : > { %v1055_v12 = vrot.slane %v1051_v63, 4  ;;  %v9136_v16 = vpop.f32.mrb[25].mxu0  ;;  %v1652_v19 = vor.u32 %v1651_v4, %v1648_v3  ;;  %v1657_v20 = vrot.slane %v1655_v5, 5  ;;  %v1665_v27 = vshll.u32 %v1603_v2, 16  ;;  %v1604_v58 = vld [vmem:[#allocation2 + $0x20] sm:$0x1] }
 0x136   : > { %v9138_v22 = vpop.f32.mrb[26].mxu0  ;;  %v1299_v24 = vsel %vm8922_vm6, %v1071_v9, %v1298_v60  ;;  %v1292_v25 = vsel %vm8922_vm6, %v1054_v11, %v1291_v61  ;;  %v1661_v23 = vrot.slane %v1659_v7, 4  ;;  %v1074_v32 = vshrl.u32 %v7405_v17, 16  ;;  %v1560_v7 = vld [vmem:[#allocation2 + $0x24] sm:$0xf]  ;;  %v8560_v11 = vld [vmem:[%s10754_s3 + $0x8] sm:$0xff]  }
 0x137   : > { %v9144_v29 = vpop.f32.mrb[27].mxu0  ;;  %1300 = vst [vmem:[#allocation2 + $0x78] sm:$0xf] %v1299_v24  ;;  %1293 = vst [vmem:[#allocation2 + $0x6c] sm:$0xf] %v1292_v25  ;;  %v1077_v33 = vshll.u32 %v7405_v17, 16  ;;  %v747_v24 = vadd.f32 %v9122_v37, %v9032_v14  ;;  %v739_v25 = vadd.f32 %v9032_v14, %v9124_v44 }
 0x138   : > { %v1057_v34 = vshrl.u32 %v7403_v18, 16  ;;  %v1060_v35 = vshll.u32 %v7403_v18, 16  ;;  %v1653_v36 = vrot.slane %v1652_v19, 4  ;;  %v1662_v39 = vor.u32 %v1661_v23, %v1657_v20  ;;  %v3492_v6 = vld [vmem:[#allocation2 + $0x60] sm:$0xf] }
 0x139   : > { %v1667_v40 = vrot.slane %v1665_v27, 5  ;;  %v1670_v41 = vshrl.u32 %v1558_v21, 16  ;;  %v1076_v42 = vrot.slane %v1074_v32, 7  ;;  %v1673_v46 = vshll.u32 %v1558_v21, 16 }
 0x13a   : > { %v1059_v45 = vrot.slane %v1057_v34, 7  ;;  %v1679_v47 = vshll.u32 %v1559_v28, 16  ;;  %v1658_v49 = vsel %vm8971_vm9, %v1653_v36, %v1657_v20  ;;  %v1663_v51 = vrot.slane %v1662_v39, 4  ;;  %v9148_v60 = vpop.f32.mrb[28].mxu0  ;;  %v1561_v39 = vld [vmem:[#allocation2 + $0x28] sm:$0xf] }
 0x13b   : > { %v1672_v52 = vrot.slane %v1670_v41, 4  ;;  %v1683_v53 = vshrl.u32 %v1559_v28, 16  ;;  %v1079_v54 = vor.u32 %v1077_v33, %v1076_v42  ;;  %v1081_v55 = vrot.slane %v1076_v42, 4  ;;  %v9152_v1 = vpop.f32.mrb[29].mxu0 }
 0x13c   : > { %v1062_v56 = vor.u32 %v1060_v35, %v1059_v45  ;;  %v1064_v57 = vrot.slane %v1059_v45, 4  ;;  %v1668_v61 = vsel %vm8971_vm9, %v1663_v51, %v1667_v40  ;;  %v1675_v62 = vrot.slane %v1673_v46, 5  ;;  %v9162_v9 = vpop.f32.mrb[30].mxu0  ;;  %v8563_v40 = vld [vmem:[%s10754_s3 + $0x10] sm:$0xff]   ;;  %v9185_v46 = vld [vmem:[#allocation2 + $0x2c] sm:$0x1] }
 0x13d   : > { %v1681_v63 = vrot.slane %v1679_v47, 5  ;;  %v1685_v0 = vrot.slane %v1683_v53, 4  ;;  %v1080_v2 = vsel %vm9048_vm11, %v1072_v10, %v1079_v54  ;;  %v1303_v3 = vsel %vm8855_vm2, %v1081_v55, %v1302_v43  ;;  %v9167_v20 = vpop.f32.mrb[31].mxu0  ;;  %v9190_v55 = vld [vmem:[%s10754_s3 + $0x108] sm:$0xff]  }
 0x13e   : > { %v1063_v4 = vsel %vm9048_vm11, %v1055_v12, %v1062_v56  ;;  %v1296_v5 = vsel %vm8855_vm2, %v1064_v57, %v1295_v48  ;;  %1301 = vst [vmem:[#allocation2 + $0x7c] sm:$0xf] %v1080_v2  ;;  %1304 = vst [vmem:[#allocation2 + $0x80] sm:$0x1] %v1303_v3  ;;  %v6997_v10 = vcombine.low %v1658_v49, %v1668_v61  ;;  %v1689_v19 = vshll.u32 %v1604_v58, 16 }
 0x13f   : > { %1294 = vst [vmem:[#allocation2 + $0x70] sm:$0xf] %v1063_v4  ;;  %1297 = vst [vmem:[#allocation2 + $0x74] sm:$0x1] %v1296_v5  ;;  %v1676_v17 = vor.u32 %v1675_v62, %v1672_v52  ;;  %v1686_v18 = vor.u32 %v1685_v0, %v1681_v63  ;;  %v744_v12 = vadd.f32 %v9112_v26, %v9032_v14  ;;  %v1694_v32 = vshrl.u32 %v1560_v7, 16  ;;  %v8566_v0 = vld [vmem:[%s10754_s3 + $0x18] sm:$0xff]  }
 0x140   : > { %v736_v21 = vadd.f32 %v9032_v14, %v9118_v31  ;;  %7751 = vmatmul.mubr.bf16.vlgmr.msra.gmra.mrb[32].mxu0 %v6997_v10  ;;  %v1691_v28 = vrot.slane %v1689_v19, 5  ;;  %v805_v35 = vmax.f32 %v747_v24, 0.0  ;;  %v803_v36 = vmax.f32 %v739_v25, 0.0  ;;  %v1312_v56 = vld [vmem:[#allocation2 + $0x90] sm:$0xf] }
 0x141   : > { %v1677_v23 = vrot.slane %v1676_v17, 4  ;;  %v1687_v27 = vrot.slane %v1686_v18, 4  ;;  %v804_v33 = vmax.f32 %v744_v12, 0.0  ;;  %7783 = vmatpush3.bf16.msra.mxu0 %v9037_v15  ;;  %v1696_v37 = vrot.slane %v1694_v32, 4  ;;  %v1305_v10 = vld [vmem:[#allocation2 + $0x84] sm:$0xf] }
 0x142   : > { %v802_v34 = vmax.f32 %v736_v21, 0.0  ;;  %v1697_v44 = vshll.u32 %v1560_v7, 16  ;;  %7784 = vmatprep.subr.bf16.mxu0 %v8560_v11  ;;  %v7409_v45 = vpack.c.bf16 %v805_v35, %v805_v35  ;;  %v7407_v15 = vpack.c.bf16 %v803_v36, %v803_v36  ;;  %v1562_v35 = vld [vmem:[#allocation2 + $0x30] sm:$0xf]  ;;  %v8569_v36 = vld [vmem:[%s10754_s3 + $0x20] sm:$0xff]  }
 0x143   : > { %v1682_v26 = vsel %vm8971_vm9, %v1677_v23, %v1681_v63  ;;  %v1692_v31 = vsel %vm8971_vm9, %v1687_v27, %v1691_v28  ;;  %v7408_v42 = vpack.c.bf16 %v804_v33, %v804_v33  ;;  %v1703_v48 = vshll.u32 %v1561_v39, 16  ;;  %v1316_v23 = vld [vmem:[#allocation2 + $0x98] sm:$0x1]  ;;  %v1309_v27 = vld [vmem:[#allocation2 + $0x8c] sm:$0x1] }
 0x144   : > { %v6998_v41 = vcombine.low %v1682_v26, %v1692_v31  ;;  %v7406_v43 = vpack.c.bf16 %v802_v34, %v802_v34  ;;  %v1699_v47 = vrot.slane %v1697_v44, 5  ;;  %v1707_v49 = vshrl.u32 %v1561_v39, 16  ;;  %v1563_v44 = vld [vmem:[#allocation2 + $0x34] sm:$0xf] }
 0x145   : > { %v1100_v51 = vshrl.u32 %v7408_v42, 16  ;;  %v1103_v52 = vshll.u32 %v7408_v42, 16  ;;  %7785 = vmatpush3.bf16.msra.mxu0 %v8560_v11  ;;  %v1108_v57 = vshrl.u32 %v7409_v45, 16  ;;  %v1111_v58 = vshll.u32 %v7409_v45, 16  ;;  %v8553_v7 = vld [vmem:[#allocation2 + $0x78] sm:$0xff]  }
 0x146   : > { %7754 = vmatprep.mubr.bf16.mxu0 %v6998_v41  ;;  %v1083_v53 = vshrl.u32 %v7406_v43, 16  ;;  %v1086_v54 = vshll.u32 %v7406_v43, 16  ;;  %v1091_v61 = vshrl.u32 %v7407_v15, 16  ;;  %v1094_v62 = vshll.u32 %v7407_v15, 16  ;;  %v8551_v63 = vld [vmem:[#allocation2 + $0x6c] sm:$0xff]   ;;  %7786 = vmatprep.subr.bf16.mxu0 %v8563_v40 }
 0x147   : > { %v1102_v2 = vrot.slane %v1100_v51, 7  ;;  %v1700_v4 = vor.u32 %v1699_v47, %v1696_v37  ;;  %v1705_v5 = vrot.slane %v1703_v48, 5  ;;  %v1110_v17 = vrot.slane %v1108_v57, 7  ;;  %7910 = vmatprep.mubr.bf16.mxu1 %v8551_v63  ;;  %v8559_v51 = vld [vmem:[%s10754_s3 + $0x118] sm:$0xff]   ;;  %v8572_v63 = vld [vmem:[%s10754_s3 + $0x28] sm:$0xff]  }
 0x148   : > { %v1085_v3 = vrot.slane %v1083_v53, 7  ;;  %v1093_v18 = vrot.slane %v1091_v61, 7  ;;  %v1709_v11 = vrot.slane %v1707_v49, 4  ;;  %v1713_v19 = vshll.u32 %v9185_v46, 16  ;;  %7911 = vmatmul.mubr.bf16.vlgmr.msra.gmra.mrb[0].mxu1 %v8553_v7  ;;  %v1564_v49 = vld [vmem:[#allocation2 + $0x3c] sm:$0xf] }
 0x149   : > { %v1105_v12 = vor.u32 %v1103_v52, %v1102_v2  ;;  %v1106_v21 = vrot.slane %v1102_v2, 4  ;;  %7787 = vmatpush3.bf16.msra.mxu0 %v8563_v40  ;;  %v1113_v28 = vor.u32 %v1111_v58, %v1110_v17  ;;  %v1115_v32 = vrot.slane %v1110_v17, 4  ;;  %7927 = vmatpush3.bf16.msra.mxu1 %v9026_v13  ;;  %v1606_v40 = vld [vmem:[#allocation2 + $0x38] sm:$0x1]  ;;  %v8556_v13 = vld [vmem:[%s10754_s3 + $0x110] sm:$0xff]  }
 0x14a   : > { %v1088_v24 = vor.u32 %v1086_v54, %v1085_v3  ;;  %v1089_v25 = vrot.slane %v1085_v3, 4  ;;  %v1096_v33 = vor.u32 %v1094_v62, %v1093_v18  ;;  %v1098_v34 = vrot.slane %v1093_v18, 4  ;;  %7788 = vmatprep.subr.bf16.mxu0 %v8566_v0  ;;  %7928 = vmatprep.subr.bf16.mxu1 %v9190_v55 }
 0x14b   : > { %v1313_v39 = vsel %vm8922_vm6, %v1105_v12, %v1312_v56  ;;  %v1701_v31 = vrot.slane %v1700_v4, 4  ;;  %v1710_v37 = vor.u32 %v1709_v11, %v1705_v5  ;;  %v1114_v41 = vsel %vm9048_vm11, %v1106_v21, %v1113_v28 }
 0x14c   : > { %v1306_v26 = vsel %vm8922_vm6, %v1088_v24, %v1305_v10  ;;  %1314 = vst [vmem:[#allocation2 + $0x90] sm:$0xf] %v1313_v39  ;;  %v1317_v42 = vsel %vm8855_vm2, %v1115_v32, %v1316_v23  ;;  %v1097_v43 = vsel %vm9048_vm11, %v1089_v25, %v1096_v33  ;;  %v1310_v45 = vsel %vm8855_vm2, %v1098_v34, %v1309_v27  ;;  %v1326_v39 = vld [vmem:[#allocation2 + $0xa8] sm:$0xf] }
 0x14d   : > { %1307 = vst [vmem:[#allocation2 + $0x84] sm:$0xf] %v1306_v26  ;;  %1315 = vst [vmem:[#allocation2 + $0x94] sm:$0xf] %v1114_v41  ;;  %v1706_v46 = vsel %vm8971_vm9, %v1701_v31, %v1705_v5  ;;  %v1711_v15 = vrot.slane %v1710_v37, 4  ;;  %v1715_v47 = vrot.slane %v1713_v19, 5  ;;  %7789 = vmatpush3.bf16.msra.mxu0 %v8566_v0  ;;  %7929 = vmatpush3.bf16.msra.mxu1 %v9190_v55 }
 0x14e   : > { %1318 = vst [vmem:[#allocation2 + $0x98] sm:$0x1] %v1317_v42  ;;  %1308 = vst [vmem:[#allocation2 + $0x88] sm:$0xf] %v1097_v43  ;;  %v1718_v48 = vshrl.u32 %v1562_v35, 16  ;;  %v1721_v52 = vshll.u32 %v1562_v35, 16  ;;  %7790 = vmatprep.subr.bf16.mxu0 %v8569_v36  ;;  %v760_v61 = vadd.f32 %v9134_v8, %v9032_v14  ;;  %v752_v62 = vadd.f32 %v9032_v14, %v9136_v16 }
 0x14f   : > { %1311 = vst [vmem:[#allocation2 + $0x8c] sm:$0x1] %v1310_v45  ;;  %v1727_v53 = vshll.u32 %v1563_v44, 16  ;;  %v1731_v54 = vshrl.u32 %v1563_v44, 16  ;;  %v1737_v56 = vshll.u32 %v1606_v40, 16  ;;  %v1716_v57 = vsel %vm8971_vm9, %v1711_v15, %v1715_v47  ;;  %7930 = vmatprep.subr.bf16.mxu1 %v8556_v13  ;;  %v8562_v8 = vld [vmem:[%s10754_s3 + $0x120] sm:$0xff]  }
 0x150   : > { %v1720_v58 = vrot.slane %v1718_v48, 4  ;;  %v6999_v0 = vcombine.low %v1706_v46, %v1716_v57  ;;  %v1723_v2 = vrot.slane %v1721_v52, 5  ;;  %v808_v5 = vmax.f32 %v760_v61, 0.0  ;;  %v8574_v19 = vld [vmem:[%s10754_s3 + $0x30] sm:$0xff]   ;;  %v1319_v26 = vld [vmem:[#allocation2 + $0x9c] sm:$0xf] }
 0x151   : > { %v1729_v3 = vrot.slane %v1727_v53, 5  ;;  %v1733_v55 = vrot.slane %v1731_v54, 4  ;;  %v1739_v4 = vrot.slane %v1737_v56, 5  ;;  %v806_v7 = vmax.f32 %v752_v62, 0.0  ;;  %7791 = vmatpush3.bf16.msra.mxu0 %v8569_v36  ;;  %7931 = vmatpush3.bf16.msra.mxu1 %v8556_v13  ;;  %v8575_v40 = vld [vmem:[%s10754_s3 + $0x38] sm:$0xff]   ;;  %v8565_v46 = vld [vmem:[%s10754_s3 + $0x128] sm:$0xff]  }
 0x152   : > { %v763_v10 = vadd.f32 %v9138_v22, %v9032_v14  ;;  %7755 = vmatmul.mubr.bf16.gmra.mrb[36].mxu0 %v6999_v0  ;;  %v1724_v16 = vor.u32 %v1723_v2, %v1720_v58  ;;  %v755_v18 = vadd.f32 %v9032_v14, %v9144_v29  ;;  %v1742_v11 = vshrl.u32 %v1564_v49, 16  ;;  %7932 = vmatprep.subr.bf16.mxu1 %v8559_v51  ;;  %v1565_v43 = vld [vmem:[#allocation2 + $0x40] sm:$0xf]  ;;  %v1330_v58 = vld [vmem:[#allocation2 + $0xb0] sm:$0x1] }
 0x153   : > { %v1734_v17 = vor.u32 %v1733_v55, %v1729_v3  ;;  %v7412_v12 = vpack.c.bf16 %v808_v5, %v808_v5  ;;  %v7410_v21 = vpack.c.bf16 %v806_v7, %v806_v7  ;;  %v1745_v24 = vshll.u32 %v1564_v49, 16  ;;  %7792 = vmatprep.subr.bf16.mxu0 %v8572_v63  ;;  %v8568_v5 = vld [vmem:[%s10754_s3 + $0x130] sm:$0xff]   ;;  %v9261_v7 = vld [vmem:[%s10754_s3 + $0x80] sm:$0xff]  }
 0x154   : > { %v809_v22 = vmax.f32 %v763_v10, 0.0  ;;  %v1725_v25 = vrot.slane %v1724_v16, 4  ;;  %v807_v27 = vmax.f32 %v755_v18, 0.0  ;;  %v1744_v28 = vrot.slane %v1742_v11, 4  ;;  %v8558_v44 = vld [vmem:[#allocation2 + $0x90] sm:$0xff]  }
 0x155   : > { %v1735_v23 = vrot.slane %v1734_v17, 4  ;;  %v1134_v32 = vshrl.u32 %v7412_v12, 16  ;;  %v1137_v33 = vshll.u32 %v7412_v12, 16  ;;  %v1117_v34 = vshrl.u32 %v7410_v21, 16  ;;  %v8555_v29 = vld [vmem:[#allocation2 + $0x84] sm:$0xff]   ;;  %7793 = vmatpush3.bf16.msra.mxu0 %v8572_v63  ;;  %7933 = vmatpush3.bf16.msra.mxu1 %v8559_v51 }
 0x156   : > { %v1120_v14 = vshll.u32 %v7410_v21, 16  ;;  %v1730_v35 = vsel %vm8971_vm9, %v1725_v25, %v1729_v3  ;;  %v7413_v31 = vpack.c.bf16 %v809_v22, %v809_v22  ;;  %v7411_v37 = vpack.c.bf16 %v807_v27, %v807_v27  ;;  %7914 = vmatprep.mubr.bf16.mxu1 %v8555_v29  ;;  %7934 = vmatprep.subr.bf16.mxu1 %v8562_v8  ;;  %v1607_v51 = vld [vmem:[#allocation2 + $0x44] sm:$0x1]  ;;  %v1566_v18 = vld [vmem:[#allocation2 + $0x48] sm:$0xf]  ;;  %v8571_v29 = vld [vmem:[%s10754_s3 + $0x138] sm:$0xff]  }
 0x157   : > { %v1740_v36 = vsel %vm8971_vm9, %v1735_v23, %v1739_v4  ;;  %v1136_v41 = vrot.slane %v1134_v32, 7  ;;  %v1119_v42 = vrot.slane %v1117_v34, 7  ;;  %v1747_v45 = vrot.slane %v1745_v24, 5  ;;  %7915 = vmatmul.mubr.bf16.gmra.mrb[4].mxu1 %v8558_v44  ;;  %7794 = vmatprep.subr.bf16.mxu0 %v8574_v19  ;;  %v1323_v3 = vld [vmem:[#allocation2 + $0xa4] sm:$0x1] }
 0x158   : > { %v7000_v13 = vcombine.low %v1730_v35, %v1740_v36  ;;  %v1142_v15 = vshrl.u32 %v7413_v31, 16  ;;  %v1145_v47 = vshll.u32 %v7413_v31, 16  ;;  %v1125_v48 = vshrl.u32 %v7411_v37, 16  ;;  %v1567_v11 = vld [vmem:[#allocation2 + $0x4c] sm:$0xf] }
 0x159   : > { %v1128_v49 = vshll.u32 %v7411_v37, 16  ;;  %v1139_v52 = vor.u32 %v1137_v33, %v1136_v41  ;;  %v1140_v53 = vrot.slane %v1136_v41, 4  ;;  %v1122_v54 = vor.u32 %v1120_v14, %v1119_v42  ;;  %7795 = vmatpush3.bf16.msra.mxu0 %v8574_v19  ;;  %7935 = vmatpush3.bf16.msra.mxu1 %v8562_v8  ;;  %v1608_v24 = vld [vmem:[#allocation2 + $0x50] sm:$0x1] }
 0x15a   : > { %7758 = vmatprep.mubr.bf16.mxu0 %v7000_v13  ;;  %v1123_v56 = vrot.slane %v1119_v42, 4  ;;  %v1144_v57 = vrot.slane %v1142_v15, 7  ;;  %v1127_v61 = vrot.slane %v1125_v48, 7  ;;  %v1748_v62 = vor.u32 %v1747_v45, %v1744_v28  ;;  %7796 = vmatprep.subr.bf16.mxu0 %v8575_v40 }
 0x15b   : > { %v1751_v63 = vshll.u32 %v1565_v43, 16  ;;  %v1327_v0 = vsel %vm8922_vm6, %v1139_v52, %v1326_v39  ;;  %v1320_v2 = vsel %vm8922_vm6, %v1122_v54, %v1319_v26  ;;  %v1755_v55 = vshrl.u32 %v1565_v43, 16  ;;  %7936 = vmatprep.subr.bf16.mxu1 %v8565_v46  ;;  %v8679_v26 = vld [vmem:[%s10753_s2] ss:$0 sm:$0xff] }
 0x15c   : > { %v1761_v4 = vshll.u32 %v1607_v51, 16  ;;  %1328 = vst [vmem:[#allocation2 + $0xa8] sm:$0xf] %v1327_v0  ;;  %1321 = vst [vmem:[#allocation2 + $0x9c] sm:$0xf] %v1320_v2  ;;  %v1147_v10 = vor.u32 %v1145_v47, %v1144_v57  ;;  %v1149_v8 = vrot.slane %v1144_v57, 4  ;;  %v1130_v16 = vor.u32 %v1128_v49, %v1127_v61 }
 0x15d   : > { %v1132_v17 = vrot.slane %v1127_v61, 4  ;;  %v1749_v19 = vrot.slane %v1748_v62, 4  ;;  %v1753_v12 = vrot.slane %v1751_v63, 5  ;;  %v1757_v21 = vrot.slane %v1755_v55, 4  ;;  %7797 = vmatpush3.bf16.msra.mxu0 %v8575_v40  ;;  %7937 = vmatpush3.bf16.msra.mxu1 %v8565_v46  ;;  %v1568_v46 = vld [vmem:[#allocation2 + $0x54] sm:$0xf] }
 0x15e   : > { %v1763_v22 = vrot.slane %v1761_v4, 5  ;;  %v1148_v25 = vsel %vm9048_vm11, %v1140_v53, %v1147_v10  ;;  %v1331_v23 = vsel %vm8855_vm2, %v1149_v8, %v1330_v58  ;;  %v1131_v27 = vsel %vm9048_vm11, %v1123_v56, %v1130_v16  ;;  %7938 = vmatprep.subr.bf16.mxu1 %v8568_v5  ;;  %7830 = vmatprep.subr.bf16.mxu0 %v9261_v7  ;;  %v1340_v10 = vld [vmem:[#allocation2 + $0xc0] sm:$0xf] }
 0x15f   : > { %v1324_v28 = vsel %vm8855_vm2, %v1132_v17, %v1323_v3  ;;  %1329 = vst [vmem:[#allocation2 + $0xac] sm:$0xf] %v1148_v25  ;;  %1332 = vst [vmem:[#allocation2 + $0xb0] sm:$0x1] %v1331_v23  ;;  %v1754_v32 = vsel %vm8971_vm9, %v1749_v19, %v1753_v12  ;;  %v1758_v33 = vor.u32 %v1757_v21, %v1753_v12  ;;  %v1766_v34 = vshrl.u32 %v1566_v18, 16 }
 0x160   : > { %1322 = vst [vmem:[#allocation2 + $0xa0] sm:$0xf] %v1131_v27  ;;  %1325 = vst [vmem:[#allocation2 + $0xa4] sm:$0x1] %v1324_v28  ;;  %v1769_v14 = vshll.u32 %v1566_v18, 16  ;;  %v1775_v35 = vshll.u32 %v1567_v11, 16  ;;  %v776_v31 = vadd.f32 %v8679_v26, %v9148_v60  ;;  %v768_v13 = vadd.f32 %v8679_v26, %v9152_v1 }
 0x161   : > { %v1779_v36 = vshrl.u32 %v1567_v11, 16  ;;  %v1785_v39 = vshll.u32 %v1608_v24, 16  ;;  %v1759_v37 = vrot.slane %v1758_v33, 4  ;;  %v1768_v44 = vrot.slane %v1766_v34, 4  ;;  %7939 = vmatpush3.bf16.msra.mxu1 %v8568_v5  ;;  %v9288_v60 = vld [vmem:[%s10754_s3 + $0x140] sm:$0xff]  }
 0x162   : > { %v1771_v40 = vrot.slane %v1769_v14, 5  ;;  %v1777_v41 = vrot.slane %v1775_v35, 5  ;;  %v812_v45 = vmax.f32 %v776_v31, 0.0  ;;  %v810_v48 = vmax.f32 %v768_v13, 0.0  ;;  %7940 = vmatprep.subr.bf16.mxu1 %v8571_v29  ;;  %v9296_v21 = vld [vmem:[#allocation2 + $0x58] sm:$0xf] }
 0x163   : > { %v1781_v42 = vrot.slane %v1779_v36, 4  ;;  %v1787_v43 = vrot.slane %v1785_v39, 5  ;;  %v1764_v15 = vsel %vm8971_vm9, %v1759_v37, %v1763_v22  ;;  %v779_v49 = vadd.f32 %v8679_v26, %v9162_v9  ;;  %v1333_v25 = vld [vmem:[#allocation2 + $0xb4] sm:$0xf]  ;;  %v1344_v34 = vld [vmem:[#allocation2 + $0xc8] sm:$0x1] }
 0x164   : > { %v1772_v47 = vor.u32 %v1771_v40, %v1768_v44  ;;  %v7001_v1 = vcombine.low %v1754_v32, %v1764_v15  ;;  %v7416_v52 = vpack.c.bf16 %v812_v45, %v812_v45  ;;  %v771_v53 = vadd.f32 %v8679_v26, %v9167_v20  ;;  %v1609_v36 = vld [vmem:[#allocation2 + $0x5c] sm:$0x1]  ;;  %v9306_v15 = vld [vmem:[#allocation2 + $0x64] sm:$0xf] }
 0x165   : > { %v1782_v51 = vor.u32 %v1781_v42, %v1777_v41  ;;  %v7414_v56 = vpack.c.bf16 %v810_v48, %v810_v48  ;;  %v813_v57 = vmax.f32 %v779_v49, 0.0  ;;  %v1790_v58 = vshrl.u32 %v1568_v46, 16  ;;  %7941 = vmatpush3.bf16.msra.mxu1 %v8571_v29  ;;  %v1337_v40 = vld [vmem:[#allocation2 + $0xbc] sm:$0x1] }
 0x166   : > { %v1773_v54 = vrot.slane %v1772_v47, 4  ;;  %7759 = vmatmul.mubr.bf16.gmra.mrb[40].mxu0 %v7001_v1  ;;  %v1168_v62 = vshrl.u32 %v7416_v52, 16  ;;  %v1171_v63 = vshll.u32 %v7416_v52, 16  ;;  %v811_v9 = vmax.f32 %v771_v53, 0.0  ;;  %7974 = vmatprep.subr.bf16.mxu1 %v9288_v60  ;;  %v8564_v17 = vld [vmem:[#allocation2 + $0xa8] sm:$0xff]  }
 0x167   : > { %v1783_v61 = vrot.slane %v1782_v51, 4  ;;  %v1151_v2 = vshrl.u32 %v7414_v56, 16  ;;  %v1154_v3 = vshll.u32 %v7414_v56, 16  ;;  %v7417_v55 = vpack.c.bf16 %v813_v57, %v813_v57  ;;  %v8561_v4 = vld [vmem:[#allocation2 + $0x9c] sm:$0xff]   ;;  %v1610_v51 = vld [vmem:[#allocation2 + $0x68] sm:$0x1] }
 0x168   : > { %v1778_v0 = vsel %vm8971_vm9, %v1773_v54, %v1777_v41  ;;  %v1170_v5 = vrot.slane %v1168_v62, 7  ;;  %v7415_v8 = vpack.c.bf16 %v811_v9, %v811_v9  ;;  %v1792_v16 = vrot.slane %v1790_v58, 4  ;;  %7918 = vmatprep.mubr.bf16.mxu1 %v8561_v4  ;;  %v9304_v41 = vld [vmem:[#allocation2 + $0x60] sm:$0xf]  ;;  %v9317_v57 = vld [vmem:[#allocation2 + $0x6c] sm:$0xf] }
 0x169   : > { %v1788_v20 = vsel %vm8971_vm9, %v1783_v61, %v1787_v43  ;;  %v1153_v11 = vrot.slane %v1151_v2, 7  ;;  %v1176_v19 = vshrl.u32 %v7417_v55, 16  ;;  %v1179_v12 = vshll.u32 %v7417_v55, 16  ;;  %7919 = vmatmul.mubr.bf16.gmra.mrb[8].mxu1 %v8564_v17  ;;  %v9324_v55 = vld [vmem:[#allocation2 + $0x78] sm:$0xf] }
 0x16a   : > { %v7002_v18 = vcombine.low %v1778_v0, %v1788_v20  ;;  %v1173_v22 = vor.u32 %v1171_v63, %v1170_v5  ;;  %v1174_v24 = vrot.slane %v1170_v5, 4  ;;  %v1159_v23 = vshrl.u32 %v7415_v8, 16 }
 0x16b   : > { %v1162_v27 = vshll.u32 %v7415_v8, 16  ;;  %v1156_v28 = vor.u32 %v1154_v3, %v1153_v11  ;;  %v1157_v32 = vrot.slane %v1153_v11, 4  ;;  %v1178_v33 = vrot.slane %v1176_v19, 7  ;;  %v9322_v3 = vld [vmem:[#allocation2 + $0x70] sm:$0xf] }
 0x16c   : > { %7762 = vmatprep.mubr.bf16.mxu0 %v7002_v18  ;;  %v1793_v14 = vshll.u32 %v1568_v46, 16  ;;  %v1341_v29 = vsel %vm8922_vm6, %v1173_v22, %v1340_v10  ;;  %v1161_v35 = vrot.slane %v1159_v23, 7  ;;  %v1799_v39 = vshll.u32 %v9296_v21, 16  ;;  %v1611_v10 = vld [vmem:[#allocation2 + $0x74] sm:$0x1] }
 0x16d   : > { %v1803_v26 = vshrl.u32 %v9296_v21, 16  ;;  %1342 = vst [vmem:[#allocation2 + $0xc0] sm:$0xf] %v1341_v29  ;;  %v1334_v31 = vsel %vm8922_vm6, %v1156_v28, %v1333_v25  ;;  %v1181_v37 = vor.u32 %v1179_v12, %v1178_v33  ;;  %v1183_v44 = vrot.slane %v1178_v33, 4  ;;  %v9333_v25 = vld [vmem:[#allocation2 + $0x7c] sm:$0xf] }
 0x16e   : > { %v1795_v13 = vrot.slane %v1793_v14, 5  ;;  %1335 = vst [vmem:[#allocation2 + $0xb4] sm:$0xf] %v1334_v31  ;;  %v1164_v42 = vor.u32 %v1162_v27, %v1161_v35  ;;  %v1166_v43 = vrot.slane %v1161_v35, 4  ;;  %v1801_v45 = vrot.slane %v1799_v39, 5 }
 0x16f   : > { %v1805_v46 = vrot.slane %v1803_v26, 4  ;;  %v1182_v47 = vsel %vm9048_vm11, %v1174_v24, %v1181_v37  ;;  %v1345_v48 = vsel %vm8855_vm2, %v1183_v44, %v1344_v34  ;;  %v1809_v1 = vshll.u32 %v1609_v36, 16  ;;  %v1612_v33 = vld [vmem:[#allocation2 + $0x80] sm:$0x1] }
 0x170   : > { %v1796_v49 = vor.u32 %v1795_v13, %v1792_v16  ;;  %1343 = vst [vmem:[#allocation2 + $0xc4] sm:$0xf] %v1182_v47  ;;  %1346 = vst [vmem:[#allocation2 + $0xc8] sm:$0x1] %v1345_v48  ;;  %v1165_v52 = vsel %vm9048_vm11, %v1157_v32, %v1164_v42  ;;  %v1338_v53 = vsel %vm8855_vm2, %v1166_v43, %v1337_v40  ;;  %v1814_v56 = vshrl.u32 %v9304_v41, 16 }
 0x171   : > { %v1806_v54 = vor.u32 %v1805_v46, %v1801_v45  ;;  %1336 = vst [vmem:[#allocation2 + $0xb8] sm:$0xf] %v1165_v52  ;;  %1339 = vst [vmem:[#allocation2 + $0xbc] sm:$0x1] %v1338_v53  ;;  %v1811_v61 = vrot.slane %v1809_v1, 5  ;;  %v1817_v62 = vshll.u32 %v9304_v41, 16 }
 0x172   : > { %v1797_v58 = vrot.slane %v1796_v49, 4  ;;  %v1823_v63 = vshll.u32 %v9306_v15, 16  ;;  %v1816_v0 = vrot.slane %v1814_v56, 4  ;;  %v1827_v59 = vshrl.u32 %v9306_v15, 16  ;;  %v9341_v43 = vld [vmem:[#allocation2 + $0x84] sm:$0xf] }
 0x173   : > { %v1807_v9 = vrot.slane %v1806_v54, 4  ;;  %v1833_v2 = vshll.u32 %v1610_v51, 16  ;;  %v1819_v20 = vrot.slane %v1817_v62, 5  ;;  %v1838_v8 = vshrl.u32 %v9317_v57, 16  ;;  %v9346_v1 = vld [vmem:[#allocation2 + $0x88] sm:$0xf] }
 0x174   : > { %v1802_v4 = vsel %vm8971_vm9, %v1797_v58, %v1801_v45  ;;  %v1825_v5 = vrot.slane %v1823_v63, 5  ;;  %v1829_v17 = vrot.slane %v1827_v59, 4  ;;  %v1841_v11 = vshll.u32 %v9317_v57, 16  ;;  %v1613_v62 = vld [vmem:[#allocation2 + $0x8c] sm:$0x1] }
 0x175   : > { %v1812_v16 = vsel %vm8971_vm9, %v1807_v9, %v1811_v61  ;;  %v1835_v18 = vrot.slane %v1833_v2, 5  ;;  %v1820_v12 = vor.u32 %v1819_v20, %v1816_v0  ;;  %v1840_v22 = vrot.slane %v1838_v8, 4 }
 0x176   : > { %v7003_v19 = vcombine.low %v1802_v4, %v1812_v16  ;;  %v1847_v24 = vshll.u32 %v9322_v3, 16  ;;  %v1830_v23 = vor.u32 %v1829_v17, %v1825_v5  ;;  %v1843_v27 = vrot.slane %v1841_v11, 5  ;;  %v9353_v4 = vld [vmem:[#allocation2 + $0x90] sm:$0xf]  ;;  %v9358_v16 = vld [vmem:[#allocation2 + $0x94] sm:$0xf] }
 0x177   : > { %v1851_v28 = vshrl.u32 %v9322_v3, 16  ;;  %v1857_v32 = vshll.u32 %v1611_v10, 16  ;;  %v1821_v34 = vrot.slane %v1820_v12, 4  ;;  %v1862_v29 = vshrl.u32 %v9324_v55, 16  ;;  %v8570_v45 = vld [vmem:[#allocation2 + $0xc0] sm:$0xff]  }
 0x178   : > { %7763 = vmatmul.mubr.bf16.gmra.mrb[44].mxu0 %v7003_v19  ;;  %v1849_v14 = vrot.slane %v1847_v24, 5  ;;  %v1865_v35 = vshll.u32 %v9324_v55, 16  ;;  %v1831_v36 = vrot.slane %v1830_v23, 4  ;;  %v1844_v39 = vor.u32 %v1843_v27, %v1840_v22  ;;  %v8567_v37 = vld [vmem:[#allocation2 + $0xb4] sm:$0xff]  }
 0x179   : > { %v1853_v26 = vrot.slane %v1851_v28, 4  ;;  %v1859_v31 = vrot.slane %v1857_v32, 5  ;;  %v1826_v44 = vsel %vm8971_vm9, %v1821_v34, %v1825_v5  ;;  %v1864_v40 = vrot.slane %v1862_v29, 4  ;;  %7922 = vmatprep.mubr.bf16.mxu1 %v8567_v37  ;;  %v1614_v23 = vld [vmem:[#allocation2 + $0x98] sm:$0x1] }
 0x17a   : > { %v1867_v13 = vrot.slane %v1865_v35, 5  ;;  %v1871_v42 = vshll.u32 %v9333_v25, 16  ;;  %v1836_v46 = vsel %vm8971_vm9, %v1831_v36, %v1835_v18  ;;  %v1845_v47 = vrot.slane %v1844_v39, 4  ;;  %7923 = vmatmul.mubr.bf16.gmra.mrb[12].mxu1 %v8570_v45 }
 0x17b   : > { %v1854_v48 = vor.u32 %v1853_v26, %v1849_v14  ;;  %v1875_v49 = vshrl.u32 %v9333_v25, 16  ;;  %v7004_v51 = vcombine.low %v1826_v44, %v1836_v46  ;;  %v1881_v54 = vshll.u32 %v1612_v33, 16  ;;  %v9370_v26 = vld [vmem:[#allocation2 + $0xa0] sm:$0xf] }
 0x17c   : > { %v1868_v52 = vor.u32 %v1867_v13, %v1864_v40  ;;  %v1873_v53 = vrot.slane %v1871_v42, 5  ;;  %v1850_v56 = vsel %vm8971_vm9, %v1845_v47, %v1849_v14  ;;  %v1886_v63 = vshrl.u32 %v9341_v43, 16  ;;  %v9366_v14 = vld [vmem:[#allocation2 + $0x9c] sm:$0xf]  ;;  %v9373_v47 = vld [vmem:[#allocation2 + $0xa8] sm:$0xf] }
 0x17d   : > { %v1855_v58 = vrot.slane %v1854_v48, 4  ;;  %v1877_v61 = vrot.slane %v1875_v49, 4  ;;  %7766 = vmatprep.mubr.bf16.mxu0 %v7004_v51  ;;  %v1883_v0 = vrot.slane %v1881_v54, 5  ;;  %v1889_v59 = vshll.u32 %v9341_v43, 16  ;;  %v1615_v51 = vld [vmem:[#allocation2 + $0xa4] sm:$0x1] }
 0x17e   : > { %v1869_v9 = vrot.slane %v1868_v52, 4  ;;  %v1895_v2 = vshll.u32 %v9346_v1, 16  ;;  %v1888_v10 = vrot.slane %v1886_v63, 4  ;;  %v1899_v8 = vshrl.u32 %v9346_v1, 16  ;;  %v9379_v54 = vld [vmem:[#allocation2 + $0xac] sm:$0xf] }
 0x17f   : > { %v1860_v20 = vsel %vm8971_vm9, %v1855_v58, %v1859_v31  ;;  %v1878_v5 = vor.u32 %v1877_v61, %v1873_v53  ;;  %v1891_v11 = vrot.slane %v1889_v59, 5  ;;  %v1905_v24 = vshll.u32 %v1613_v62, 16 }
 0x180   : > { %v7005_v17 = vcombine.low %v1850_v56, %v1860_v20  ;;  %v1874_v18 = vsel %vm8971_vm9, %v1869_v9, %v1873_v53  ;;  %v1897_v19 = vrot.slane %v1895_v2, 5  ;;  %v1901_v22 = vrot.slane %v1899_v8, 4  ;;  %v3471_v2 = vld [vmem:[#allocation2 + $0xc] sm:$0xf] }
 0x181   : > { %v1879_v12 = vrot.slane %v1878_v5, 4  ;;  %v1910_v27 = vshrl.u32 %v9353_v4, 16  ;;  %v1892_v28 = vor.u32 %v1891_v11, %v1888_v10  ;;  %v1913_v32 = vshll.u32 %v9353_v4, 16  ;;  %v1616_v11 = vld [vmem:[#allocation2 + $0xb0] sm:$0x1] }
 0x182   : > { %7767 = vmatmul.mubr.bf16.gmra.mrb[48].mxu0 %v7005_v17  ;;  %v1919_v33 = vshll.u32 %v9358_v16, 16  ;;  %v1923_v34 = vshrl.u32 %v9358_v16, 16  ;;  %v1902_v35 = vor.u32 %v1901_v22, %v1897_v19  ;;  %v1907_v36 = vrot.slane %v1905_v24, 5 }
 0x183   : > { %v1884_v29 = vsel %vm8971_vm9, %v1879_v12, %v1883_v0  ;;  %v1912_v39 = vrot.slane %v1910_v27, 4  ;;  %v1893_v37 = vrot.slane %v1892_v28, 4  ;;  %v1915_v44 = vrot.slane %v1913_v32, 5  ;;  %v9391_v28 = vld [vmem:[#allocation2 + $0x10] sm:$0xf] }
 0x184   : > { %v7006_v31 = vcombine.low %v1874_v18, %v1884_v29  ;;  %v1921_v40 = vrot.slane %v1919_v33, 5  ;;  %v1903_v13 = vrot.slane %v1902_v35, 4  ;;  %v1925_v42 = vrot.slane %v1923_v34, 4 }
 0x185   : > { %v1929_v45 = vshll.u32 %v1614_v23, 16  ;;  %v1934_v46 = vshrl.u32 %v9366_v14, 16  ;;  %v1898_v48 = vsel %vm8971_vm9, %v1893_v37, %v1897_v19  ;;  %v1916_v49 = vor.u32 %v1915_v44, %v1912_v39 }
 0x186   : > { %7770 = vmatprep.mubr.bf16.mxu0 %v7006_v31  ;;  %v1937_v52 = vshll.u32 %v9366_v14, 16  ;;  %v1943_v53 = vshll.u32 %v9370_v26, 16  ;;  %v1908_v56 = vsel %vm8971_vm9, %v1903_v13, %v1907_v36  ;;  %v1926_v58 = vor.u32 %v1925_v42, %v1921_v40  ;;  %v9394_v31 = vld [vmem:[#allocation2 + $0x14] sm:$0x1] }
 0x187   : > { %v1931_v61 = vrot.slane %v1929_v45, 5  ;;  %v1936_v62 = vrot.slane %v1934_v46, 4  ;;  %v7007_v63 = vcombine.low %v1898_v48, %v1908_v56  ;;  %v1917_v9 = vrot.slane %v1916_v49, 4  ;;  %v9399_v45 = vld [vmem:[#allocation2 + $0xb4] sm:$0xf] }
 0x188   : > { %v1939_v0 = vrot.slane %v1937_v52, 5  ;;  %v1945_v59 = vrot.slane %v1943_v53, 5  ;;  %v1927_v20 = vrot.slane %v1926_v58, 4  ;;  %v1947_v5 = vshrl.u32 %v9370_v26, 16  ;;  %v9401_v52 = vld [vmem:[#allocation2 + $0xb8] sm:$0xf] }
 0x189   : > { %v1953_v10 = vshll.u32 %v1615_v51, 16  ;;  %v1958_v8 = vshrl.u32 %v9373_v47, 16  ;;  %v1922_v17 = vsel %vm8971_vm9, %v1917_v9, %v1921_v40  ;;  %v1961_v19 = vshll.u32 %v9373_v47, 16 }
 0x18a   : > { %7771 = vmatmul.mubr.bf16.gmra.mrb[52].mxu0 %v7007_v63  ;;  %v1940_v18 = vor.u32 %v1939_v0, %v1936_v62  ;;  %v1967_v12 = vshll.u32 %v9379_v54, 16  ;;  %v1932_v22 = vsel %vm8971_vm9, %v1927_v20, %v1931_v61  ;;  %v1949_v24 = vrot.slane %v1947_v5, 4  ;;  %v3474_v62 = vld [vmem:[#allocation2 + $0x18] sm:$0xf] }
 0x18b   : > { %v1955_v23 = vrot.slane %v1953_v10, 5  ;;  %v1960_v27 = vrot.slane %v1958_v8, 4  ;;  %v7008_v32 = vcombine.low %v1922_v17, %v1932_v22  ;;  %v1963_v34 = vrot.slane %v1961_v19, 5  ;;  %v1617_v8 = vld [vmem:[#allocation2 + $0xbc] sm:$0x1] }
 0x18c   : > { %v1941_v33 = vrot.slane %v1940_v18, 4  ;;  %v1969_v29 = vrot.slane %v1967_v12, 5  ;;  %v1950_v35 = vor.u32 %v1949_v24, %v1945_v59  ;;  %v1971_v36 = vshrl.u32 %v9379_v54, 16 }
 0x18d   : > { %v1977_v39 = vshll.u32 %v1616_v11, 16  ;;  %v3520_v37 = vshrl.u32 %v3471_v2, 16  ;;  %7774 = vmatprep.mubr.bf16.mxu0 %v7008_v32  ;;  %v1964_v40 = vor.u32 %v1963_v34, %v1960_v27  ;;  %v3523_v13 = vshll.u32 %v3471_v2, 16  ;;  %v9413_v27 = vld [vmem:[#allocation2 + $0x1c] sm:$0xf] }
 0x18e   : > { %v1946_v44 = vsel %vm8971_vm9, %v1941_v33, %v1945_v59  ;;  %v3529_v42 = vshll.u32 %v9391_v28, 16  ;;  %v1951_v46 = vrot.slane %v1950_v35, 4  ;;  %v1973_v48 = vrot.slane %v1971_v36, 4 }
 0x18f   : > { %v1979_v49 = vrot.slane %v1977_v39, 5  ;;  %v3522_v51 = vrot.slane %v3520_v37, 4  ;;  %v1965_v53 = vrot.slane %v1964_v40, 4  ;;  %v3525_v56 = vrot.slane %v3523_v13, 5  ;;  %v3477_v40 = vld [vmem:[#allocation2 + $0x24] sm:$0xf] }
 0x190   : > { %v3531_v58 = vrot.slane %v3529_v42, 5  ;;  %v3533_v61 = vshrl.u32 %v9391_v28, 16  ;;  %v1956_v63 = vsel %vm8971_vm9, %v1951_v46, %v1955_v23  ;;  %v1974_v9 = vor.u32 %v1973_v48, %v1969_v29 }
 0x191   : > { %v3539_v0 = vshll.u32 %v9394_v31, 16  ;;  %v1982_v59 = vshrl.u32 %v9399_v45, 16  ;;  %v7009_v2 = vcombine.low %v1946_v44, %v1956_v63  ;;  %v1970_v20 = vsel %vm8971_vm9, %v1965_v53, %v1969_v29  ;;  %v9417_v29 = vld [vmem:[#allocation2 + $0x20] sm:$0x1] }
 0x192   : > { %v3526_v5 = vor.u32 %v3525_v56, %v3522_v51  ;;  %v3535_v10 = vrot.slane %v3533_v61, 4  ;;  %v1975_v17 = vrot.slane %v1974_v9, 4  ;;  %v1985_v19 = vshll.u32 %v9399_v45, 16  ;;  %v9421_v51 = vld [vmem:[#allocation2 + $0x28] sm:$0xf] }
 0x193   : > { %v3541_v18 = vrot.slane %v3539_v0, 5  ;;  %v1984_v11 = vrot.slane %v1982_v59, 4  ;;  %7775 = vmatmul.mubr.bf16.gmra.mrb[56].mxu0 %v7009_v2  ;;  %v1991_v24 = vshll.u32 %v9401_v52, 16  ;;  %v1995_v23 = vshrl.u32 %v9401_v52, 16 }
 0x194   : > { %v3527_v12 = vrot.slane %v3526_v5, 4  ;;  %v3536_v22 = vor.u32 %v3535_v10, %v3531_v58  ;;  %v1980_v32 = vsel %vm8971_vm9, %v1975_v17, %v1979_v49  ;;  %v1987_v33 = vrot.slane %v1985_v19, 5  ;;  %v9428_v5 = vld [vmem:[#allocation2 + $0x2c] sm:$0x1] }
 0x195   : > { %v2001_v34 = vshll.u32 %v1617_v8, 16  ;;  %v3544_v35 = vshrl.u32 %v3474_v62, 16  ;;  %v7010_v36 = vcombine.low %v1970_v20, %v1980_v32  ;;  %v1993_v44 = vrot.slane %v1991_v24, 5 }
 0x196   : > { %v3532_v39 = vsel %vm8971_vm9, %v3527_v12, %v3531_v58  ;;  %v3537_v37 = vrot.slane %v3536_v22, 4  ;;  %v1988_v13 = vor.u32 %v1987_v33, %v1984_v11  ;;  %v1997_v42 = vrot.slane %v1995_v23, 4  ;;  %v3480_v11 = vld [vmem:[#allocation2 + $0x30] sm:$0xf] }
 0x197   : > { %v2003_v46 = vrot.slane %v2001_v34, 5  ;;  %v3546_v48 = vrot.slane %v3544_v35, 4  ;;  %7778 = vmatprep.mubr.bf16.mxu0 %v7010_v36  ;;  %v3547_v53 = vshll.u32 %v3474_v62, 16  ;;  %v3553_v56 = vshll.u32 %v9413_v27, 16  ;;  %v9437_v35 = vld [vmem:[#allocation2 + $0x34] sm:$0xf] }
 0x198   : > { %v3542_v49 = vsel %vm8971_vm9, %v3537_v37, %v3541_v18  ;;  %v3557_v61 = vshrl.u32 %v9413_v27, 16  ;;  %v1989_v58 = vrot.slane %v1988_v13, 4  ;;  %v1998_v9 = vor.u32 %v1997_v42, %v1993_v44 }
 0x199   : > { %v7156_v63 = vcombine.low %v3532_v39, %v3542_v49  ;;  %v3563_v0 = vshll.u32 %v9417_v29, 16  ;;  %v3549_v59 = vrot.slane %v3547_v53, 5  ;;  %v3555_v2 = vrot.slane %v3553_v56, 5  ;;  %v8680_v49 = vld [vmem:[#allocation2] sm:$0xf] }
 0x19a   : > { %v3559_v20 = vrot.slane %v3557_v61, 4  ;;  %v3568_v10 = vshrl.u32 %v3477_v40, 16  ;;  %v1994_v8 = vsel %vm8971_vm9, %v1989_v58, %v1993_v44  ;;  %v1999_v62 = vrot.slane %v1998_v9, 4  ;;  %v9441_v53 = vld [vmem:[#allocation2 + $0x4] sm:$0xf]  ;;  %v8577_v58 = vld [vmem:[%s10754_s3 + $0x148] sm:$0xff]  }
 0x19b   : > { %7942 = vmatprep.mubr.bf16.mxu1 %v7156_v63  ;;  %v3565_v17 = vrot.slane %v3563_v0, 5  ;;  %v3571_v18 = vshll.u32 %v3477_v40, 16  ;;  %v3550_v19 = vor.u32 %v3549_v59, %v3546_v48  ;;  %v3577_v24 = vshll.u32 %v9421_v51, 16  ;;  %v9439_v40 = vld [vmem:[#allocation2 + $0x38] sm:$0x1] }
 0x19c   : > { %v3560_v12 = vor.u32 %v3559_v20, %v3555_v2  ;;  %v3570_v22 = vrot.slane %v3568_v10, 4  ;;  %v2004_v23 = vsel %vm8971_vm9, %v1999_v62, %v2003_v46  ;;  %v3581_v33 = vshrl.u32 %v9421_v51, 16  ;;  %v3483_v56 = vld [vmem:[#allocation2 + $0x3c] sm:$0xf]  ;;  %v8682_v9 = vld [vmem:[#allocation2 + $0xc] sm:$0xf] }
 0x19d   : > { %v3573_v32 = vrot.slane %v3571_v18, 5  ;;  %v3587_v34 = vshll.u32 %v9428_v5, 16  ;;  %v7011_v36 = vcombine.low %v1994_v8, %v2004_v23  ;;  %v3551_v39 = vrot.slane %v3550_v19, 4  ;;  %v9451_v0 = vld [vmem:[#allocation2 + $0x10] sm:$0xf] }
 0x19e   : > { %v3561_v37 = vrot.slane %v3560_v12, 4  ;;  %v3579_v44 = vrot.slane %v3577_v24, 5  ;;  %v3583_v42 = vrot.slane %v3581_v33, 4  ;;  %v7020_v46 = vcombine.low %v8680_v49, %v9441_v53  ;;  %v9454_v10 = vld [vmem:[#allocation2 + $0x40] sm:$0xf] }
 0x19f   : > { %v3574_v13 = vor.u32 %v3573_v32, %v3570_v22  ;;  %v3589_v48 = vrot.slane %v3587_v34, 5  ;;  %7779 = vmatmul.mubr.bf16.gmra.mrb[60].mxu0 %v7011_v36  ;;  %v3556_v61 = vsel %vm8971_vm9, %v3551_v39, %v3555_v2  ;;  %v7021_v59 = vcombine.low %v8682_v9, %v9451_v0  ;;  %v8684_v33 = vld [vmem:[#allocation2 + $0x18] sm:$0xf]  ;;  %v9461_v34 = vld [vmem:[#allocation2 + $0x1c] sm:$0xf] }
 0x1a0   : > { %v3566_v63 = vsel %vm8971_vm9, %v3561_v37, %v3565_v17  ;;  %v3592_v20 = vshrl.u32 %v3480_v11, 16  ;;  %v3584_v18 = vor.u32 %v3583_v42, %v3579_v44  ;;  %7798 = vmatprep.mubr.bf16.mxu0 %v7020_v46  ;;  %v3595_v2 = vshll.u32 %v3480_v11, 16  ;;  %v9464_v39 = vld [vmem:[#allocation2 + $0x44] sm:$0x1]  ;;  %v3486_v11 = vld [vmem:[#allocation2 + $0x48] sm:$0xf] }
 0x1a1   : > { %v7157_v8 = vcombine.low %v3556_v61, %v3566_v63  ;;  %v3575_v62 = vrot.slane %v3574_v13, 4  ;;  %v3601_v17 = vshll.u32 %v9437_v35, 16  ;;  %v3605_v12 = vshrl.u32 %v9437_v35, 16 }
 0x1a2   : > { %v3594_v19 = vrot.slane %v3592_v20, 4  ;;  %v3611_v22 = vshll.u32 %v9439_v40, 16  ;;  %v3585_v23 = vrot.slane %v3584_v18, 4  ;;  %v3597_v32 = vrot.slane %v3595_v2, 5  ;;  %v9474_v18 = vld [vmem:[#allocation2 + $0x4c] sm:$0xf] }
 0x1a3   : > { %7943 = vmatmul.mubr.bf16.vlgmr.msra.gmra.mrb[16].mxu1 %v7157_v8  ;;  %v3580_v24 = vsel %vm8971_vm9, %v3575_v62, %v3579_v44  ;;  %v7022_v36 = vcombine.low %v8684_v33, %v9461_v34  ;;  %v3603_v37 = vrot.slane %v3601_v17, 5  ;;  %v3607_v13 = vrot.slane %v3605_v12, 4 }
 0x1a4   : > { %7975 = vmatpush3.bf16.msra.mxu1 %v9288_v60  ;;  %v3613_v42 = vrot.slane %v3611_v22, 5  ;;  %v3616_v49 = vshrl.u32 %v3483_v56, 16  ;;  %v3590_v46 = vsel %vm8971_vm9, %v3585_v23, %v3589_v48  ;;  %v3598_v44 = vor.u32 %v3597_v32, %v3594_v19  ;;  %v8580_v60 = vld [vmem:[%s10754_s3 + $0x150] sm:$0xff]   ;;  %v9480_v23 = vld [vmem:[#allocation2 + $0x28] sm:$0xf] }
 0x1a5   : > { %7976 = vmatprep.subr.bf16.mxu1 %v8577_v58  ;;  %v3619_v61 = vshll.u32 %v3483_v56, 16  ;;  %v3625_v63 = vshll.u32 %v9454_v10, 16  ;;  %v7158_v9 = vcombine.low %v3580_v24, %v3590_v46  ;;  %v3608_v20 = vor.u32 %v3607_v13, %v3603_v37  ;;  %v8593_v56 = vld [vmem:[%s10754_s3 + $0x88] sm:$0xff]   ;;  %v8686_v24 = vld [vmem:[#allocation2 + $0x24] sm:$0xf] }
 0x1a6   : > { %v3618_v8 = vrot.slane %v3616_v49, 4  ;;  %v3629_v62 = vshrl.u32 %v9454_v10, 16  ;;  %v3599_v2 = vrot.slane %v3598_v44, 4  ;;  %v3635_v48 = vshll.u32 %v9464_v39, 16  ;;  %v9485_v44 = vld [vmem:[#allocation2 + $0x50] sm:$0x1] }
 0x1a7   : > { %v3621_v17 = vrot.slane %v3619_v61, 5  ;;  %v3627_v12 = vrot.slane %v3625_v63, 5  ;;  %7946 = vmatprep.mubr.bf16.mxu1 %v7158_v9  ;;  %7799 = vmatmul.mubr.bf16.vlgmr.msra.gmra.mrb[32].mxu0 %v7021_v59  ;;  %v3609_v19 = vrot.slane %v3608_v20, 4  ;;  %v7023_v32 = vcombine.low %v8686_v24, %v9480_v23  ;;  %10796 = vst [vmem:[#allocation6_spill] sm:$0xff] %v9485_v44  ;;  %v9501_v24 = vld [vmem:[#allocation2 + $0x34] sm:$0xf] }
 0x1a8   : > { %v3631_v22 = vrot.slane %v3629_v62, 4  ;;  %v3640_v33 = vshrl.u32 %v3486_v11, 16  ;;  %v3604_v13 = vsel %vm8971_vm9, %v3599_v2, %v3603_v37  ;;  %7977 = vmatpush3.bf16.msra.mxu1 %v8577_v58  ;;  %7802 = vmatprep.mubr.bf16.mxu0 %v7022_v36  ;;  %v3637_v46 = vrot.slane %v3635_v48, 5  ;;  %v3489_v62 = vld [vmem:[#allocation2 + $0x54] sm:$0xf]  ;;  %v8583_v37 = vld [vmem:[%s10754_s3 + $0x158] sm:$0xff]  }
 0x1a9   : > { %v3622_v49 = vor.u32 %v3621_v17, %v3618_v8  ;;  %v3643_v61 = vshll.u32 %v3486_v11, 16  ;;  %v3614_v59 = vsel %vm8971_vm9, %v3609_v19, %v3613_v42  ;;  %7978 = vmatprep.subr.bf16.mxu1 %v8580_v60  ;;  %v3649_v20 = vshll.u32 %v9474_v18, 16  ;;  %7831 = vmatpush3.bf16.msra.mxu0 %v9261_v7  ;;  %v9495_v2 = vld [vmem:[#allocation2 + $0x58] sm:$0xf]  ;;  %v8596_v42 = vld [vmem:[%s10754_s3 + $0x90] sm:$0xff]   ;;  %10797 = vst [vmem:[#allocation7_spill] sm:$0xff] %v9501_v24 }
 0x1aa   : > { %v3632_v63 = vor.u32 %v3631_v22, %v3627_v12  ;;  %v3642_v9 = vrot.slane %v3640_v33, 4  ;;  %v7159_v58 = vcombine.low %v3604_v13, %v3614_v59  ;;  %v3653_v11 = vshrl.u32 %v9474_v18, 16  ;;  %7832 = vmatprep.subr.bf16.mxu0 %v8593_v56  ;;  %v8688_v22 = vld [vmem:[#allocation2 + $0x30] sm:$0xf] }
 0x1ab   : > { %v3623_v36 = vrot.slane %v3622_v49, 4  ;;  %v3645_v8 = vrot.slane %v3643_v61, 5  ;;  %v3651_v48 = vrot.slane %v3649_v20, 5  ;;  %v3659_v19 = vshll.u32 %v9485_v44, 16  ;;  %v9506_v61 = vld [vmem:[#allocation2 + $0x5c] sm:$0x1] }
 0x1ac   : > { %v3633_v17 = vrot.slane %v3632_v63, 4  ;;  %v7024_v7 = vcombine.low %v8688_v22, %v9501_v24  ;;  %7947 = vmatmul.mubr.bf16.gmra.mrb[20].mxu1 %v7159_v58  ;;  %v3655_v49 = vrot.slane %v3653_v11, 4  ;;  %10798 = vst [vmem:[#allocation8_spill] sm:$0xff] %v9506_v61  ;;  %v3664_v59 = vshrl.u32 %v3489_v62, 16 }
 0x1ad   : > { %v3628_v33 = vsel %vm8971_vm9, %v3623_v36, %v3627_v12  ;;  %v3646_v13 = vor.u32 %v3645_v8, %v3642_v9  ;;  %v3661_v20 = vrot.slane %v3659_v19, 5  ;;  %7979 = vmatpush3.bf16.msra.mxu1 %v8580_v60  ;;  %v3667_v30 = vshll.u32 %v3489_v62, 16  ;;  %7833 = vmatpush3.bf16.msra.mxu0 %v8593_v56  ;;  %v8586_v12 = vld [vmem:[%s10754_s3 + $0x160] sm:$0xff]  }
 0x1ae   : > { %v3638_v63 = vsel %vm8971_vm9, %v3633_v17, %v3637_v46  ;;  %v3673_v50 = vshll.u32 %v9495_v2, 16  ;;  %v3656_v44 = vor.u32 %v3655_v49, %v3651_v48  ;;  %v3666_v24 = vrot.slane %v3664_v59, 4  ;;  %7980 = vmatprep.subr.bf16.mxu1 %v8583_v37  ;;  %7834 = vmatprep.subr.bf16.mxu0 %v8596_v42  ;;  %v8598_v46 = vld [vmem:[%s10754_s3 + $0x98] sm:$0xff]   ;;  %v9519_v36 = vld [vmem:[#allocation2 + $0x64] sm:$0xf] }
 0x1af   : > { %v7160_v22 = vcombine.low %v3628_v33, %v3638_v63  ;;  %v3647_v58 = vrot.slane %v3646_v13, 4  ;;  %7803 = vmatmul.mubr.bf16.gmra.mrb[36].mxu0 %v7023_v32  ;;  %v3669_v60 = vrot.slane %v3667_v30, 5  ;;  %v3677_v62 = vshrl.u32 %v9495_v2, 16  ;;  %10799 = vst [vmem:[#allocation9_spill] sm:$0xff] %v9519_v36  ;;  %v8690_v17 = vld [vmem:[#allocation2 + $0x3c] sm:$0xf] }
 0x1b0   : > { %v3675_v9 = vrot.slane %v3673_v50, 5  ;;  %v3683_v56 = vshll.u32 %v9506_v61, 16  ;;  %v3657_v11 = vrot.slane %v3656_v44, 4  ;;  %7806 = vmatprep.mubr.bf16.mxu0 %v7024_v7  ;;  %v9523_v19 = vld [vmem:[#allocation2 + $0x40] sm:$0xf]  ;;  %v3688_v32 = vshrl.u32 %v3492_v6, 16 }
 0x1b1   : > { %7950 = vmatprep.mubr.bf16.mxu1 %v7160_v22  ;;  %v3652_v8 = vsel %vm8971_vm9, %v3647_v58, %v3651_v48  ;;  %10800 = vst [vmem:[#allocation10_spill] sm:$0xff] %v9523_v19  ;;  %v7025_v33 = vcombine.low %v8690_v17, %v9523_v19  ;;  %v3670_v30 = vor.u32 %v3669_v60, %v3666_v24  ;;  %v3679_v50 = vrot.slane %v3677_v62, 4  ;;  %v9526_v49 = vld [vmem:[#allocation2 + $0x68] sm:$0x1]  ;;  %v3495_v22 = vld [vmem:[#allocation2 + $0x6c] sm:$0xf] }
 0x1b2   : > { %v3685_v13 = vrot.slane %v3683_v56, 5  ;;  %10801 = vst [vmem:[#allocation11_spill] sm:$0xff] %v9526_v49  ;;  %v3691_v59 = vshll.u32 %v3492_v6, 16  ;;  %7981 = vmatpush3.bf16.msra.mxu1 %v8583_v37  ;;  %7835 = vmatpush3.bf16.msra.mxu0 %v8596_v42  ;;  %v3662_v63 = vsel %vm8971_vm9, %v3657_v11, %v3661_v20  ;;  %v3690_v48 = vrot.slane %v3688_v32, 4  ;;  %v8601_v24 = vld [vmem:[%s10754_s3 + $0xa0] sm:$0xff]   ;;  %v8589_v20 = vld [vmem:[%s10754_s3 + $0x168] sm:$0xff]  }
 0x1b3   : > { %v3697_v44 = vshll.u32 %v9519_v36, 16  ;;  %v3701_v7 = vshrl.u32 %v9519_v36, 16  ;;  %7982 = vmatprep.subr.bf16.mxu1 %v8586_v12  ;;  %7836 = vmatprep.subr.bf16.mxu0 %v8598_v46  ;;  %v7161_v58 = vcombine.low %v3652_v8, %v3662_v63  ;;  %v3671_v60 = vrot.slane %v3670_v30, 4  ;;  %v9535_v42 = vld [vmem:[#allocation2 + $0x70] sm:$0xf] }
 0x1b4   : > { %v3680_v6 = vor.u32 %v3679_v50, %v3675_v9  ;;  %v3693_v37 = vrot.slane %v3691_v59, 5  ;;  %v3707_v11 = vshll.u32 %v9526_v49, 16  ;;  %v8692_v17 = vld [vmem:[#allocation2 + $0x48] sm:$0xf]  ;;  %v9541_v32 = vld [vmem:[#allocation2 + $0x4c] sm:$0xf] }
 0x1b5   : > { %v3699_v62 = vrot.slane %v3697_v44, 5  ;;  %v3703_v56 = vrot.slane %v3701_v7, 4  ;;  %v7026_v36 = vcombine.low %v8692_v17, %v9541_v32  ;;  %7951 = vmatmul.mubr.bf16.gmra.mrb[24].mxu1 %v7161_v58  ;;  %v3676_v8 = vsel %vm8971_vm9, %v3671_v60, %v3675_v9  ;;  %v3498_v63 = vld [vmem:[#allocation2 + $0x78] sm:$0xf]  ;;  %v9546_v44 = vld [vmem:[#allocation2 + $0x74] sm:$0x1] }
 0x1b6   : > { %v3681_v30 = vrot.slane %v3680_v6, 4  ;;  %v3694_v50 = vor.u32 %v3693_v37, %v3690_v48  ;;  %v3712_v59 = vshrl.u32 %v3495_v22, 16  ;;  %7837 = vmatpush3.bf16.msra.mxu0 %v8598_v46  ;;  %v3709_v19 = vrot.slane %v3707_v11, 5  ;;  %7983 = vmatpush3.bf16.msra.mxu1 %v8586_v12  ;;  %v8594_v46 = vld [vmem:[%s10754_s3 + $0x170] sm:$0xff]  }
 0x1b7   : > { %v3704_v61 = vor.u32 %v3703_v56, %v3699_v62  ;;  %v3715_v7 = vshll.u32 %v3495_v22, 16  ;;  %v3721_v49 = vshll.u32 %v9535_v42, 16  ;;  %7838 = vmatprep.subr.bf16.mxu0 %v8601_v24  ;;  %7807 = vmatmul.mubr.bf16.gmra.mrb[40].mxu0 %v7025_v33  ;;  %v3725_v48 = vshrl.u32 %v9535_v42, 16  ;;  %v8603_v22 = vld [vmem:[%s10754_s3 + $0xa8] sm:$0xff]  }
 0x1b8   : > { %v3686_v58 = vsel %vm8971_vm9, %v3681_v30, %v3685_v13  ;;  %v3695_v17 = vrot.slane %v3694_v50, 4  ;;  %v3714_v9 = vrot.slane %v3712_v59, 4  ;;  %7984 = vmatprep.subr.bf16.mxu1 %v8589_v20  ;;  %7810 = vmatprep.mubr.bf16.mxu0 %v7026_v36  ;;  %v9558_v13 = vld [vmem:[#allocation2 + $0x7c] sm:$0xf]  ;;  %v3731_v11 = vshll.u32 %v9546_v44, 16 }
 0x1b9   : > { %v7162_v60 = vcombine.low %v3676_v8, %v3686_v58  ;;  %v3705_v12 = vrot.slane %v3704_v61, 4  ;;  %v3717_v6 = vrot.slane %v3715_v7, 5  ;;  %v3723_v37 = vrot.slane %v3721_v49, 5  ;;  %v8694_v30 = vld [vmem:[#allocation2 + $0x54] sm:$0xf] }
 0x1ba   : > { %v3700_v33 = vsel %vm8971_vm9, %v3695_v17, %v3699_v62  ;;  %v3727_v56 = vrot.slane %v3725_v48, 4  ;;  %v7027_v50 = vcombine.low %v8694_v30, %v9296_v21  ;;  %7839 = vmatpush3.bf16.msra.mxu0 %v8601_v24  ;;  %v9566_v36 = vld [vmem:[#allocation2 + $0x80] sm:$0x1]  ;;  %v3736_v49 = vshrl.u32 %v3498_v63, 16  ;;  %7985 = vmatpush3.bf16.msra.mxu1 %v8589_v20  ;;  %v8606_v62 = vld [vmem:[%s10754_s3 + $0xb0] sm:$0xff]  }
 0x1bb   : > { %7954 = vmatprep.mubr.bf16.mxu1 %v7162_v60  ;;  %v3710_v8 = vsel %vm8971_vm9, %v3705_v12, %v3709_v19  ;;  %v3718_v61 = vor.u32 %v3717_v6, %v3714_v9  ;;  %v3739_v59 = vshll.u32 %v3498_v63, 16  ;;  %v3733_v17 = vrot.slane %v3731_v11, 5  ;;  %v3501_v24 = vld [vmem:[#allocation2 + $0x84] sm:$0xf]  ;;  %7986 = vmatprep.subr.bf16.mxu1 %v8594_v46  ;;  %v8599_v19 = vld [vmem:[%s10754_s3 + $0x178] sm:$0xff]  }
 0x1bc   : > { %v7163_v7 = vcombine.low %v3700_v33, %v3710_v8  ;;  %v3728_v58 = vor.u32 %v3727_v56, %v3723_v37  ;;  %v3745_v21 = vshll.u32 %v9558_v13, 16  ;;  %7840 = vmatprep.subr.bf16.mxu0 %v8603_v22  ;;  %v3738_v48 = vrot.slane %v3736_v49, 4  ;;  %v9576_v60 = vld [vmem:[#allocation2 + $0x88] sm:$0xf] }
 0x1bd   : > { %v3719_v9 = vrot.slane %v3718_v61, 4  ;;  %v3741_v63 = vrot.slane %v3739_v59, 5  ;;  %v3749_v20 = vshrl.u32 %v9558_v13, 16  ;;  %v3755_v33 = vshll.u32 %v9566_v36, 16  ;;  %v9583_v61 = vld [vmem:[#allocation2 + $0x8c] sm:$0x1] }
 0x1be   : > { %7955 = vmatmul.mubr.bf16.gmra.mrb[28].mxu1 %v7163_v7  ;;  %v3729_v12 = vrot.slane %v3728_v58, 4  ;;  %v3747_v6 = vrot.slane %v3745_v21, 5  ;;  %v7028_v56 = vcombine.low %v9304_v41, %v9306_v15  ;;  %7841 = vmatpush3.bf16.msra.mxu0 %v8603_v22  ;;  %v3760_v49 = vshrl.u32 %v3501_v24, 16  ;;  %v3504_v59 = vld [vmem:[#allocation2 + $0x90] sm:$0xf]  ;;  %v9591_v15 = vld [vmem:[%s10754_s3 + $0x180] sm:$0xff]  }
 0x1bf   : > { %v3724_v11 = vsel %vm8971_vm9, %v3719_v9, %v3723_v37  ;;  %v3742_v30 = vor.u32 %v3741_v63, %v3738_v48  ;;  %v3751_v8 = vrot.slane %v3749_v20, 4  ;;  %7987 = vmatpush3.bf16.msra.mxu1 %v8594_v46  ;;  %7842 = vmatprep.subr.bf16.mxu0 %v8606_v62  ;;  %v3757_v58 = vrot.slane %v3755_v33, 5  ;;  %v8607_v22 = vld [vmem:[%s10754_s3 + $0xb8] sm:$0xff]   ;;  %v9598_v20 = vld [vmem:[#allocation2 + $0x94] sm:$0xf] }
 0x1c0   : > { %v3734_v7 = vsel %vm8971_vm9, %v3729_v12, %v3733_v17  ;;  %7811 = vmatmul.mubr.bf16.gmra.mrb[44].mxu0 %v7027_v50  ;;  %v3763_v21 = vshll.u32 %v3501_v24, 16  ;;  %v3769_v41 = vshll.u32 %v9576_v60, 16  ;;  %7988 = vmatprep.subr.bf16.mxu1 %v8599_v19  ;;  %v3762_v17 = vrot.slane %v3760_v49, 4 }
 0x1c1   : > { %v7164_v46 = vcombine.low %v3724_v11, %v3734_v7  ;;  %v3743_v37 = vrot.slane %v3742_v30, 4  ;;  %v3752_v9 = vor.u32 %v3751_v8, %v3747_v6  ;;  %7814 = vmatprep.mubr.bf16.mxu0 %v7028_v56  ;;  %v3773_v24 = vshrl.u32 %v9576_v60, 16  ;;  %v9604_v7 = vld [vmem:[#allocation2 + $0x98] sm:$0x1] }
 0x1c2   : > { %v3765_v50 = vrot.slane %v3763_v21, 5  ;;  %v3771_v48 = vrot.slane %v3769_v41, 5  ;;  %v3779_v63 = vshll.u32 %v9583_v61, 16  ;;  %7843 = vmatpush3.bf16.msra.mxu0 %v8606_v62  ;;  %v7029_v11 = vcombine.low %v9317_v57, %v9322_v3  ;;  %v3507_v57 = vld [vmem:[#allocation2 + $0x9c] sm:$0xf] }
 0x1c3   : > { %7958 = vmatprep.mubr.bf16.mxu1 %v7164_v46  ;;  %v3748_v12 = vsel %vm8971_vm9, %v3743_v37, %v3747_v6  ;;  %v3753_v33 = vrot.slane %v3752_v9, 4  ;;  %v3784_v30 = vshrl.u32 %v3504_v59, 16  ;;  %7989 = vmatpush3.bf16.msra.mxu1 %v8599_v19  ;;  %v3775_v8 = vrot.slane %v3773_v24, 4 }
 0x1c4   : > { %v3766_v56 = vor.u32 %v3765_v50, %v3762_v17  ;;  %v3781_v49 = vrot.slane %v3779_v63, 5  ;;  %v3787_v21 = vshll.u32 %v3504_v59, 16  ;;  %8022 = vmatprep.subr.bf16.mxu1 %v9591_v15  ;;  %7844 = vmatprep.subr.bf16.mxu0 %v8607_v22  ;;  %v3793_v6 = vshll.u32 %v9598_v20, 16  ;;  %v9611_v17 = vld [vmem:[#allocation2 + $0xa0] sm:$0xf] }
 0x1c5   : > { %v3758_v62 = vsel %vm8971_vm9, %v3753_v33, %v3757_v58  ;;  %v3786_v41 = vrot.slane %v3784_v30, 4  ;;  %v3797_v46 = vshrl.u32 %v9598_v20, 16  ;;  %v3776_v37 = vor.u32 %v3775_v8, %v3771_v48  ;;  %v9619_v63 = vld [vmem:[%s10754_s3 + $0xc0] sm:$0xff]  }
 0x1c6   : > { %v7165_v3 = vcombine.low %v3748_v12, %v3758_v62  ;;  %v3767_v19 = vrot.slane %v3766_v56, 4  ;;  %v3789_v9 = vrot.slane %v3787_v21, 5  ;;  %7845 = vmatpush3.bf16.msra.mxu0 %v8607_v22  ;;  %v3795_v59 = vrot.slane %v3793_v6, 5  ;;  %v9624_v21 = vld [vmem:[#allocation2 + $0xa4] sm:$0x1] }
 0x1c7   : > { %v3799_v50 = vrot.slane %v3797_v46, 4  ;;  %v3803_v24 = vshll.u32 %v9604_v7, 16  ;;  %v7030_v58 = vcombine.low %v9324_v55, %v9333_v25  ;;  %7878 = vmatprep.subr.bf16.mxu0 %v9619_v63  ;;  %v3777_v33 = vrot.slane %v3776_v37, 4  ;;  %10802 = vst [vmem:[#allocation12_spill] sm:$0xff] %v9624_v21 }
 0x1c8   : > { %7959 = vmatmul.mubr.bf16.gmra.mrb[0].mxu1 %v7165_v3  ;;  %v3772_v12 = vsel %vm8971_vm9, %v3767_v19, %v3771_v48  ;;  %7815 = vmatmul.mubr.bf16.gmra.mrb[48].mxu0 %v7029_v11  ;;  %v3790_v22 = vor.u32 %v3789_v9, %v3786_v41  ;;  %v3808_v30 = vshrl.u32 %v3507_v57, 16  ;;  %v3811_v55 = vshll.u32 %v3507_v57, 16  ;;  %v3510_v48 = vld [vmem:[#allocation2 + $0xa8] sm:$0xf]  ;;  %v9630_v9 = vld [vmem:[#allocation2 + $0xac] sm:$0xf] }
 0x1c9   : > { %v3800_v56 = vor.u32 %v3799_v50, %v3795_v59  ;;  %v3805_v8 = vrot.slane %v3803_v24, 5  ;;  %7818 = vmatprep.mubr.bf16.mxu0 %v7030_v58  ;;  %v3817_v25 = vshll.u32 %v9611_v17, 16  ;;  %v3782_v62 = vsel %vm8971_vm9, %v3777_v33, %v3781_v49 }
 0x1ca   : > { %v3791_v6 = vrot.slane %v3790_v22, 4  ;;  %v3810_v46 = vrot.slane %v3808_v30, 4  ;;  %v3821_v3 = vshrl.u32 %v9611_v17, 16  ;;  %v7166_v19 = vcombine.low %v3772_v12, %v3782_v62  ;;  %v9639_v12 = vld [vmem:[#allocation2 + $0xb0] sm:$0x1] }
 0x1cb   : > { %v3801_v11 = vrot.slane %v3800_v56, 4  ;;  %v3813_v41 = vrot.slane %v3811_v55, 5  ;;  %v3819_v37 = vrot.slane %v3817_v25, 5  ;;  %v3827_v24 = vshll.u32 %v9624_v21, 16  ;;  %v3513_v62 = vld [vmem:[#allocation2 + $0xb4] sm:$0xf] }
 0x1cc   : > { %v3796_v50 = vsel %vm8971_vm9, %v3791_v6, %v3795_v59  ;;  %v3823_v57 = vrot.slane %v3821_v3, 4  ;;  %v7031_v49 = vcombine.low %v9341_v43, %v9346_v1  ;;  %7962 = vmatprep.mubr.bf16.mxu1 %v7166_v19  ;;  %v3832_v22 = vshrl.u32 %v3510_v48, 16  ;;  %v9643_v1 = vld [vmem:[#allocation2 + $0xb8] sm:$0xf] }
 0x1cd   : > { %v3806_v58 = vsel %vm8971_vm9, %v3801_v11, %v3805_v8  ;;  %v3814_v33 = vor.u32 %v3813_v41, %v3810_v46  ;;  %v3835_v30 = vshll.u32 %v3510_v48, 16  ;;  %v3829_v25 = vrot.slane %v3827_v24, 5 }
 0x1ce   : > { %v7167_v56 = vcombine.low %v3796_v50, %v3806_v58  ;;  %v3824_v55 = vor.u32 %v3823_v57, %v3819_v37  ;;  %v3841_v59 = vshll.u32 %v9630_v9, 16  ;;  %v3834_v3 = vrot.slane %v3832_v22, 4  ;;  %v9652_v58 = vld [vmem:[#allocation2 + $0xbc] sm:$0x1]  ;;  %v3516_v22 = vld [vmem:[#allocation2 + $0xc0] sm:$0xf] }
 0x1cf   : > { %v3815_v6 = vrot.slane %v3814_v33, 4  ;;  %v3837_v21 = vrot.slane %v3835_v30, 5  ;;  %v3845_v43 = vshrl.u32 %v9630_v9, 16  ;;  %v3851_v19 = vshll.u32 %v9639_v12, 16 }
 0x1d0   : > { %7963 = vmatmul.mubr.bf16.gmra.mrb[4].mxu1 %v7167_v56  ;;  %v3825_v8 = vrot.slane %v3824_v55, 4  ;;  %7819 = vmatmul.mubr.bf16.gmra.mrb[52].mxu0 %v7031_v49  ;;  %v3843_v46 = vrot.slane %v3841_v59, 5  ;;  %v7032_v48 = vcombine.low %v9353_v4, %v9358_v16  ;;  %v3856_v50 = vshrl.u32 %v3513_v62, 16 }
 0x1d1   : > { %v3838_v11 = vor.u32 %v3837_v21, %v3834_v3  ;;  %v3847_v41 = vrot.slane %v3845_v43, 4  ;;  %v3820_v57 = vsel %vm8971_vm9, %v3815_v6, %v3819_v37  ;;  %v3859_v33 = vshll.u32 %v3513_v62, 16  ;;  %v9656_v37 = vld [vmem:[#allocation2 + $0xc4] sm:$0xf] }
 0x1d2   : > { %v3830_v24 = vsel %vm8971_vm9, %v3825_v8, %v3829_v25  ;;  %7822 = vmatprep.mubr.bf16.mxu0 %v7032_v48  ;;  %v3865_v49 = vshll.u32 %v9643_v1, 16  ;;  %v3858_v4 = vrot.slane %v3856_v50, 4  ;;  %v3853_v16 = vrot.slane %v3851_v19, 5  ;;  %v9663_v19 = vld [vmem:[#allocation2 + $0xc8] sm:$0x1] }
 0x1d3   : > { %v7168_v30 = vcombine.low %v3820_v57, %v3830_v24  ;;  %v3839_v56 = vrot.slane %v3838_v11, 4  ;;  %v3848_v55 = vor.u32 %v3847_v41, %v3843_v46  ;;  %v3861_v21 = vrot.slane %v3859_v33, 5 }
 0x1d4   : > { %v3867_v59 = vrot.slane %v3865_v49, 5  ;;  %v3869_v3 = vshrl.u32 %v9643_v1, 16  ;;  %v3875_v62 = vshll.u32 %v9652_v58, 16  ;;  %v3880_v43 = vshrl.u32 %v3516_v22, 16 }
 0x1d5   : > { %7966 = vmatprep.mubr.bf16.mxu1 %v7168_v30  ;;  %v3844_v25 = vsel %vm8971_vm9, %v3839_v56, %v3843_v46  ;;  %v3849_v6 = vrot.slane %v3848_v55, 4  ;;  %v3862_v8 = vor.u32 %v3861_v21, %v3858_v4  ;;  %v7033_v11 = vcombine.low %v9366_v14, %v9370_v26 }
 0x1d6   : > { %v3871_v48 = vrot.slane %v3869_v3, 4  ;;  %v3883_v41 = vshll.u32 %v3516_v22, 16  ;;  %v3882_v57 = vrot.slane %v3880_v43, 4  ;;  %v3889_v24 = vshll.u32 %v9656_v37, 16  ;;  %v4225_v3 = vld [vmem:[#allocation2 + $0xc] sm:$0xe] }
 0x1d7   : > { %v3854_v50 = vsel %vm8971_vm9, %v3849_v6, %v3853_v16  ;;  %v3893_v46 = vshrl.u32 %v9656_v37, 16  ;;  %v3863_v49 = vrot.slane %v3862_v8, 4  ;;  %v3899_v14 = vshll.u32 %v9663_v19, 16 }
 0x1d8   : > { %v7169_v33 = vcombine.low %v3844_v25, %v3854_v50  ;;  %v3872_v30 = vor.u32 %v3871_v48, %v3867_v59  ;;  %7823 = vmatmul.mubr.bf16.gmra.mrb[56].mxu0 %v7033_v11  ;;  %v3885_v56 = vrot.slane %v3883_v41, 5  ;;  %v3891_v55 = vrot.slane %v3889_v24, 5  ;;  %v4226_v50 = vld [vmem:[#allocation2 + $0x18] sm:$0xe] }
 0x1d9   : > { %v3895_v4 = vrot.slane %v3893_v46, 4  ;;  %v7034_v26 = vcombine.low %v9373_v47, %v9379_v54  ;;  %v3877_v16 = vrot.slane %v3875_v62, 5  ;;  %v3868_v25 = vsel %vm8971_vm9, %v3863_v49, %v3867_v59 }
 0x1da   : > { %7967 = vmatmul.mubr.bf16.gmra.mrb[8].mxu1 %v7169_v33  ;;  %v3873_v22 = vrot.slane %v3872_v30, 4  ;;  %v3886_v21 = vor.u32 %v3885_v56, %v3882_v57  ;;  %v4291_v47 = vrot.slane %v9391_v28, 5  ;;  %v3901_v11 = vrot.slane %v3899_v14, 5  ;;  %v4227_v33 = vld [vmem:[#allocation2 + $0x24] sm:$0xe] }
 0x1db   : > { %v3896_v6 = vor.u32 %v3895_v4, %v3891_v55  ;;  %7826 = vmatprep.mubr.bf16.mxu0 %v7034_v26  ;;  %v7180_v41 = vrot.slane %v4225_v3, 9  ;;  %v4294_v24 = vrot.slane %v9394_v31, 5  ;;  %v7035_v59 = vcombine.low %v9399_v45, %v9401_v52  ;;  %v2600_v4 = vld [vmem:[#allocation2] sm:$0xe] }
 0x1dc   : > { %v3878_v43 = vsel %vm8971_vm9, %v3873_v22, %v3877_v16  ;;  %v3887_v8 = vrot.slane %v3886_v21, 4  ;;  %v4293_v57 = vrot.slane %v4291_v47, 4  ;;  %v4298_v46 = vrot.slane %v9413_v27, 5  ;;  %v2601_v16 = vld [vmem:[#allocation2 + $0xc] sm:$0xe] }
 0x1dd   : > { %v7170_v54 = vcombine.low %v3868_v25, %v3878_v43  ;;  %v3897_v62 = vrot.slane %v3896_v6, 4  ;;  %v4292_v30 = vsel %vm9676_vm14, %v7180_v41, %v4291_v47  ;;  %v4305_v56 = vrot.slane %v9421_v51, 5  ;;  %v8696_v6 = vld [vmem:[#allocation2 + $0x8] sm:$0x1] }
 0x1de   : > { %v3892_v49 = vsel %vm8971_vm9, %v3887_v8, %v3891_v55  ;;  %v4295_v45 = vsel %vm9676_vm14, %v4293_v57, %v4294_v24  ;;  %v4300_v52 = vrot.slane %v4298_v46, 4  ;;  %v4301_v27 = vrot.slane %v9417_v29, 5  ;;  %v8697_v24 = vld [vmem:[#allocation2 + $0x14] sm:$0x1] }
 0x1df   : > { %7970 = vmatprep.mubr.bf16.mxu1 %v7170_v54  ;;  %v3902_v28 = vsel %vm8971_vm9, %v3897_v62, %v3901_v11  ;;  %v7212_v14 = vcombine.low %v4292_v30, %v4295_v45  ;;  %v7181_v26 = vrot.slane %v4226_v50, 9  ;;  %v7182_v55 = vrot.slane %v4227_v33, 9  ;;  %v4228_v54 = vld [vmem:[#allocation2 + $0x30] sm:$0xe]  ;;  %v2602_v33 = vld [vmem:[#allocation2 + $0x18] sm:$0xe] }
 0x1e0   : > { %v7171_v31 = vcombine.low %v3892_v49, %v3902_v28  ;;  %7827 = vmatmul.mubr.bf16.gmra.mrb[60].mxu0 %v7035_v59  ;;  %v4307_v22 = vrot.slane %v4305_v56, 4  ;;  %v4302_v21 = vsel %vm9676_vm14, %v4300_v52, %v4301_v27  ;;  %v7044_v3 = vrot.slane %v2600_v4, 9  ;;  %v4229_v45 = vld [vmem:[#allocation2 + $0x3c] sm:$0xe] }
 0x1e1   : > { %v2653_v51 = vrot.slane %v9441_v53, 5  ;;  %v2656_v25 = vrot.slane %v8696_v6, 5  ;;  %v4299_v43 = vsel %vm9676_vm14, %v7181_v26, %v4298_v46  ;;  %v4306_v29 = vsel %vm9676_vm14, %v7182_v55, %v4305_v56  ;;  %v8698_v26 = vld [vmem:[#allocation2 + $0x20] sm:$0x1] }
 0x1e2   : > { %7971 = vmatmul.mubr.bf16.gmra.mrb[12].mxu1 %v7171_v31  ;;  %v4308_v8 = vrot.slane %v9428_v5, 5  ;;  %v2660_v47 = vrot.slane %v9451_v0, 5  ;;  %v7213_v62 = vcombine.low %v4299_v43, %v4302_v21  ;;  %v7045_v53 = vrot.slane %v2601_v16, 9 }
 0x1e3   : > { %7990 = vmatprep.mubr.bf16.mxu1 %v7212_v14  ;;  %v2654_v11 = vsel %vm9676_vm14, %v7044_v3, %v2653_v51  ;;  %v2655_v41 = vrot.slane %v2653_v51, 4  ;;  %v2663_v59 = vrot.slane %v8697_v24, 5  ;;  %v4312_v46 = vrot.slane %v9437_v35, 5  ;;  %v8608_v35 = vld [vmem:[%s10754_s3 + $0x188] sm:$0xff]   ;;  %v10805_v24 = vld [vmem:[#allocation7_spill] sm:$0xff] }
 0x1e4   : > { %v4309_v50 = vsel %vm9676_vm14, %v4307_v22, %v4308_v8  ;;  %v2662_v57 = vrot.slane %v2660_v47, 4  ;;  %v2661_v0 = vsel %vm9676_vm14, %v7045_v53, %v2660_v47  ;;  %v7183_v49 = vrot.slane %v4228_v54, 9  ;;  %v2603_v22 = vld [vmem:[#allocation2 + $0x24] sm:$0xe] }
 0x1e5   : > { %v2657_v5 = vsel %vm9676_vm14, %v2655_v41, %v2656_v25  ;;  %v2667_v28 = vrot.slane %v9461_v34, 5  ;;  %v4314_v4 = vrot.slane %v4312_v46, 4  ;;  %v4315_v31 = vrot.slane %v9439_v40, 5  ;;  %v8699_v41 = vld [vmem:[#allocation2 + $0x2c] sm:$0x1] }
 0x1e6   : > { %v7076_v30 = vcombine.low %v2654_v11, %v2657_v5  ;;  %v2664_v56 = vsel %vm9676_vm14, %v2662_v57, %v2663_v59  ;;  %v7046_v27 = vrot.slane %v2602_v33, 9  ;;  %v2670_v55 = vrot.slane %v8698_v26, 5  ;;  %v10806_v5 = vld [vmem:[#allocation6_spill] sm:$0xff] }
 0x1e7   : > { %v7077_v52 = vcombine.low %v2661_v0, %v2664_v56  ;;  %v2669_v14 = vrot.slane %v2667_v28, 4  ;;  %v7214_v16 = vcombine.low %v4306_v29, %v4309_v50  ;;  %v4313_v34 = vsel %vm9676_vm14, %v7183_v49, %v4312_v46  ;;  %v2604_v50 = vld [vmem:[#allocation2 + $0x30] sm:$0xe]  ;;  %v8700_v46 = vld [vmem:[%s10754_s3 + $0xc8] sm:$0xff]   ;;  %v4231_v49 = vld [vmem:[#allocation2 + $0x54] sm:$0xe] }
 0x1e8   : > { %7846 = vmatprep.mubr.bf16.mxu0 %v7076_v30  ;;  %v4316_v21 = vsel %vm9676_vm14, %v4314_v4, %v4315_v31  ;;  %v4319_v40 = vrot.slane %v9454_v10, 5  ;;  %v2668_v3 = vsel %vm9676_vm14, %v7046_v27, %v2667_v28  ;;  %v7184_v6 = vrot.slane %v4229_v45, 9  ;;  %v4230_v10 = vld [vmem:[#allocation2 + $0x48] sm:$0xe]  ;;  %v8701_v4 = vld [vmem:[#allocation2 + $0x38] sm:$0x1] }
 0x1e9   : > { %7847 = vmatmul.mubr.bf16.vlgmr.msra.gmra.mrb[32].mxu0 %v7077_v52  ;;  %v2671_v51 = vsel %vm9676_vm14, %v2669_v14, %v2670_v55  ;;  %v2674_v25 = vrot.slane %v9480_v23, 5  ;;  %v4322_v8 = vrot.slane %v9464_v39, 5  ;;  %v7047_v47 = vrot.slane %v2603_v22, 9  ;;  %v2605_v45 = vld [vmem:[#allocation2 + $0x3c] sm:$0xe] }
 0x1ea   : > { %7991 = vmatmul.mubr.bf16.vlgmr.msra.gmra.mrb[16].mxu1 %v7213_v62  ;;  %v7078_v43 = vcombine.low %v2668_v3, %v2671_v51  ;;  %v4321_v29 = vrot.slane %v4319_v40, 4  ;;  %v7215_v54 = vcombine.low %v4313_v34, %v4316_v21  ;;  %v8609_v62 = vld [vmem:[%s10754_s3 + $0x190] sm:$0xff]   ;;  %v2677_v53 = vrot.slane %v8699_v41, 5  ;;  %7879 = vmatpush3.bf16.msra.mxu0 %v9619_v63  ;;  %v10808_v51 = vld [vmem:[#allocation8_spill] sm:$0xff] }
 0x1eb   : > { %8023 = vmatpush3.bf16.msra.mxu1 %v9591_v15  ;;  %7994 = vmatprep.mubr.bf16.mxu1 %v7214_v16  ;;  %v2676_v11 = vrot.slane %v2674_v25, 4  ;;  %v4326_v23 = vrot.slane %v9474_v18, 5  ;;  %v4320_v39 = vsel %vm9676_vm14, %v7184_v6, %v4319_v40  ;;  %v2675_v57 = vsel %vm9676_vm14, %v7047_v47, %v2674_v25  ;;  %v10807_v34 = vld [vmem:[#allocation10_spill] sm:$0xff]  ;;  %v8703_v47 = vld [vmem:[#allocation2 + $0x44] sm:$0x1] }
 0x1ec   : > { %8024 = vmatprep.subr.bf16.mxu1 %v8608_v35  ;;  %7850 = vmatprep.mubr.bf16.mxu0 %v7078_v43  ;;  %v4323_v15 = vsel %vm9676_vm14, %v4321_v29, %v4322_v8  ;;  %v2681_v59 = vrot.slane %v10805_v24, 5  ;;  %v7185_v63 = vrot.slane %v4230_v10, 9  ;;  %v4329_v0 = vrot.slane %v10806_v5, 5  ;;  %v8702_v40 = vld [vmem:[%s10754_s3 + $0xd0] sm:$0xff]   ;;  %v4232_v43 = vld [vmem:[#allocation2 + $0x60] sm:$0xe] }
 0x1ed   : > { %7880 = vmatprep.subr.bf16.mxu0 %v8700_v46  ;;  %v2678_v18 = vsel %vm9676_vm14, %v2676_v11, %v2677_v53  ;;  %v4328_v33 = vrot.slane %v4326_v23, 4  ;;  %v7216_v28 = vcombine.low %v4320_v39, %v4323_v15  ;;  %v7048_v30 = vrot.slane %v2604_v50, 9  ;;  %v10809_v11 = vld [vmem:[#allocation9_spill] sm:$0xff]  ;;  %v8704_v5 = vld [vmem:[#allocation2 + $0x50] sm:$0x1] }
 0x1ee   : > { %v2683_v56 = vrot.slane %v2681_v59, 4  ;;  %v2684_v31 = vrot.slane %v8701_v4, 5  ;;  %v7079_v52 = vcombine.low %v2675_v57, %v2678_v18  ;;  %v9752_v27 = vsel %vm9676_vm14, %v7185_v63, %v4326_v23  ;;  %7881 = vmatpush3.bf16.msra.mxu0 %v8700_v46  ;;  %v2606_v53 = vld [vmem:[#allocation2 + $0x48] sm:$0xe] }
 0x1ef   : > { %8025 = vmatpush3.bf16.msra.mxu1 %v8608_v35  ;;  %v9756_v14 = vsel %vm9676_vm14, %v4328_v33, %v4329_v0  ;;  %v4333_v26 = vrot.slane %v9495_v2, 5  ;;  %v8610_v35 = vld [vmem:[%s10754_s3 + $0x198] sm:$0xff]   ;;  %v2682_v55 = vsel %vm9676_vm14, %v7048_v30, %v2681_v59  ;;  %v7186_v16 = vrot.slane %v4231_v49, 9  ;;  %7882 = vmatprep.subr.bf16.mxu0 %v8702_v40  ;;  %v4233_v49 = vld [vmem:[#allocation2 + $0x6c] sm:$0xe] }
 0x1f0   : > { %8026 = vmatprep.subr.bf16.mxu1 %v8609_v62  ;;  %v2685_v22 = vsel %vm9676_vm14, %v2683_v56, %v2684_v31  ;;  %v2688_v21 = vrot.slane %v10807_v34, 5  ;;  %v4336_v6 = vrot.slane %v10808_v51, 5  ;;  %v7049_v25 = vrot.slane %v2605_v45, 9  ;;  %v10810_v59 = vld [vmem:[#allocation11_spill] sm:$0xff]  ;;  %v2607_v31 = vld [vmem:[#allocation2 + $0x54] sm:$0xe] }
 0x1f1   : > { %7851 = vmatmul.mubr.bf16.gmra.mrb[36].mxu0 %v7079_v52  ;;  %v7080_v2 = vcombine.low %v2682_v55, %v2685_v22  ;;  %v4335_v3 = vrot.slane %v4333_v26, 4  ;;  %v7217_v29 = vcombine.low %v9752_v27, %v9756_v14  ;;  %v2691_v10 = vrot.slane %v8703_v47, 5  ;;  %v8706_v14 = vld [vmem:[#allocation2 + $0x58] sm:$0xf] }
 0x1f2   : > { %7995 = vmatmul.mubr.bf16.gmra.mrb[20].mxu1 %v7215_v54  ;;  %v2690_v8 = vrot.slane %v2688_v21, 4  ;;  %v4340_v41 = vrot.slane %v10809_v11, 5  ;;  %v4334_v54 = vsel %vm9676_vm14, %v7186_v16, %v4333_v26  ;;  %v2689_v50 = vsel %vm9676_vm14, %v7049_v25, %v2688_v21  ;;  %7883 = vmatpush3.bf16.msra.mxu0 %v8702_v40  ;;  %v4234_v55 = vld [vmem:[#allocation2 + $0x78] sm:$0xe] }
 0x1f3   : > { %7998 = vmatprep.mubr.bf16.mxu1 %v7216_v28  ;;  %8027 = vmatpush3.bf16.msra.mxu1 %v8609_v62  ;;  %v4337_v23 = vsel %vm9676_vm14, %v4335_v3, %v4336_v6  ;;  %v2695_v39 = vrot.slane %v9541_v32, 5  ;;  %v8611_v62 = vld [vmem:[%s10754_s3 + $0x1a0] sm:$0xff]   ;;  %v7187_v57 = vrot.slane %v4232_v43, 9  ;;  %v4343_v46 = vrot.slane %v10810_v59, 5  ;;  %v8705_v32 = vld [vmem:[%s10754_s3 + $0xd8] sm:$0xff]   ;;  %v8711_v59 = vld [vmem:[%s10754_s3 + $0xe8] sm:$0xff]  }
 0x1f4   : > { %7854 = vmatprep.mubr.bf16.mxu0 %v7080_v2  ;;  %8028 = vmatprep.subr.bf16.mxu1 %v8610_v35  ;;  %v2692_v15 = vsel %vm9676_vm14, %v2690_v8, %v2691_v10  ;;  %v4342_v24 = vrot.slane %v4340_v41, 4  ;;  %v7218_v18 = vcombine.low %v4334_v54, %v4337_v23  ;;  %v7050_v63 = vrot.slane %v2606_v53, 9  ;;  %v8707_v2 = vld [vmem:[#allocation2 + $0x5c] sm:$0x1]  ;;  %v2608_v43 = vld [vmem:[#allocation2 + $0x60] sm:$0xe] }
 0x1f5   : > { %v2697_v33 = vrot.slane %v2695_v39, 4  ;;  %v2698_v0 = vrot.slane %v8704_v5, 5  ;;  %7884 = vmatprep.subr.bf16.mxu0 %v8705_v32  ;;  %v7081_v28 = vcombine.low %v2689_v50, %v2692_v15  ;;  %v9792_v30 = vsel %vm9676_vm14, %v7187_v57, %v4340_v41  ;;  %v8708_v8 = vld [vmem:[#allocation2 + $0x64] sm:$0xf]  ;;  %v8710_v23 = vld [vmem:[#allocation2 + $0x68] sm:$0x1] }
 0x1f6   : > { %v9796_v56 = vsel %vm9676_vm14, %v4342_v24, %v4343_v46  ;;  %v4347_v4 = vrot.slane %v9535_v42, 5  ;;  %v2696_v52 = vsel %vm9676_vm14, %v7050_v63, %v2695_v39  ;;  %v2702_v26 = vrot.slane %v8706_v14, 5  ;;  %v8612_v42 = vld [vmem:[%s10754_s3 + $0x1a8] sm:$0xff]   ;;  %7885 = vmatpush3.bf16.msra.mxu0 %v8705_v32  ;;  %v4235_v39 = vld [vmem:[#allocation2 + $0x84] sm:$0xe]  ;;  %v8613_v15 = vld [vmem:[%s10754_s3 + $0x1b0] sm:$0xff]  }
 0x1f7   : > { %8029 = vmatpush3.bf16.msra.mxu1 %v8610_v35  ;;  %v7219_v45 = vcombine.low %v9792_v30, %v9796_v56  ;;  %v2699_v27 = vsel %vm9676_vm14, %v2697_v33, %v2698_v0  ;;  %v7188_v16 = vrot.slane %v4233_v49, 9  ;;  %v4350_v35 = vrot.slane %v9546_v44, 5  ;;  %v2609_v33 = vld [vmem:[#allocation2 + $0x6c] sm:$0xe]  ;;  %v8712_v5 = vld [vmem:[#allocation2 + $0x70] sm:$0xf] }
 0x1f8   : > { %8030 = vmatprep.subr.bf16.mxu1 %v8611_v62  ;;  %v7082_v22 = vcombine.low %v2696_v52, %v2699_v27  ;;  %v4349_v34 = vrot.slane %v4347_v4, 4  ;;  %v7051_v21 = vrot.slane %v2607_v31, 9  ;;  %v2704_v40 = vrot.slane %v2702_v26, 4  ;;  %v2610_v14 = vld [vmem:[#allocation2 + $0x78] sm:$0xe] }
 0x1f9   : > { %7855 = vmatmul.mubr.bf16.gmra.mrb[40].mxu0 %v7081_v28  ;;  %v2705_v3 = vrot.slane %v8707_v2, 5  ;;  %v4354_v51 = vrot.slane %v9558_v13, 5  ;;  %v4348_v6 = vsel %vm9676_vm14, %v7188_v16, %v4347_v4  ;;  %v7189_v25 = vrot.slane %v4234_v55, 9  ;;  %v8709_v13 = vld [vmem:[%s10754_s3 + $0xe0] sm:$0xff]   ;;  %v4236_v4 = vld [vmem:[#allocation2 + $0x90] sm:$0xe] }
 0x1fa   : > { %7999 = vmatmul.mubr.bf16.gmra.mrb[24].mxu1 %v7217_v29  ;;  %7858 = vmatprep.mubr.bf16.mxu0 %v7082_v22  ;;  %v4351_v44 = vsel %vm9676_vm14, %v4349_v34, %v4350_v35  ;;  %v2709_v47 = vrot.slane %v8708_v8, 5  ;;  %v4357_v41 = vrot.slane %v9566_v36, 5  ;;  %v2703_v53 = vsel %vm9676_vm14, %v7051_v21, %v2702_v26  ;;  %v8614_v26 = vld [vmem:[%s10754_s3 + $0x1b8] sm:$0xff]   ;;  %v8713_v22 = vld [vmem:[#allocation2 + $0x74] sm:$0x1]  ;;  %v9873_v8 = vld [vmem:[%s10754_s3 + $0x1c0] sm:$0xff]  }
 0x1fb   : > { %8002 = vmatprep.mubr.bf16.mxu1 %v7218_v18  ;;  %v7220_v29 = vcombine.low %v4348_v6, %v4351_v44  ;;  %v2706_v10 = vsel %vm9676_vm14, %v2704_v40, %v2705_v3  ;;  %v4356_v11 = vrot.slane %v4354_v51, 4  ;;  %8031 = vmatpush3.bf16.msra.mxu1 %v8611_v62  ;;  %v2712_v50 = vrot.slane %v8710_v23, 5  ;;  %v8714_v16 = vld [vmem:[#allocation2 + $0x7c] sm:$0xf]  ;;  %v8715_v2 = vld [vmem:[#allocation2 + $0x80] sm:$0x1] }
 0x1fc   : > { %7886 = vmatprep.subr.bf16.mxu0 %v8709_v13  ;;  %v2711_v54 = vrot.slane %v2709_v47, 4  ;;  %8032 = vmatprep.subr.bf16.mxu1 %v8612_v42  ;;  %v9827_v36 = vsel %vm9676_vm14, %v7189_v25, %v4354_v51  ;;  %v7052_v57 = vrot.slane %v2608_v43, 9  ;;  %v4361_v24 = vrot.slane %v9576_v60, 5  ;;  %v4237_v51 = vld [vmem:[#allocation2 + $0x9c] sm:$0xe]  ;;  %v8716_v6 = vld [vmem:[%s10754_s3 + $0xf0] sm:$0xff]  }
 0x1fd   : > { %7887 = vmatpush3.bf16.msra.mxu0 %v8709_v13  ;;  %v9831_v62 = vsel %vm9676_vm14, %v4356_v11, %v4357_v41  ;;  %v7083_v46 = vcombine.low %v2703_v53, %v2706_v10  ;;  %v2716_v0 = vrot.slane %v8712_v5, 5  ;;  %v7190_v32 = vrot.slane %v4235_v39, 9  ;;  %v8717_v11 = vld [vmem:[#allocation2 + $0x88] sm:$0xf]  ;;  %v10811_v23 = vld [vmem:[#allocation12_spill] sm:$0xff] }
 0x1fe   : > { %7888 = vmatprep.subr.bf16.mxu0 %v8711_v59  ;;  %v7221_v18 = vcombine.low %v9827_v36, %v9831_v62  ;;  %v2713_v63 = vsel %vm9676_vm14, %v2711_v54, %v2712_v50  ;;  %v2710_v49 = vsel %vm9676_vm14, %v7052_v57, %v2709_v47  ;;  %v4363_v60 = vrot.slane %v4361_v24, 4  ;;  %v4238_v39 = vld [vmem:[#allocation2 + $0xa8] sm:$0xe]  ;;  %v2612_v5 = vld [vmem:[#allocation2 + $0x90] sm:$0xe] }
 0x1ff   : > { %v4364_v28 = vrot.slane %v9583_v61, 5  ;;  %8033 = vmatpush3.bf16.msra.mxu1 %v8612_v42  ;;  %v7084_v31 = vcombine.low %v2710_v49, %v2713_v63  ;;  %v2718_v52 = vrot.slane %v2716_v0, 4  ;;  %v4368_v27 = vrot.slane %v9598_v20, 5  ;;  %v2611_v63 = vld [vmem:[#allocation2 + $0x84] sm:$0xe] }
 0x200   : > { %8034 = vmatprep.subr.bf16.mxu1 %v8613_v15  ;;  %v4362_v61 = vsel %vm9676_vm14, %v7190_v32, %v4361_v24  ;;  %v2719_v20 = vrot.slane %v8713_v22, 5  ;;  %v2723_v34 = vrot.slane %v8714_v16, 5  ;;  %v7191_v42 = vrot.slane %v4236_v4, 9  ;;  %v8720_v4 = vld [vmem:[#allocation2 + $0x8c] sm:$0x1] }
 0x201   : > { %7889 = vmatpush3.bf16.msra.mxu0 %v8711_v59  ;;  %v4365_v55 = vsel %vm9676_vm14, %v4363_v60, %v4364_v28  ;;  %v4370_v21 = vrot.slane %v4368_v27, 4  ;;  %v4371_v40 = vrot.slane %v9604_v7, 5  ;;  %v7053_v30 = vrot.slane %v2609_v33, 9  ;;  %v8722_v22 = vld [vmem:[#allocation2 + $0xa0] sm:$0xf] }
 0x202   : > { %8003 = vmatmul.mubr.bf16.gmra.mrb[28].mxu1 %v7219_v45  ;;  %7859 = vmatmul.mubr.bf16.gmra.mrb[44].mxu0 %v7083_v46  ;;  %v7222_v35 = vcombine.low %v4362_v61, %v4365_v55  ;;  %v7054_v56 = vrot.slane %v2610_v14, 9  ;;  %v2725_v45 = vrot.slane %v2723_v34, 4  ;;  %v2726_v3 = vrot.slane %v8715_v2, 5 }
 0x203   : > { %8006 = vmatprep.mubr.bf16.mxu1 %v7220_v29  ;;  %7862 = vmatprep.mubr.bf16.mxu0 %v7084_v31  ;;  %v2720_v44 = vsel %vm9676_vm14, %v2718_v52, %v2719_v20  ;;  %v9863_v25 = vsel %vm9676_vm14, %v7191_v42, %v4368_v27  ;;  %v9867_v7 = vsel %vm9676_vm14, %v4370_v21, %v4371_v40  ;;  %v4375_v43 = vrot.slane %v9611_v17, 5  ;;  %v8718_v17 = vld [vmem:[%s10754_s3 + $0xf8] sm:$0xff]  }
 0x204   : > { %8035 = vmatpush3.bf16.msra.mxu1 %v8613_v15  ;;  %7890 = vmatprep.subr.bf16.mxu0 %v8716_v6  ;;  %v2717_v47 = vsel %vm9676_vm14, %v7053_v30, %v2716_v0  ;;  %v7223_v29 = vcombine.low %v9863_v25, %v9867_v7  ;;  %v2727_v10 = vsel %vm9676_vm14, %v2725_v45, %v2726_v3  ;;  %v2730_v41 = vrot.slane %v8717_v11, 5  ;;  %v8719_v0 = vld [vmem:[#allocation2 + $0x94] sm:$0xf]  ;;  %v8721_v27 = vld [vmem:[#allocation2 + $0x98] sm:$0x1] }
 0x205   : > { %8036 = vmatprep.subr.bf16.mxu1 %v8614_v26  ;;  %7891 = vmatpush3.bf16.msra.mxu0 %v8716_v6  ;;  %v2724_v13 = vsel %vm9676_vm14, %v7054_v56, %v2723_v34  ;;  %v7192_v53 = vrot.slane %v4237_v51, 9  ;;  %v4377_v54 = vrot.slane %v4375_v43, 4  ;;  %v4378_v50 = vrot.slane %v10811_v23, 5  ;;  %v4240_v34 = vld [vmem:[#allocation2 + $0xc0] sm:$0xe] }
 0x206   : > { %7892 = vmatprep.subr.bf16.mxu0 %v8718_v17  ;;  %v7085_v15 = vcombine.low %v2717_v47, %v2720_v44  ;;  %v7086_v57 = vcombine.low %v2724_v13, %v2727_v10  ;;  %v4382_v24 = vrot.slane %v9630_v9, 5  ;;  %v2732_v33 = vrot.slane %v2730_v41, 4  ;;  %v8723_v56 = vld [vmem:[#allocation2 + $0xac] sm:$0xf]  ;;  %v2613_v25 = vld [vmem:[#allocation2 + $0x9c] sm:$0xe] }
 0x207   : > { %v4376_v59 = vsel %vm9676_vm14, %v7192_v53, %v4375_v43  ;;  %v4379_v46 = vsel %vm9676_vm14, %v4377_v54, %v4378_v50  ;;  %v2737_v49 = vrot.slane %v8719_v0, 5  ;;  %v7193_v32 = vrot.slane %v4238_v39, 9  ;;  %v377_v44 = vld [vmem:[#allocation2 + $0xcc] sm:$0x1]  ;;  %v4239_v43 = vld [vmem:[#allocation2 + $0xb4] sm:$0xe] }
 0x208   : > { %8037 = vmatpush3.bf16.msra.mxu1 %v8614_v26  ;;  %v7224_v9 = vcombine.low %v4376_v59, %v4379_v46  ;;  %v4384_v60 = vrot.slane %v4382_v24, 4  ;;  %v4385_v28 = vrot.slane %v9639_v12, 5  ;;  %v2733_v31 = vrot.slane %v8720_v4, 5  ;;  %v8724_v47 = vld [vmem:[#allocation2 + $0xa4] sm:$0x1] }
 0x209   : > { %8070 = vmatprep.subr.bf16.mxu1 %v9873_v8  ;;  %7893 = vmatpush3.bf16.msra.mxu0 %v8718_v17  ;;  %v2739_v52 = vrot.slane %v2737_v49, 4  ;;  %v2740_v14 = vrot.slane %v8721_v27, 5  ;;  %v7055_v26 = vrot.slane %v2611_v63, 9  ;;  %v4383_v61 = vsel %vm9676_vm14, %v7193_v32, %v4382_v24  ;;  %v8726_v39 = vld [vmem:[#allocation2 + $0xb8] sm:$0xf] }
 0x20a   : > { %8007 = vmatmul.mubr.bf16.gmra.mrb[0].mxu1 %v7221_v18  ;;  %7863 = vmatmul.mubr.bf16.gmra.mrb[48].mxu0 %v7085_v15  ;;  %v4386_v36 = vsel %vm9676_vm14, %v4384_v60, %v4385_v28  ;;  %v7056_v62 = vrot.slane %v2612_v5, 9  ;;  %v2734_v18 = vsel %vm9676_vm14, %v2732_v33, %v2733_v31  ;;  %v2744_v20 = vrot.slane %v8722_v22, 5  ;;  %v2615_v32 = vld [vmem:[#allocation2 + $0xb4] sm:$0xe]  ;;  %v8727_v60 = vld [vmem:[#allocation2 + $0xbc] sm:$0x1] }
 0x20b   : > { %8010 = vmatprep.mubr.bf16.mxu1 %v7222_v35  ;;  %7866 = vmatprep.mubr.bf16.mxu0 %v7086_v57  ;;  %v7225_v55 = vcombine.low %v4383_v61, %v4386_v36  ;;  %v2741_v12 = vsel %vm9676_vm14, %v2739_v52, %v2740_v14  ;;  %v4389_v16 = vrot.slane %v9643_v1, 5  ;;  %v2731_v35 = vsel %vm9676_vm14, %v7055_v26, %v2730_v41  ;;  %v2614_v41 = vld [vmem:[#allocation2 + $0xa8] sm:$0xe]  ;;  %v8615_v36 = vld [vmem:[#allocation2 + $0x18] sm:$0xff]   ;;  %v8619_v22 = vld [vmem:[#allocation2 + $0x30] sm:$0xff]  }
 0x20c   : > { %v2738_v42 = vsel %vm9676_vm14, %v7056_v62, %v2737_v49  ;;  %v4396_v21 = vrot.slane %v9656_v37, 5  ;;  %v7087_v40 = vcombine.low %v2731_v35, %v2734_v18  ;;  %v2751_v45 = vrot.slane %v8723_v56, 5  ;;  %v8618_v62 = vld [vmem:[#allocation2 + $0xc] sm:$0xff]   ;;  %v8617_v18 = vld [vmem:[#allocation2 + $0x24] sm:$0xff]   ;;  %v5110_v35 = vld [vmem:[#allocation2 + $0x18] sm:$0xf] }
 0x20d   : > { %v7088_v30 = vcombine.low %v2738_v42, %v2741_v12  ;;  %v2746_v2 = vrot.slane %v2744_v20, 4  ;;  %v7195_v3 = vrot.slane %v4240_v34, 9  ;;  %v4399_v6 = vrot.slane %v9663_v19, 5  ;;  %v8621_v12 = vld [vmem:[#allocation2 + $0x18] sm:$0xff]   ;;  %v8625_v34 = vld [vmem:[%s10754_s3 + $0x1d0] sm:$0xff]  }
 0x20e   : > { %v4398_v51 = vrot.slane %v4396_v21, 4  ;;  %v4391_v1 = vrot.slane %v4389_v16, 4  ;;  %v2753_v7 = vrot.slane %v2751_v45, 4  ;;  %v2747_v37 = vrot.slane %v8724_v47, 5  ;;  %v8626_v56 = vld [vmem:[#allocation2 + $0x30] sm:$0xff]  }
 0x20f   : > { %v4397_v10 = vsel %vm9676_vm14, %v7195_v3, %v4396_v21  ;;  %v4392_v19 = vrot.slane %v9652_v58, 5  ;;  %v378_v54 = vsel %vm8855_vm2, 0, %v377_v44  ;;  %v7057_v23 = vrot.slane %v2613_v25, 9  ;;  %v8624_v3 = vld [vmem:[#allocation2 + $0x48] sm:$0xff]  }
 0x210   : > { %v4400_v11 = vsel %vm9676_vm14, %v4398_v51, %v4399_v6  ;;  %v2748_v50 = vsel %vm9676_vm14, %v2746_v2, %v2747_v37  ;;  %v2758_v15 = vrot.slane %v8726_v39, 5  ;;  %379 = vst [vmem:[#allocation2 + $0xcc] sm:$0x1] %v378_v54  ;;  %v7194_v57 = vrot.slane %v4239_v43, 9  ;;  %v8628_v51 = vld [vmem:[#allocation2 + $0x3c] sm:$0xff]   ;;  %v8627_v54 = vld [vmem:[#allocation2 + $0x54] sm:$0xff]  }
 0x211   : > { %v7227_v17 = vcombine.low %v4397_v10, %v4400_v11  ;;  %v4393_v24 = vsel %vm9676_vm14, %v4391_v1, %v4392_v19  ;;  %v7058_v59 = vrot.slane %v2614_v41, 9  ;;  %v2745_v46 = vsel %vm9676_vm14, %v7057_v23, %v2744_v20  ;;  %v8623_v20 = vld [vmem:[#allocation2 + $0x24] sm:$0xff]   ;;  %v9952_v10 = vld [vmem:[#allocation2 + $0x20] sm:$0x1] }
 0x212   : > { %8011 = vmatmul.mubr.bf16.gmra.mrb[4].mxu1 %v7223_v29  ;;  %7867 = vmatmul.mubr.bf16.gmra.mrb[52].mxu0 %v7087_v40  ;;  %v8725_v29 = vld [vmem:[#allocation2 + $0xb0] sm:$0x1]  ;;  %v4390_v63 = vsel %vm9676_vm14, %v7194_v57, %v4389_v16  ;;  %v7089_v33 = vcombine.low %v2745_v46, %v2748_v50  ;;  %v2761_v28 = vrot.slane %v8727_v60, 5  ;;  %v7059_v31 = vrot.slane %v2615_v32, 9  ;;  %v5111_v16 = vld [vmem:[#allocation2 + $0x1c] sm:$0xf] }
 0x213   : > { %8014 = vmatprep.mubr.bf16.mxu1 %v7224_v9  ;;  %7870 = vmatprep.mubr.bf16.mxu0 %v7088_v30  ;;  %v2754_v13 = vrot.slane %v8725_v29, 5  ;;  %v2752_v5 = vsel %vm9676_vm14, %v7058_v59, %v2751_v45  ;;  %v7226_v0 = vcombine.low %v4390_v63, %v4393_v24  ;;  %v2760_v9 = vrot.slane %v2758_v15, 4  ;;  %v5113_v40 = vld [vmem:[#allocation2 + $0x24] sm:$0xf]  ;;  %v8622_v30 = vld [vmem:[#allocation2 + $0x3c] sm:$0xff]   ;;  %v8631_v50 = vld [vmem:[#allocation2 + $0x48] sm:$0xff]  }
 0x214   : > { %v2759_v26 = vsel %vm9676_vm14, %v7059_v31, %v2758_v15  ;;  %v5168_v42 = vshll.u32 %v5111_v16, 16  ;;  %v5172_v21 = vshrl.u32 %v5111_v16, 16  ;;  %v5159_v45 = vshrl.u32 %v5110_v35, 16  ;;  %v5114_v1 = vld [vmem:[#allocation2 + $0x28] sm:$0xf]  ;;  %v8635_v43 = vld [vmem:[%s10754_s3 + $0x1e0] sm:$0xff]  }
 0x215   : > { %v2755_v58 = vsel %vm9676_vm14, %v2753_v7, %v2754_v13  ;;  %v2762_v52 = vsel %vm9676_vm14, %v2760_v9, %v2761_v28  ;;  %v5162_v2 = vshll.u32 %v5110_v35, 16  ;;  %v5183_v25 = vshrl.u32 %v5113_v40, 16  ;;  %v5116_v13 = vld [vmem:[#allocation2 + $0x30] sm:$0xf]  ;;  %v8629_v23 = vld [vmem:[#allocation2 + $0x60] sm:$0xff]   ;;  %v8633_v24 = vld [vmem:[#allocation2 + $0x54] sm:$0xff]  }
 0x216   : > { %v7090_v49 = vcombine.low %v2752_v5, %v2755_v58  ;;  %v7091_v61 = vcombine.low %v2759_v26, %v2762_v52  ;;  %v9947_v6 = vrot.slane %v5168_v42, 5  ;;  %v5174_v44 = vrot.slane %v5172_v21, 4  ;;  %v9956_v57 = vld [vmem:[#allocation2 + $0x2c] sm:$0x1]  ;;  %v8642_v28 = vld [vmem:[%s10754_s3 + $0x1f0] sm:$0xff]   ;;  %v8634_v35 = vld [vmem:[#allocation2 + $0x78] sm:$0xff]  }
 0x217   : > { %v1454_v4 = vld [vmem:[#allocation2 + $0xcc] sm:$0xf]  ;;  %v5186_v7 = vshll.u32 %v5113_v40, 16  ;;  %v5161_v47 = vrot.slane %v5159_v45, 4  ;;  %v5164_v37 = vrot.slane %v5162_v2, 5  ;;  %v5192_v11 = vshll.u32 %v5114_v1, 16 }
 0x218   : > { %v1455_v14 = vsel %vm8922_vm6, 0, %v1454_v4  ;;  %v5196_v41 = vshrl.u32 %v5114_v1, 16  ;;  %v5175_v19 = vor.u32 %v5174_v44, %v9947_v6  ;;  %v5178_v15 = vshll.u32 %v9952_v10, 16  ;;  %v8639_v59 = vld [vmem:[%s10754_s3 + $0x1e8] sm:$0xff]   ;;  %v9974_v26 = vld [vmem:[#allocation2 + $0x38] sm:$0x1] }
 0x219   : > { %1456 = vst [vmem:[#allocation2 + $0xcc] sm:$0xf] %v1455_v14  ;;  %v5188_v29 = vrot.slane %v5186_v7, 5  ;;  %v5165_v39 = vor.u32 %v5164_v37, %v5161_v47  ;;  %v9961_v58 = vrot.slane %v5192_v11, 5  ;;  %v5207_v63 = vshrl.u32 %v5116_v13, 16  ;;  %v8645_v42 = vld [vmem:[%s10754_s3 + $0x1f8] sm:$0xff]  }
 0x21a   : > { %8015 = vmatmul.mubr.bf16.gmra.mrb[8].mxu1 %v7225_v55  ;;  %7871 = vmatmul.mubr.bf16.gmra.mrb[56].mxu0 %v7089_v33  ;;  %v8620_v55 = vld [vmem:[%s10754_s3 + $0x1c8] sm:$0xff]   ;;  %v5198_v46 = vrot.slane %v5196_v41, 4  ;;  %v5210_v33 = vshll.u32 %v5116_v13, 16  ;;  %v5176_v5 = vrot.slane %v5175_v19, 4  ;;  %v5180_v32 = vrot.slane %v5178_v15, 5  ;;  %v10006_v41 = vld [vmem:[%s10754_s3 + $0x200] sm:$0xff]  }
 0x21b   : > { %8018 = vmatprep.mubr.bf16.mxu1 %v7226_v0  ;;  %7874 = vmatprep.mubr.bf16.mxu0 %v7090_v49  ;;  %v9963_v49 = vld [vmem:[#allocation2 + $0x34] sm:$0xf]  ;;  %v5166_v9 = vrot.slane %v5165_v39, 4  ;;  %v5202_v60 = vshll.u32 %v9956_v57, 16  ;;  %v5209_v31 = vrot.slane %v5207_v63, 4 }
 0x21c   : > { %v5199_v4 = vor.u32 %v5198_v46, %v9961_v58  ;;  %v5212_v52 = vrot.slane %v5210_v33, 5  ;;  %v5181_v27 = vsel %vm8971_vm9, %v5176_v5, %v5180_v32  ;;  %v5122_v16 = vld [vmem:[#allocation2 + $0x48] sm:$0xf]  ;;  %v9999_v7 = vld [vmem:[#allocation2 + $0x58] sm:$0xf] }
 0x21d   : > { %v5288_v39 = vshll.u32 %v9999_v7, 16  ;;  %v5292_v15 = vshrl.u32 %v9999_v7, 16 }
 0x21e   : > { %v5200_v40 = vrot.slane %v5199_v4, 4  ;;  %v10026_v4 = vld [vmem:[#allocation2 + $0x50] sm:$0x1] }
 0x222   : > { %8019 = vmatmul.mubr.bf16.gmra.mrb[12].mxu1 %v7227_v17  ;;  %7875 = vmatmul.mubr.bf16.gmra.mrb[60].mxu0 %v7091_v61  ;;  %v5185_v17 = vrot.slane %v5183_v25, 4  ;;  %v5216_v61 = vshll.u32 %v9963_v49, 16  ;;  %v5255_v25 = vshrl.u32 %v5122_v16, 16 }
 0x223   : > { %8038 = vmatprep.mubr.bf16.mxu1 %v8615_v36  ;;  %7894 = vmatprep.mubr.bf16.mxu0 %v8618_v62  ;;  %v5220_v36 = vshrl.u32 %v9963_v49, 16  ;;  %v8632_v62 = vld [vmem:[#allocation2 + $0x6c] sm:$0xff]  }
 0x224   : > { %v5189_v0 = vor.u32 %v5188_v29, %v5185_v17  ;;  %v9995_v2 = vrot.slane %v5216_v61, 5  ;;  %v5257_v5 = vrot.slane %v5255_v25, 4 }
 0x226   : > { %v9972_v14 = vrot.slane %v5189_v0, 4  ;;  %v10021_v0 = vld [vmem:[#allocation2 + $0x44] sm:$0x1] }
 0x228   : > { %v5195_v45 = vsel %vm8971_vm9, %v9972_v14, %v9961_v58  ;;  %v8638_v58 = vld [vmem:[#allocation2 + $0x90] sm:$0xff]  }
 0x22a   : > { %8039 = vmatmul.mubr.bf16.vlgmr.msra.gmra.mrb[16].mxu1 %v8617_v18  ;;  %7895 = vmatmul.mubr.bf16.vlgmr.msra.gmra.mrb[32].mxu0 %v8621_v12  ;;  %v5119_v18 = vld [vmem:[#allocation2 + $0x3c] sm:$0xf]  ;;  %v8636_v12 = vld [vmem:[#allocation2 + $0x60] sm:$0xff]  }
 0x22b   : > { %8071 = vmatpush3.bf16.msra.mxu1 %v9873_v8  ;;  %8042 = vmatprep.mubr.bf16.mxu1 %v8619_v22  ;;  %v8630_v8 = vld [vmem:[%s10754_s3 + $0x1d8] sm:$0xff]   ;;  %v5171_v22 = vsel %vm8971_vm9, %v5166_v9, %v9947_v6  ;;  %v5234_v6 = vshll.u32 %v5119_v18, 16 }
 0x22c   : > { %8072 = vmatprep.subr.bf16.mxu1 %v8620_v55  ;;  %7898 = vmatprep.mubr.bf16.mxu0 %v8623_v20  ;;  %v5204_v20 = vrot.slane %v5202_v60, 5  ;;  %v9988_v21 = vcombine.low %v5171_v22, %v5181_v27 }
 0x22d   : > { %v5236_v46 = vrot.slane %v5234_v6, 5 }
 0x22e   : > { %v5205_v19 = vsel %vm8971_vm9, %v5200_v40, %v5204_v20 }
 0x22f   : > { %8073 = vmatpush3.bf16.msra.mxu1 %v8620_v55  ;;  %v9978_v55 = vld [vmem:[#allocation2 + $0x40] sm:$0xf]  ;;  %v10029_v61 = vcombine.low %v5195_v45, %v5205_v19  ;;  %v10046_v45 = vld [vmem:[#allocation2 + $0x5c] sm:$0x1] }
 0x230   : > { %8074 = vmatprep.subr.bf16.mxu1 %v8625_v34  ;;  %v5240_v44 = vshll.u32 %v9978_v55, 16  ;;  %v5244_v1 = vshrl.u32 %v9978_v55, 16 }
 0x232   : > { %8043 = vmatmul.mubr.bf16.gmra.mrb[20].mxu1 %v8622_v30  ;;  %7899 = vmatmul.mubr.bf16.gmra.mrb[36].mxu0 %v8626_v56  ;;  %v5213_v30 = vor.u32 %v5212_v52, %v5209_v31  ;;  %v5226_v56 = vshll.u32 %v9974_v26, 16  ;;  %v10019_v63 = vrot.slane %v5240_v44, 5  ;;  %v5246_v33 = vrot.slane %v5244_v1, 4 }
 0x233   : > { %8046 = vmatprep.mubr.bf16.mxu1 %v8624_v3  ;;  %8075 = vmatpush3.bf16.msra.mxu1 %v8625_v34  ;;  %v9983_v34 = vld [vmem:[#allocation2 + $0x4c] sm:$0xf]  ;;  %v5222_v3 = vrot.slane %v5220_v36, 4  ;;  %v10031_v36 = vrot.slane %v5288_v39, 5 }
 0x234   : > { %7902 = vmatprep.mubr.bf16.mxu0 %v8628_v51  ;;  %8076 = vmatprep.subr.bf16.mxu1 %v8630_v8  ;;  %v5231_v51 = vshrl.u32 %v5119_v18, 16  ;;  %v5264_v47 = vshll.u32 %v9983_v34, 16  ;;  %v5268_v37 = vshrl.u32 %v9983_v34, 16  ;;  %v10010_v17 = vrot.slane %v5213_v30, 4 }
 0x235   : > { %v10012_v29 = vrot.slane %v5226_v56, 5  ;;  %v5274_v56 = vshll.u32 %v10026_v4, 16 }
 0x236   : > { %v10023_v32 = vrot.slane %v5264_v47, 5  ;;  %v5270_v60 = vrot.slane %v5268_v37, 4  ;;  %v8640_v37 = vld [vmem:[#allocation2 + $0x9c] sm:$0xff]  }
 0x237   : > { %8077 = vmatpush3.bf16.msra.mxu1 %v8630_v8  ;;  %v5125_v8 = vld [vmem:[#allocation2 + $0x54] sm:$0xf] }
 0x238   : > { %8078 = vmatprep.subr.bf16.mxu1 %v8635_v43  ;;  %v5279_v11 = vshrl.u32 %v5125_v8, 16  ;;  %v5282_v13 = vshll.u32 %v5125_v8, 16  ;;  %v5271_v30 = vor.u32 %v5270_v60, %v10023_v32  ;;  %v10044_v8 = vld [vmem:[#allocation2 + $0x70] sm:$0xf] }
 0x23a   : > { %8047 = vmatmul.mubr.bf16.gmra.mrb[24].mxu1 %v8627_v54  ;;  %7903 = vmatmul.mubr.bf16.gmra.mrb[40].mxu0 %v8631_v50  ;;  %v5128_v54 = vld [vmem:[#allocation2 + $0x60] sm:$0xf]  ;;  %v5233_v50 = vrot.slane %v5231_v51, 4  ;;  %v5284_v31 = vrot.slane %v5282_v13, 5  ;;  %v10055_v13 = vld [vmem:[#allocation2 + $0x68] sm:$0x1] }
 0x23b   : > { %8050 = vmatprep.mubr.bf16.mxu1 %v8629_v23  ;;  %7906 = vmatprep.mubr.bf16.mxu0 %v8633_v24  ;;  %v5223_v23 = vor.u32 %v5222_v3, %v9995_v2  ;;  %v10017_v24 = vld [vmem:[#allocation2 + $0x64] sm:$0xf]  ;;  %v5303_v52 = vshrl.u32 %v5128_v54, 16  ;;  %v5306_v27 = vshll.u32 %v5128_v54, 16  ;;  %v5336_v54 = vshll.u32 %v10044_v8, 16 }
 0x23c   : > { %8079 = vmatpush3.bf16.msra.mxu1 %v8635_v43  ;;  %v5258_v43 = vshll.u32 %v5122_v16, 16  ;;  %v5312_v14 = vshll.u32 %v10017_v24, 16  ;;  %v5316_v18 = vshrl.u32 %v10017_v24, 16  ;;  %v5237_v20 = vor.u32 %v5236_v46, %v5233_v50  ;;  %v8641_v46 = vld [vmem:[#allocation2 + $0xa8] sm:$0xff]  }
 0x23d   : > { %8080 = vmatprep.subr.bf16.mxu1 %v8639_v59  ;;  %v10038_v22 = vrot.slane %v5223_v23, 4  ;;  %v5250_v16 = vshll.u32 %v10021_v0, 16  ;;  %v5305_v51 = vrot.slane %v5303_v52, 4  ;;  %v5308_v6 = vrot.slane %v5306_v27, 5 }
 0x23e   : > { %v5260_v9 = vrot.slane %v5258_v43, 5  ;;  %v10048_v44 = vrot.slane %v5312_v14, 5  ;;  %v5318_v25 = vrot.slane %v5316_v18, 4  ;;  %v5340_v23 = vshrl.u32 %v10044_v8, 16 }
 0x23f   : > { %v5252_v19 = vrot.slane %v5250_v16, 5  ;;  %v5238_v50 = vrot.slane %v5237_v20, 4  ;;  %v5309_v60 = vor.u32 %v5308_v6, %v5305_v51  ;;  %v5322_v14 = vshll.u32 %v10055_v13, 16 }
 0x240   : > { %8081 = vmatpush3.bf16.msra.mxu1 %v8639_v59  ;;  %v8637_v59 = vld [vmem:[#allocation2 + $0x84] sm:$0xff]   ;;  %v5261_v40 = vor.u32 %v5260_v9, %v5257_v5  ;;  %v5272_v5 = vrot.slane %v5271_v30, 4  ;;  %v10064_v18 = vrot.slane %v5336_v54, 5  ;;  %v5944_v20 = vrot.slane %v9963_v49, 5  ;;  %v8646_v49 = vld [vmem:[#allocation2 + $0xcc] sm:$0xff]  }
 0x241   : > { %8082 = vmatprep.subr.bf16.mxu1 %v8642_v28  ;;  %v10092_v54 = vrot.slane %v5322_v14, 5 }
 0x242   : > { %8051 = vmatmul.mubr.bf16.gmra.mrb[28].mxu1 %v8632_v62  ;;  %7907 = vmatmul.mubr.bf16.gmra.mrb[44].mxu0 %v8636_v12  ;;  %v5294_v62 = vrot.slane %v5292_v15, 4  ;;  %v5219_v12 = vsel %vm8971_vm9, %v10010_v17, %v9995_v2  ;;  %v5276_v15 = vrot.slane %v5274_v56, 5 }
 0x243   : > { %8054 = vmatprep.mubr.bf16.mxu1 %v8634_v35  ;;  %v5131_v35 = vld [vmem:[#allocation2 + $0x6c] sm:$0xf] }
 0x244   : > { %8083 = vmatpush3.bf16.msra.mxu1 %v8642_v28  ;;  %v5281_v28 = vrot.slane %v5279_v11, 4  ;;  %v5295_v1 = vor.u32 %v5294_v62, %v10031_v36  ;;  %v5327_v43 = vshrl.u32 %v5131_v35, 16  ;;  %v5330_v47 = vshll.u32 %v5131_v35, 16  ;;  %v10062_v62 = vld [vmem:[#allocation2 + $0x74] sm:$0x1] }
 0x245   : > { %8084 = vmatprep.subr.bf16.mxu1 %v8645_v42  ;;  %v5229_v11 = vsel %vm8971_vm9, %v10038_v22, %v10012_v29  ;;  %v5342_v22 = vrot.slane %v5340_v23, 4  ;;  %v5243_v35 = vsel %vm8971_vm9, %v5238_v50, %v10019_v63  ;;  %v5277_v6 = vsel %vm8971_vm9, %v5272_v5, %v5276_v15 }
 0x246   : > { %v5285_v3 = vor.u32 %v5284_v31, %v5281_v28  ;;  %v5134_v28 = vld [vmem:[#allocation2 + $0x78] sm:$0xf]  ;;  %v5296_v29 = vrot.slane %v5295_v1, 4  ;;  %v5319_v31 = vor.u32 %v5318_v25, %v10048_v44  ;;  %v5329_v52 = vrot.slane %v5327_v43, 4  ;;  %v10082_v25 = vld [vmem:[#allocation2 + $0x84] sm:$0xf] }
 0x247   : > { %v5332_v27 = vrot.slane %v5330_v47, 5  ;;  %v5351_v30 = vshrl.u32 %v5134_v28, 16  ;;  %v5354_v56 = vshll.u32 %v5134_v28, 16  ;;  %v10080_v1 = vrot.slane %v5309_v60, 4  ;;  %v10117_v28 = vld [vmem:[#allocation2 + $0x90] sm:$0xf] }
 0x248   : > { %8085 = vmatpush3.bf16.msra.mxu1 %v8645_v42  ;;  %v5247_v42 = vor.u32 %v5246_v33, %v10019_v63  ;;  %v5262_v33 = vrot.slane %v5261_v40, 4  ;;  %v5286_v9 = vrot.slane %v5285_v3, 4  ;;  %v10071_v40 = vld [vmem:[#allocation2 + $0x7c] sm:$0xf]  ;;  %v10086_v43 = vrot.slane %v5319_v31, 4 }
 0x249   : > { %8118 = vmatprep.subr.bf16.mxu1 %v10006_v41  ;;  %v5333_v47 = vor.u32 %v5332_v27, %v5329_v52  ;;  %v5343_v23 = vor.u32 %v5342_v22, %v10064_v18  ;;  %v5360_v50 = vshll.u32 %v10071_v40, 16  ;;  %v10098_v15 = vrot.slane %v5351_v30, 4  ;;  %v5866_v31 = vld [vmem:[#allocation2 + $0x30] sm:$0xe] }
 0x24a   : > { %8055 = vmatmul.mubr.bf16.gmra.mrb[0].mxu1 %v8637_v59  ;;  %v5248_v39 = vrot.slane %v5247_v42, 4  ;;  %v5298_v59 = vshll.u32 %v10046_v45, 16  ;;  %v5267_v51 = vsel %vm8971_vm9, %v5262_v33, %v10023_v32  ;;  %v5291_v32 = vsel %vm8971_vm9, %v5286_v9, %v10031_v36  ;;  %v8644_v33 = vld [vmem:[#allocation2 + $0xc0] sm:$0xff]  }
 0x24b   : > { %8058 = vmatprep.mubr.bf16.mxu1 %v8638_v58  ;;  %v433_v58 = vld [vmem:[#allocation2 + $0xd4] sm:$0x1]  ;;  %v10109_v36 = vcombine.low %v5219_v12, %v5229_v11  ;;  %v10113_v9 = vcombine.low %v5267_v51, %v5277_v6  ;;  %v10127_v17 = vrot.slane %v5333_v47, 4  ;;  %v10131_v11 = vld [vmem:[#allocation2 + $0x88] sm:$0xf]  ;;  %v10133_v52 = vrot.slane %v5343_v23, 4 }
 0x24c   : > { %v434_v16 = vsel %vm8892_vm4, 0, %v433_v58  ;;  %v5300_v42 = vrot.slane %v5298_v59, 5  ;;  %v5253_v3 = vsel %vm8971_vm9, %v5248_v39, %v5252_v19  ;;  %v8643_v19 = vld [vmem:[#allocation2 + $0xb4] sm:$0xff]   ;;  %v10096_v39 = vld [vmem:[#allocation2 + $0x80] sm:$0x1]  ;;  %v10100_v59 = vrot.slane %v5354_v56, 5 }
 0x24d   : > { %435 = vst [vmem:[#allocation2 + $0xd4] sm:$0x1] %v434_v16  ;;  %v5364_v58 = vshrl.u32 %v10071_v40, 16  ;;  %v10111_v5 = vcombine.low %v5243_v35, %v5253_v3  ;;  %v10135_v27 = vrot.slane %v5360_v50, 5  ;;  %v5867_v56 = vld [vmem:[#allocation2 + $0x3c] sm:$0xe] }
 0x24e   : > { %v5301_v63 = vsel %vm8971_vm9, %v5296_v29, %v5300_v42  ;;  %v7318_v51 = vrot.slane %v5866_v31, 9  ;;  %v5946_v6 = vrot.slane %v5944_v20, 4  ;;  %v5868_v47 = vld [vmem:[#allocation2 + $0x48] sm:$0xe]  ;;  %v5951_v23 = vrot.slane %v9978_v55, 5 }
 0x24f   : > { %v10115_v60 = vcombine.low %v5291_v32, %v5301_v63  ;;  %v10141_v35 = vrot.slane %v5364_v58, 4  ;;  %v5947_v63 = vrot.slane %v9974_v26, 5  ;;  %v7319_v58 = vrot.slane %v5867_v56, 9  ;;  %v5870_v56 = vld [vmem:[#allocation2 + $0x60] sm:$0xe] }
 0x250   : > { %v10155_v53 = vsel %vm9676_vm14, %v7318_v51, %v5944_v20  ;;  %v5958_v26 = vrot.slane %v9983_v34, 5  ;;  %v5953_v31 = vrot.slane %v5951_v23, 4  ;;  %v5961_v51 = vrot.slane %v10026_v4, 5  ;;  %v5874_v16 = vld [vmem:[#allocation2 + $0x90] sm:$0xe] }
 0x251   : > { %v10159_v50 = vsel %vm9676_vm14, %v5946_v6, %v5947_v63  ;;  %v10167_v55 = vsel %vm9676_vm14, %v7319_v58, %v5951_v23  ;;  %v5965_v6 = vrot.slane %v9999_v7, 5  ;;  %v10181_v23 = vld [vmem:[#allocation2 + $0x94] sm:$0xf]  ;;  %v5968_v58 = vrot.slane %v10046_v45, 5  ;;  %v10203_v7 = vld [vmem:[#allocation2 + $0x8c] sm:$0x1] }
 0x252   : > { %8059 = vmatmul.mubr.bf16.gmra.mrb[4].mxu1 %v8640_v37  ;;  %v5346_v37 = vshll.u32 %v10062_v62, 16  ;;  %v5960_v20 = vrot.slane %v5958_v26, 4  ;;  %v5979_v45 = vrot.slane %v10044_v8, 5  ;;  %v5982_v14 = vrot.slane %v10062_v62, 5  ;;  %v10227_v29 = vld [vmem:[#allocation2 + $0xa0] sm:$0xf] }
 0x253   : > { %8062 = vmatprep.mubr.bf16.mxu1 %v8641_v46  ;;  %v5375_v46 = vshrl.u32 %v10082_v25, 16  ;;  %v5989_v8 = vrot.slane %v10096_v39, 5  ;;  %v5876_v32 = vld [vmem:[#allocation2 + $0xa8] sm:$0xe] }
 0x254   : > { %v10129_v12 = vrot.slane %v5346_v37, 5  ;;  %v1458_v22 = vld [vmem:[#allocation2 + $0xd4] sm:$0x1]  ;;  %v10187_v4 = vsel %vm9676_vm14, %v5960_v20, %v5961_v51  ;;  %v5872_v51 = vld [vmem:[#allocation2 + $0x78] sm:$0xe] }
 0x255   : > { %v10143_v42 = vrot.slane %v5375_v46, 4  ;;  %v1459_v30 = vsel %vm8855_vm2, 0, %v1458_v22  ;;  %v5869_v46 = vld [vmem:[#allocation2 + $0x54] sm:$0xe]  ;;  %v5954_v22 = vrot.slane %v10021_v0, 5 }
 0x256   : > { %1460 = vst [vmem:[#allocation2 + $0xd4] sm:$0x1] %v1459_v30  ;;  %v7320_v30 = vrot.slane %v5868_v47, 9  ;;  %v7321_v0 = vrot.slane %v5869_v46, 9  ;;  %v5972_v47 = vrot.slane %v10017_v24, 5  ;;  %v7322_v46 = vrot.slane %v5870_v56, 9 }
 0x257   : > { %v10173_v34 = vsel %vm9676_vm14, %v5953_v31, %v5954_v22  ;;  %v5975_v24 = vrot.slane %v10055_v13, 5  ;;  %v7324_v13 = vrot.slane %v5872_v51, 9  ;;  %v5875_v56 = vld [vmem:[#allocation2 + $0x9c] sm:$0xe]  ;;  %v10239_v51 = vld [vmem:[#allocation2 + $0xa4] sm:$0x1] }
 0x258   : > { %v10177_v63 = vsel %vm9676_vm14, %v7320_v30, %v5958_v26  ;;  %v5974_v31 = vrot.slane %v5972_v47, 4  ;;  %v10196_v30 = vsel %vm9676_vm14, %v7321_v0, %v5965_v6  ;;  %v10210_v26 = vsel %vm9676_vm14, %v7322_v46, %v5972_v47  ;;  %v5873_v0 = vld [vmem:[#allocation2 + $0x84] sm:$0xe]  ;;  %v8648_v47 = vld [vmem:[%s10754_s3 + $0x208] sm:$0xff]  }
 0x259   : > { %10815 = vst [vmem:[#allocation7_spill] sm:$0xff] %v10210_v26  ;;  %v7325_v2 = vrot.slane %v5873_v0, 9  ;;  %v5996_v22 = vrot.slane %v10203_v7, 5  ;;  %v6010_v3 = vrot.slane %v10239_v51, 5 }
 0x25a   : > { %8063 = vmatmul.mubr.bf16.gmra.mrb[8].mxu1 %v8643_v19 }
 0x25b   : > { %8066 = vmatprep.mubr.bf16.mxu1 %v8644_v33  ;;  %v5981_v33 = vrot.slane %v5979_v45, 4 }
 0x25d   : > { %v10235_v62 = vsel %vm9676_vm14, %v5981_v33, %v5982_v14  ;;  %v10246_v14 = vld [vmem:[#allocation2 + $0xac] sm:$0xf]  ;;  %v10248_v33 = vld [vmem:[#allocation2 + $0xb0] sm:$0x1] }
 0x25e   : > { %10818 = vst [vmem:[#allocation8_spill] sm:$0xff] %v10235_v62  ;;  %v10279_v62 = vld [vmem:[#allocation2 + $0xc4] sm:$0xf] }
 0x25f   : > { %v6028_v26 = vrot.slane %v10279_v62, 5 }
 0x262   : > { %8067 = vmatmul.mubr.bf16.gmra.mrb[12].mxu1 %v8646_v49  ;;  %v5967_v49 = vrot.slane %v5965_v6, 4  ;;  %v10214_v6 = vsel %vm9676_vm14, %v5974_v31, %v5975_v24  ;;  %v5986_v31 = vrot.slane %v10071_v40, 5  ;;  %v5993_v24 = vrot.slane %v10131_v11, 5 }
 0x263   : > { %8086 = vmatprep.mubr.bf16.mxu1 %v9988_v21  ;;  %v5871_v21 = vld [vmem:[#allocation2 + $0x6c] sm:$0xe]  ;;  %10816 = vst [vmem:[#allocation6_spill] sm:$0xff] %v10214_v6  ;;  %v6000_v40 = vrot.slane %v10181_v23, 5  ;;  %v6017_v6 = vrot.slane %v10248_v33, 5 }
 0x264   : > { %v10200_v20 = vsel %vm9676_vm14, %v5967_v49, %v5968_v58  ;;  %v10216_v49 = vld [vmem:[#allocation2 + $0x98] sm:$0x1]  ;;  %v7323_v58 = vrot.slane %v5871_v21, 9  ;;  %v5988_v46 = vrot.slane %v5986_v31, 4  ;;  %v10256_v0 = vsel %vm9676_vm14, %v7325_v2, %v5993_v24 }
 0x265   : > { %10820 = vst [vmem:[#allocation11_spill] sm:$0xff] %v10256_v0  ;;  %v10268_v2 = vld [vmem:[#allocation2 + $0xb8] sm:$0xf]  ;;  %v6002_v37 = vrot.slane %v6000_v40, 4  ;;  %v10842_v48 = vcombine.low %v10196_v30, %v10200_v20 }
 0x266   : > { %v10231_v21 = vsel %vm9676_vm14, %v7323_v58, %v5979_v45  ;;  %v7326_v45 = vrot.slane %v5874_v16, 9  ;;  %v5995_v58 = vrot.slane %v5993_v24, 4  ;;  %v6003_v16 = vrot.slane %v10216_v49, 5 }
 0x267   : > { %10817 = vst [vmem:[#allocation10_spill] sm:$0xff] %v10231_v21 }
 0x268   : > { %v10274_v19 = vsel %vm9676_vm14, %v5995_v58, %v5996_v22  ;;  %v10285_v21 = vsel %vm9676_vm14, %v7326_v45, %v6000_v40  ;;  %v10293_v58 = vsel %vm9676_vm14, %v6002_v37, %v6003_v16  ;;  %v8650_v40 = vld [vmem:[%s10754_s3 + $0x218] sm:$0xff]   ;;  %v5879_v16 = vld [vmem:[#allocation2 + $0xcc] sm:$0xe] }
 0x269   : > { %10822 = vst [vmem:[#allocation3_spill] sm:$0xff] %v10274_v19  ;;  %10823 = vst [vmem:[#allocation5_spill] sm:$0xff] %v10285_v21 }
 0x26a   : > { %8087 = vmatmul.mubr.bf16.vlgmr.msra.gmra.mrb[16].mxu1 %v10029_v61  ;;  %v10252_v61 = vsel %vm9676_vm14, %v7324_v13, %v5986_v31  ;;  %v7327_v13 = vrot.slane %v5875_v56, 9  ;;  %v6007_v31 = vrot.slane %v10227_v29, 5  ;;  %10824 = vst [vmem:[#allocation4_spill] sm:$0xff] %v10293_v58  ;;  %v5878_v56 = vld [vmem:[#allocation2 + $0xc0] sm:$0xe] }
 0x26b   : > { %8119 = vmatpush3.bf16.msra.mxu1 %v10006_v41  ;;  %8090 = vmatprep.mubr.bf16.mxu1 %v10109_v36  ;;  %10819 = vst [vmem:[#allocation9_spill] sm:$0xff] %v10252_v61  ;;  %v8649_v41 = vld [vmem:[%s10754_s3 + $0x210] sm:$0xff]   ;;  %v10264_v36 = vsel %vm9676_vm14, %v5988_v46, %v5989_v8  ;;  %v10277_v46 = vld [vmem:[#allocation2 + $0xbc] sm:$0x1]  ;;  %v6014_v61 = vrot.slane %v10246_v14, 5  ;;  %v7330_v21 = vrot.slane %v5878_v56, 9 }
 0x26c   : > { %8120 = vmatprep.subr.bf16.mxu1 %v8648_v47  ;;  %10821 = vst [vmem:[#allocation12_spill] sm:$0xff] %v10264_v36  ;;  %v5877_v8 = vld [vmem:[#allocation2 + $0xb4] sm:$0xe]  ;;  %v10289_v24 = vsel %vm9676_vm14, %v7327_v13, %v6007_v31  ;;  %v6009_v22 = vrot.slane %v6007_v31, 4  ;;  %v7328_v36 = vrot.slane %v5876_v32, 9  ;;  %v6021_v32 = vrot.slane %v10268_v2, 5 }
 0x26d   : > { %v7329_v37 = vrot.slane %v5877_v8, 9  ;;  %v10307_v13 = vld [vmem:[#allocation2 + $0xc8] sm:$0x1]  ;;  %v10309_v31 = vld [vmem:[#allocation2 + $0xd0] sm:$0xf]  ;;  %v6016_v45 = vrot.slane %v6014_v61, 4 }
 0x26e   : > { %v10315_v0 = vsel %vm9676_vm14, %v7328_v36, %v6014_v61  ;;  %v6024_v58 = vrot.slane %v10277_v46, 5  ;;  %v7331_v36 = vrot.slane %v5879_v16, 9  ;;  %v10828_v56 = vshll.u32 %v10082_v25, 16 }
 0x26f   : > { %8121 = vmatpush3.bf16.msra.mxu1 %v8648_v47  ;;  %v10304_v47 = vsel %vm9676_vm14, %v6009_v22, %v6010_v3  ;;  %10826 = vst [vmem:[#allocation14_spill] sm:$0xff] %v10315_v0  ;;  %v10319_v3 = vld [vmem:[#allocation2 + $0xd4] sm:$0x1]  ;;  %v10323_v8 = vsel %vm9676_vm14, %v7329_v37, %v6021_v32  ;;  %v6023_v22 = vrot.slane %v6021_v32, 4  ;;  %v10329_v61 = vsel %vm9676_vm14, %v6016_v45, %v6017_v6  ;;  %v8651_v37 = vld [vmem:[%s10754_s3 + $0x220] sm:$0xff]  }
 0x270   : > { %8122 = vmatprep.subr.bf16.mxu1 %v8649_v41  ;;  %10825 = vst [vmem:[#allocation13_spill] sm:$0xff] %v10304_v47  ;;  %10827 = vst [vmem:[#allocation15_spill] sm:$0xff] %v10329_v61  ;;  %v6038_v19 = vrot.slane %v10319_v3, 5  ;;  %v6031_v6 = vrot.slane %v10307_v13, 5  ;;  %v5367_v45 = vor.u32 %v10141_v35, %v10135_v27  ;;  %v5380_v61 = vrot.slane %v10828_v56, 5 }
 0x271   : > { %v10359_v0 = vsel %vm9676_vm14, %v7330_v21, %v6028_v26 }
 0x272   : > { %8091 = vmatmul.mubr.bf16.gmra.mrb[20].mxu1 %v10111_v5  ;;  %v6035_v5 = vrot.slane %v10309_v31, 5 }
 0x273   : > { %8094 = vmatprep.mubr.bf16.mxu1 %v10113_v9  ;;  %8123 = vmatpush3.bf16.msra.mxu1 %v8649_v41  ;;  %v10340_v9 = vsel %vm9676_vm14, %v6023_v22, %v6024_v58  ;;  %v6030_v41 = vrot.slane %v6028_v26, 4  ;;  %v10829_v58 = vshll.u32 %v10131_v11, 16  ;;  %v10832_v26 = vshll.u32 %v10117_v28, 16 }
 0x274   : > { %8124 = vmatprep.subr.bf16.mxu1 %v8650_v40  ;;  %v10349_v16 = vsel %vm9676_vm14, %v7331_v36, %v6035_v5  ;;  %v6037_v47 = vrot.slane %v6035_v5, 4  ;;  %v10830_v36 = vshrl.u32 %v10131_v11, 16  ;;  %v10831_v5 = vshrl.u32 %v10117_v28, 16 }
 0x275   : > { %v10355_v22 = vrot.slane %v10829_v58, 5  ;;  %v10363_v35 = vsel %vm9676_vm14, %v6030_v41, %v6031_v6  ;;  %v5404_v21 = vrot.slane %v10832_v26, 5  ;;  %v10833_v41 = vshll.u32 %v10181_v23, 16 }
 0x276   : > { %v5390_v32 = vrot.slane %v10830_v36, 4  ;;  %v5401_v25 = vrot.slane %v10831_v5, 4  ;;  %v7362_v56 = vcombine.low %v10359_v0, %v10363_v35  ;;  %v10373_v58 = vsel %vm9676_vm14, %v6037_v47, %v6038_v19  ;;  %v8652_v36 = vld [vmem:[%s10754_s3 + $0x228] sm:$0xff]   ;;  %v5143_v5 = vld [vmem:[#allocation2 + $0x9c] sm:$0xf] }
 0x277   : > { %8125 = vmatpush3.bf16.msra.mxu1 %v8650_v40  ;;  %v10379_v40 = vrot.slane %v10833_v41, 5  ;;  %v10834_v11 = vshrl.u32 %v10181_v23, 16  ;;  %v7363_v19 = vcombine.low %v10349_v16, %v10373_v58  ;;  %v10835_v28 = vsel %vm8971_vm9, %v10086_v43, %v10092_v54  ;;  %v10858_v20 = vld [vmem:[#allocation13_spill] sm:$0xff] }
 0x278   : > { %8126 = vmatprep.subr.bf16.mxu1 %v8651_v37  ;;  %v10836_v47 = vsel %vm8971_vm9, %v10080_v1, %v10048_v44  ;;  %v5349_v26 = vsel %vm8971_vm9, %v10133_v52, %v10129_v12  ;;  %v10837_v41 = vor.u32 %v10100_v59, %v10098_v15  ;;  %v5339_v43 = vsel %vm8971_vm9, %v10127_v17, %v10064_v18  ;;  %v8653_v18 = vld [vmem:[%s10754_s3 + $0x230] sm:$0xff]  }
 0x279   : > { %v5414_v6 = vrot.slane %v10834_v11, 4  ;;  %v7298_v23 = vcombine.low %v10836_v47, %v10835_v28  ;;  %v5368_v54 = vrot.slane %v5367_v45, 4  ;;  %v5381_v44 = vor.u32 %v5380_v61, %v10143_v42 }
 0x27a   : > { %v5358_v11 = vrot.slane %v10837_v41, 4  ;;  %8095 = vmatmul.mubr.bf16.gmra.mrb[24].mxu1 %v10115_v60  ;;  %v5391_v1 = vor.u32 %v5390_v32, %v10355_v22  ;;  %v5423_v28 = vshrl.u32 %v5143_v5, 16  ;;  %v5426_v12 = vshll.u32 %v5143_v5, 16 }
 0x27b   : > { %8098 = vmatprep.mubr.bf16.mxu1 %v7298_v23  ;;  %8127 = vmatpush3.bf16.msra.mxu1 %v8651_v37  ;;  %v7299_v52 = vcombine.low %v5339_v43, %v5349_v26  ;;  %v10838_v15 = vshll.u32 %v10096_v39, 16  ;;  %v5405_v47 = vor.u32 %v5404_v21, %v5401_v25  ;;  %v5415_v60 = vor.u32 %v5414_v6, %v10379_v40  ;;  %v5146_v39 = vld [vmem:[#allocation2 + $0xa8] sm:$0xf] }
 0x27c   : > { %8128 = vmatprep.subr.bf16.mxu1 %v8652_v36  ;;  %v5363_v17 = vsel %vm8971_vm9, %v5358_v11, %v10135_v27  ;;  %v5394_v42 = vshll.u32 %v10203_v7, 16  ;;  %v5432_v61 = vshll.u32 %v10227_v29, 16  ;;  %v5436_v37 = vshrl.u32 %v10227_v29, 16  ;;  %v8654_v29 = vld [vmem:[%s10754_s3 + $0x238] sm:$0xff]  }
 0x27d   : > { %v5372_v59 = vrot.slane %v10838_v15, 5  ;;  %v5418_v32 = vshll.u32 %v10216_v49, 16  ;;  %v5456_v25 = vshll.u32 %v10246_v14, 16  ;;  %v5460_v21 = vshrl.u32 %v10246_v14, 16 }
 0x27e   : > { %v5382_v6 = vrot.slane %v5381_v44, 4  ;;  %v5392_v5 = vrot.slane %v5391_v1, 4  ;;  %v5425_v23 = vrot.slane %v5423_v28, 4  ;;  %v5428_v27 = vrot.slane %v5426_v12, 5 }
 0x27f   : > { %v5373_v45 = vsel %vm8971_vm9, %v5368_v54, %v5372_v59  ;;  %8129 = vmatpush3.bf16.msra.mxu1 %v8652_v36  ;;  %v5406_v7 = vrot.slane %v5405_v47, 4  ;;  %v5416_v26 = vrot.slane %v5415_v60, 4  ;;  %v5447_v41 = vshrl.u32 %v5146_v39, 16  ;;  %v5149_v36 = vld [vmem:[#allocation2 + $0xb4] sm:$0xf] }
 0x280   : > { %v5450_v11 = vshll.u32 %v5146_v39, 16  ;;  %8130 = vmatprep.subr.bf16.mxu1 %v8653_v18  ;;  %v7300_v43 = vcombine.low %v5363_v17, %v5373_v45  ;;  %v5396_v49 = vrot.slane %v5394_v42, 5  ;;  %v10432_v54 = vrot.slane %v5432_v61, 5  ;;  %v5152_v45 = vld [vmem:[#allocation2 + $0xc0] sm:$0xf] }
 0x281   : > { %v5438_v15 = vrot.slane %v5436_v37, 4  ;;  %v5420_v14 = vrot.slane %v5418_v32, 5  ;;  %v10434_v44 = vrot.slane %v5456_v25, 5  ;;  %v5462_v1 = vrot.slane %v5460_v21, 4 }
 0x282   : > { %8099 = vmatmul.mubr.bf16.gmra.mrb[28].mxu1 %v7299_v52  ;;  %v5387_v28 = vsel %vm8971_vm9, %v5382_v6, %v10355_v22  ;;  %v5397_v12 = vsel %vm8971_vm9, %v5392_v5, %v5396_v49  ;;  %v5429_v59 = vor.u32 %v5428_v27, %v5425_v23  ;;  %v5442_v47 = vshll.u32 %v10239_v51, 16 }
 0x283   : > { %8102 = vmatprep.mubr.bf16.mxu1 %v7300_v43  ;;  %8131 = vmatpush3.bf16.msra.mxu1 %v8653_v18  ;;  %v5411_v52 = vsel %vm8971_vm9, %v5406_v7, %v10379_v40  ;;  %v5421_v60 = vsel %vm8971_vm9, %v5416_v26, %v5420_v14  ;;  %v5449_v17 = vrot.slane %v5447_v41, 4  ;;  %v5452_v42 = vrot.slane %v5450_v11, 5  ;;  %v5155_v41 = vld [vmem:[#allocation2 + $0xcc] sm:$0xf] }
 0x284   : > { %8132 = vmatprep.subr.bf16.mxu1 %v8654_v29  ;;  %v5439_v61 = vor.u32 %v5438_v15, %v10432_v54  ;;  %v5471_v22 = vshrl.u32 %v5149_v36, 16  ;;  %v5480_v37 = vshll.u32 %v10268_v2, 16  ;;  %v5484_v39 = vshrl.u32 %v10268_v2, 16 }
 0x285   : > { %v5463_v51 = vor.u32 %v5462_v1, %v10434_v44  ;;  %v5474_v18 = vshll.u32 %v5149_v36, 16  ;;  %v5504_v32 = vshll.u32 %v10279_v62, 16  ;;  %v5508_v40 = vshrl.u32 %v10279_v62, 16 }
 0x286   : > { %v7301_v25 = vcombine.low %v5387_v28, %v5397_v12  ;;  %v7302_v21 = vcombine.low %v5411_v52, %v5421_v60  ;;  %v5430_v6 = vrot.slane %v5429_v59, 4  ;;  %v5444_v5 = vrot.slane %v5442_v47, 5 }
 0x287   : > { %8133 = vmatpush3.bf16.msra.mxu1 %v8654_v29  ;;  %v5453_v23 = vor.u32 %v5452_v42, %v5449_v17  ;;  %v5466_v27 = vshll.u32 %v10248_v33, 16  ;;  %v5495_v7 = vshrl.u32 %v5152_v45, 16  ;;  %v5498_v26 = vshll.u32 %v5152_v45, 16 }
 0x288   : > { %v5440_v2 = vrot.slane %v5439_v61, 4  ;;  %v5473_v11 = vrot.slane %v5471_v22, 4  ;;  %v5482_v43 = vrot.slane %v5480_v37, 5  ;;  %v5486_v49 = vrot.slane %v5484_v39, 4 }
 0x289   : > { %v5464_v15 = vrot.slane %v5463_v51, 4  ;;  %v5476_v14 = vrot.slane %v5474_v18, 5  ;;  %v5506_v1 = vrot.slane %v5504_v32, 5  ;;  %v5510_v62 = vrot.slane %v5508_v40, 4 }
 0x28a   : > { %8103 = vmatmul.mubr.bf16.gmra.mrb[0].mxu1 %v7301_v25  ;;  %v5519_v36 = vshrl.u32 %v5155_v41, 16  ;;  %v5522_v28 = vshll.u32 %v5155_v41, 16  ;;  %v5528_v29 = vshll.u32 %v10309_v31, 16  ;;  %v5532_v12 = vshrl.u32 %v10309_v31, 16 }
 0x28b   : > { %8106 = vmatprep.mubr.bf16.mxu1 %v7302_v21  ;;  %v5454_v33 = vrot.slane %v5453_v23, 4  ;;  %v5468_v59 = vrot.slane %v5466_v27, 5  ;;  %v5497_v47 = vrot.slane %v5495_v7, 4  ;;  %v5500_v52 = vrot.slane %v5498_v26, 5 }
 0x28c   : > { %v5435_v60 = vsel %vm8971_vm9, %v5430_v6, %v10432_v54  ;;  %v5445_v17 = vsel %vm8971_vm9, %v5440_v2, %v5444_v5  ;;  %v5487_v42 = vor.u32 %v5486_v49, %v5482_v43  ;;  %v5477_v22 = vor.u32 %v5476_v14, %v5473_v11 }
 0x28d   : > { %v5469_v61 = vsel %vm8971_vm9, %v5464_v15, %v5468_v59  ;;  %v5490_v37 = vshll.u32 %v10277_v46, 16  ;;  %v5511_v39 = vor.u32 %v5510_v62, %v5506_v1  ;;  %v5521_v31 = vrot.slane %v5519_v36, 4 }
 0x28e   : > { %v5524_v45 = vrot.slane %v5522_v28, 5  ;;  %v5530_v51 = vrot.slane %v5528_v29, 5  ;;  %v5534_v18 = vrot.slane %v5532_v12, 4  ;;  %v7303_v32 = vcombine.low %v5435_v60, %v5445_v17  ;;  %v8655_v29 = vld [vmem:[%s10756_s5] sm:$0xff]   ;;  %v8656_v12 = vld [vmem:[%s10756_s5 + $0x8] sm:$0xff]   ;;  %v8657_v60 = vld [vmem:[%s10756_s5 + $0x10] sm:$0xff]  }
 0x28f   : > { %v5459_v54 = vsel %vm8971_vm9, %v5454_v33, %v10434_v44  ;;  %v5501_v40 = vor.u32 %v5500_v52, %v5497_v47  ;;  %v5514_v25 = vshll.u32 %v10307_v13, 16  ;;  %v5488_v6 = vrot.slane %v5487_v42, 4  ;;  %v8728_v13 = vld [vmem:[#allocation2 + $0x1c] sm:$0xf]  ;;  %8166 = vmatprep.subr.bf16.mxu0 %v8655_v29  ;;  %v8729_v17 = vld [vmem:[#allocation2 + $0x28] sm:$0xf] }
 0x290   : > { %v7304_v21 = vcombine.low %v5459_v54, %v5469_v61  ;;  %v5492_v5 = vrot.slane %v5490_v37, 5  ;;  %v5512_v23 = vrot.slane %v5511_v39, 4  ;;  %v5478_v46 = vrot.slane %v5477_v22, 4  ;;  %8167 = vmatpush3.bf16.msra.mxu0 %v8655_v29 }
 0x291   : > { %v5525_v27 = vor.u32 %v5524_v45, %v5521_v31  ;;  %v5535_v7 = vor.u32 %v5534_v18, %v5530_v51  ;;  %v5538_v26 = vshll.u32 %v10319_v3, 16  ;;  %v5502_v41 = vrot.slane %v5501_v40, 4  ;;  %8168 = vmatprep.subr.bf16.mxu0 %v8656_v12  ;;  %v5865_v45 = vld [vmem:[#allocation2 + $0x24] sm:$0xe] }
 0x292   : > { %8107 = vmatmul.mubr.bf16.gmra.mrb[4].mxu1 %v7303_v32  ;;  %v5516_v2 = vrot.slane %v5514_v25, 5  ;;  %v5493_v11 = vsel %vm8971_vm9, %v5488_v6, %v5492_v5  ;;  %v5930_v49 = vrot.slane %v8728_v13, 5  ;;  %v5483_v15 = vsel %vm8971_vm9, %v5478_v46, %v5482_v43  ;;  %v8659_v18 = vld [vmem:[%s10756_s5 + $0x20] sm:$0xff]   ;;  %v10843_v5 = vld [vmem:[#allocation7_spill] sm:$0xff] }
 0x293   : > { %8110 = vmatprep.mubr.bf16.mxu1 %v7304_v21  ;;  %v5526_v14 = vrot.slane %v5525_v27, 4  ;;  %v5536_v62 = vrot.slane %v5535_v7, 4  ;;  %v5540_v36 = vrot.slane %v5538_v26, 5  ;;  %v7305_v28 = vcombine.low %v5483_v15, %v5493_v11  ;;  %v10846_v27 = vld [vmem:[#allocation10_spill] sm:$0xff]  ;;  %v10849_v7 = vld [vmem:[#allocation9_spill] sm:$0xff]  ;;  %v10850_v26 = vld [vmem:[#allocation12_spill] sm:$0xff] }
 0x294   : > { %v5517_v44 = vsel %vm8971_vm9, %v5512_v23, %v5516_v2  ;;  %v5507_v3 = vsel %vm8971_vm9, %v5502_v41, %v5506_v1  ;;  %v5932_v59 = vrot.slane %v5930_v49, 4  ;;  %v5864_v1 = vld [vmem:[#allocation2 + $0x18] sm:$0xe]  ;;  %v5933_v52 = vrot.slane %v9952_v10, 5  ;;  %8169 = vmatpush3.bf16.msra.mxu0 %v8656_v12  ;;  %v10844_v23 = vld [vmem:[#allocation6_spill] sm:$0xff]  ;;  %v10856_v2 = vld [vmem:[#allocation4_spill] sm:$0xff] }
 0x295   : > { %v7306_v33 = vcombine.low %v5507_v3, %v5517_v44  ;;  %v5531_v43 = vsel %vm8971_vm9, %v5526_v14, %v5530_v51  ;;  %v5541_v47 = vsel %vm8971_vm9, %v5536_v62, %v5540_v36  ;;  %v5937_v42 = vrot.slane %v8729_v17, 5  ;;  %8170 = vmatprep.subr.bf16.mxu0 %v8657_v60  ;;  %v8658_v10 = vld [vmem:[%s10756_s5 + $0x18] sm:$0xff]   ;;  %v10860_v44 = vld [vmem:[#allocation14_spill] sm:$0xff] }
 0x296   : > { %v7307_v61 = vcombine.low %v5531_v43, %v5541_v47  ;;  %v7316_v22 = vrot.slane %v5864_v1, 9  ;;  %v5934_v37 = vsel %vm9676_vm14, %v5932_v59, %v5933_v52  ;;  %v5940_v51 = vrot.slane %v9956_v57, 5  ;;  %v10853_v41 = vld [vmem:[#allocation3_spill] sm:$0xff]  ;;  %v8660_v1 = vld [vmem:[%s10756_s5 + $0x28] sm:$0xff]   ;;  %v8661_v17 = vld [vmem:[%s10756_s5 + $0x30] sm:$0xff]  }
 0x297   : > { %v5939_v31 = vrot.slane %v5937_v42, 4  ;;  %v7317_v32 = vrot.slane %v5865_v45, 9  ;;  %v10839_v57 = vcombine.low %v10155_v53, %v10159_v50  ;;  %v10840_v21 = vcombine.low %v10167_v55, %v10173_v34  ;;  %v10847_v53 = vld [vmem:[#allocation8_spill] sm:$0xff]  ;;  %v10852_v34 = vld [vmem:[#allocation11_spill] sm:$0xff] }
 0x298   : > { %v5931_v38 = vsel %vm9676_vm14, %v7316_v22, %v5930_v49  ;;  %8171 = vmatpush3.bf16.msra.mxu0 %v8657_v60  ;;  %v10841_v6 = vcombine.low %v10177_v63, %v10187_v4  ;;  %v10845_v46 = vcombine.low %v10843_v5, %v10844_v23  ;;  %v10848_v50 = vcombine.low %v10846_v27, %v10847_v53  ;;  %v10855_v4 = vld [vmem:[#allocation5_spill] sm:$0xff]  ;;  %v10861_v13 = vld [vmem:[#allocation15_spill] sm:$0xff] }
 0x299   : > { %v7348_v39 = vcombine.low %v5931_v38, %v5934_v37  ;;  %8172 = vmatprep.subr.bf16.mxu0 %v8658_v10  ;;  %v5941_v54 = vsel %vm9676_vm14, %v5939_v31, %v5940_v51  ;;  %v5938_v40 = vsel %vm9676_vm14, %v7317_v32, %v5937_v42  ;;  %v10851_v55 = vcombine.low %v10849_v7, %v10850_v26  ;;  %v8662_v22 = vld [vmem:[%s10756_s5 + $0x38] sm:$0xff]  }
 0x29a   : > { %8111 = vmatmul.mubr.bf16.gmra.mrb[8].mxu1 %v7305_v28  ;;  %v7349_v25 = vcombine.low %v5938_v40, %v5941_v54  ;;  %v10854_v63 = vcombine.low %v10852_v34, %v10853_v41  ;;  %v10857_v30 = vcombine.low %v10855_v4, %v10856_v2  ;;  %v10859_v11 = vcombine.low %v10289_v24, %v10858_v20  ;;  %v10598_v54 = vld [vmem:[%s10755_s4] ss:$0 sm:$0xff] }
 0x29b   : > { %8114 = vmatprep.mubr.bf16.mxu1 %v7306_v33  ;;  %v10862_v49 = vcombine.low %v10860_v44, %v10861_v13  ;;  %v10863_v15 = vcombine.low %v10323_v8, %v10340_v9 }
 0x29c   : > { %8173 = vmatpush3.bf16.msra.mxu0 %v8658_v10 }
 0x29d   : > { %8174 = vmatprep.subr.bf16.mxu0 %v8659_v18 }
 0x2a0   : > { %8175 = vmatpush3.bf16.msra.mxu0 %v8659_v18 }
 0x2a1   : > { %8176 = vmatprep.subr.bf16.mxu0 %v8660_v1 }
 0x2a2   : > { %8115 = vmatmul.mubr.bf16.gmra.mrb[12].mxu1 %v7307_v61 }
 0x2a3   : > { %8134 = vmatprep.mubr.bf16.mxu1 %v7348_v39 }
 0x2a4   : > { %8177 = vmatpush3.bf16.msra.mxu0 %v8660_v1 }
 0x2a5   : > { %8178 = vmatprep.subr.bf16.mxu0 %v8661_v17 }
 0x2a8   : > { %8179 = vmatpush3.bf16.msra.mxu0 %v8661_v17 }
 0x2a9   : > { %8180 = vmatprep.subr.bf16.mxu0 %v8662_v22 }
 0x2aa   : > { %8135 = vmatmul.mubr.bf16.vlgmr.msra.gmra.mrb[16].mxu1 %v7349_v25 }
 0x2ab   : > { %8138 = vmatprep.mubr.bf16.mxu1 %v10839_v57 }
 0x2ac   : > { %8181 = vmatpush3.bf16.msra.mxu0 %v8662_v22 }
 0x2b2   : > { %8139 = vmatmul.mubr.bf16.gmra.mrb[20].mxu1 %v10840_v21 }
 0x2b3   : > { %8142 = vmatprep.mubr.bf16.mxu1 %v10841_v6 }
 0x2ba   : > { %8143 = vmatmul.mubr.bf16.gmra.mrb[24].mxu1 %v10842_v48 }
 0x2bb   : > { %8146 = vmatprep.mubr.bf16.mxu1 %v10845_v46 }
 0x2c2   : > { %8147 = vmatmul.mubr.bf16.gmra.mrb[28].mxu1 %v10848_v50 }
 0x2c3   : > { %8150 = vmatprep.mubr.bf16.mxu1 %v10851_v55 }
 0x2ca   : > { %8151 = vmatmul.mubr.bf16.gmra.mrb[0].mxu1 %v10854_v63 }
 0x2cb   : > { %8154 = vmatprep.mubr.bf16.mxu1 %v10857_v30 }
 0x2d2   : > { %8155 = vmatmul.mubr.bf16.gmra.mrb[4].mxu1 %v10859_v11 }
 0x2d3   : > { %8158 = vmatprep.mubr.bf16.mxu1 %v10862_v49 }
 0x2da   : > { %8159 = vmatmul.mubr.bf16.gmra.mrb[8].mxu1 %v10863_v15 }
 0x2db   : > { %8162 = vmatprep.mubr.bf16.mxu1 %v7362_v56 }
 0x2dd   : > { %v10545_v14 = vpop.f32.mrb[48].mxu0 }
 0x2de   : > { %v10547_v62 = vpop.f32.mrb[49].mxu0 }
 0x2df   : > { %v10549_v36 = vpop.f32.mrb[50].mxu0 }
 0x2e0   : > { %v10551_v24 = vpop.f32.mrb[51].mxu0 }
 0x2e2   : > { %8163 = vmatmul.mubr.bf16.gmra.mrb[12].mxu1 %v7363_v19 }
 0x2e5   : > { %v10556_v28 = vpop.f32.mrb[52].mxu0 }
 0x2e6   : > { %v10558_v8 = vpop.f32.mrb[53].mxu0 }
 0x2e7   : > { %v10560_v9 = vpop.f32.mrb[54].mxu0 }
 0x2e8   : > { %v10562_v0 = vpop.f32.mrb[55].mxu0 }
 0x2ed   : > { %v10564_v35 = vpop.f32.mrb[56].mxu0 }
 0x2ee   : > { %v10566_v56 = vpop.f32.mrb[57].mxu0 }
 0x2ef   : > { %v10568_v3 = vpop.f32.mrb[58].mxu0 }
 0x2f0   : > { %v10570_v29 = vpop.f32.mrb[59].mxu0 }
 0x2f5   : > { %v10572_v12 = vpop.f32.mrb[60].mxu0 }
 0x2f6   : > { %v10574_v16 = vpop.f32.mrb[61].mxu0 }
 0x2f7   : > { %v10576_v58 = vpop.f32.mrb[62].mxu0 }
 0x2f8   : > { %v10578_v19 = vpop.f32.mrb[63].mxu0 }
 0x2fd   : > { %v7896_v33 = vpop.f32.mrb[32].mxu0 }
 0x2fe   : > { %v3312_v59 = vpop.f32.mrb[33].mxu0 }
 0x2ff   : > { %v7897_v43 = vpop.f32.mrb[34].mxu0 }
 0x300   : > { %v3315_v47 = vpop.f32.mrb[35].mxu0 }
 0x305   : > { %v7900_v52 = vpop.f32.mrb[36].mxu0 }
 0x306   : > { %v3328_v60 = vpop.f32.mrb[37].mxu0 }
 0x307   : > { %v7901_v42 = vpop.f32.mrb[38].mxu0 }
 0x308   : > { %v3331_v61 = vpop.f32.mrb[39].mxu0 }
 0x30d   : > { %v7904_v37 = vpop.f32.mrb[40].mxu0 }
 0x30e   : > { %v3344_v38 = vpop.f32.mrb[41].mxu0 }
 0x30f   : > { %v7905_v10 = vpop.f32.mrb[42].mxu0 }
 0x310   : > { %v3347_v39 = vpop.f32.mrb[43].mxu0 }
 0x315   : > { %v7908_v31 = vpop.f32.mrb[44].mxu0 }
 0x316   : > { %v10589_v45 = vpop.f32.mrb[45].mxu0 }
 0x317   : > { %v10591_v51 = vpop.f32.mrb[46].mxu0 }
 0x318   : > { %v10593_v18 = vpop.f32.mrb[47].mxu0 }
 0x37d   : > { %v8136_v32 = vpop.f32.mrb[16].mxu1 }
 0x37e   : > { %v8230_v40 = vadd.f32 %v8136_v32, %v7896_v33  ;;  %v6203_v25 = vpop.f32.mrb[17].mxu1 }
 0x37f   : > { %v8231_v57 = vadd.f32 %v6203_v25, %v3312_v59  ;;  %v8137_v21 = vpop.f32.mrb[18].mxu1 }
 0x380   : > { %v6371_v6 = vadd.f32 %v8230_v40, %v10598_v54  ;;  %v8232_v48 = vadd.f32 %v8137_v21, %v7897_v43  ;;  %v6206_v5 = vpop.f32.mrb[19].mxu1 }
 0x381   : > { %v6369_v23 = vadd.f32 %v8231_v57, %v10598_v54  ;;  %v8233_v46 = vadd.f32 %v6206_v5, %v3315_v47 }
 0x382   : > { %v6372_v27 = vadd.f32 %v8232_v48, %v10598_v54  ;;  %v6403_v50 = vmax.f32 %v6371_v6, 0.0 }
 0x383   : > { %v6370_v53 = vadd.f32 %v8233_v46, %v10598_v54  ;;  %v6401_v26 = vmax.f32 %v6369_v23, 0.0 }
 0x384   : > { %v6404_v7 = vmax.f32 %v6372_v27, 0.0 }
 0x385   : > { %v6402_v55 = vmax.f32 %v6370_v53, 0.0  ;;  %v8140_v34 = vpop.f32.mrb[20].mxu1 }
 0x386   : > { %v6434_v41 = vpack.c.bf16 %v6404_v7, %v6403_v50  ;;  %v8234_v63 = vadd.f32 %v8140_v34, %v7900_v52  ;;  %v6219_v4 = vpop.f32.mrb[21].mxu1 }
 0x387   : > { %v8235_v2 = vadd.f32 %v6219_v4, %v3328_v60  ;;  %v8141_v30 = vpop.f32.mrb[22].mxu1  ;;  %v6433_v20 = vpack.c.bf16 %v6402_v55, %v6401_v26 }
 0x388   : > { %v6375_v11 = vadd.f32 %v8234_v63, %v10598_v54  ;;  %v8236_v44 = vadd.f32 %v8141_v30, %v7901_v42  ;;  %v6222_v13 = vpop.f32.mrb[23].mxu1 }
 0x389   : > { %v6373_v49 = vadd.f32 %v8235_v2, %v10598_v54  ;;  %v8237_v15 = vadd.f32 %v6222_v13, %v3331_v61  ;;  %8182 = vmatprep.mubr.bf16.mxu0 %v6433_v20 }
 0x38a   : > { %v6376_v33 = vadd.f32 %v8236_v44, %v10598_v54  ;;  %8183 = vmatmul.mubr.bf16.vlgmr.msra.gmra.mrb[64].mxu0 %v6434_v41  ;;  %v6407_v43 = vmax.f32 %v6375_v11, 0.0 }
 0x38b   : > { %v6374_v59 = vadd.f32 %v8237_v15, %v10598_v54  ;;  %v6405_v1 = vmax.f32 %v6373_v49, 0.0 }
 0x38c   : > { %v6408_v47 = vmax.f32 %v6376_v33, 0.0 }
 0x38d   : > { %v6406_v52 = vmax.f32 %v6374_v59, 0.0  ;;  %v8144_v60 = vpop.f32.mrb[24].mxu1 }
 0x38e   : > { %v8238_v17 = vadd.f32 %v8144_v60, %v7904_v37  ;;  %v6235_v22 = vpop.f32.mrb[25].mxu1  ;;  %v6436_v32 = vpack.c.bf16 %v6408_v47, %v6407_v43 }
 0x38f   : > { %v8239_v40 = vadd.f32 %v6235_v22, %v3344_v38  ;;  %v8145_v42 = vpop.f32.mrb[26].mxu1  ;;  %v6435_v25 = vpack.c.bf16 %v6406_v52, %v6405_v1 }
 0x390   : > { %v6379_v57 = vadd.f32 %v8238_v17, %v10598_v54  ;;  %v8240_v61 = vadd.f32 %v8145_v42, %v7905_v10  ;;  %v6238_v21 = vpop.f32.mrb[27].mxu1 }
 0x391   : > { %v6377_v6 = vadd.f32 %v8239_v40, %v10598_v54  ;;  %v8241_v48 = vadd.f32 %v6238_v21, %v3347_v39  ;;  %8186 = vmatprep.mubr.bf16.mxu0 %v6435_v25 }
 0x392   : > { %v6380_v5 = vadd.f32 %v8240_v61, %v10598_v54  ;;  %8187 = vmatmul.mubr.bf16.gmra.mrb[68].mxu0 %v6436_v32  ;;  %v6411_v46 = vmax.f32 %v6379_v57, 0.0 }
 0x393   : > { %v6378_v23 = vadd.f32 %v8241_v48, %v10598_v54  ;;  %v6409_v27 = vmax.f32 %v6377_v6, 0.0 }
 0x394   : > { %v6412_v37 = vmax.f32 %v6380_v5, 0.0 }
 0x395   : > { %v6410_v53 = vmax.f32 %v6378_v23, 0.0  ;;  %v8148_v38 = vpop.f32.mrb[28].mxu1 }
 0x396   : > { %v8242_v50 = vadd.f32 %v8148_v38, %v7908_v31  ;;  %v6251_v7 = vpop.f32.mrb[29].mxu1  ;;  %v6438_v26 = vpack.c.bf16 %v6412_v37, %v6411_v46 }
 0x397   : > { %v8243_v10 = vadd.f32 %v6251_v7, %v10589_v45  ;;  %v8149_v55 = vpop.f32.mrb[30].mxu1  ;;  %v6437_v34 = vpack.c.bf16 %v6410_v53, %v6409_v27 }
 0x398   : > { %v6383_v39 = vadd.f32 %v8242_v50, %v10598_v54  ;;  %v8244_v41 = vadd.f32 %v8149_v55, %v10591_v51  ;;  %v6254_v63 = vpop.f32.mrb[31].mxu1 }
 0x399   : > { %v6381_v4 = vadd.f32 %v8243_v10, %v10598_v54  ;;  %v8245_v2 = vadd.f32 %v6254_v63, %v10593_v18  ;;  %8190 = vmatprep.mubr.bf16.mxu0 %v6437_v34 }
 0x39a   : > { %v6384_v30 = vadd.f32 %v8244_v41, %v10598_v54  ;;  %8191 = vmatmul.mubr.bf16.gmra.mrb[72].mxu0 %v6438_v26  ;;  %v6415_v20 = vmax.f32 %v6383_v39, 0.0 }
 0x39b   : > { %v6382_v31 = vadd.f32 %v8245_v2, %v10598_v54  ;;  %v6413_v45 = vmax.f32 %v6381_v4, 0.0 }
 0x39c   : > { %v6416_v11 = vmax.f32 %v6384_v30, 0.0 }
 0x39d   : > { %v6414_v44 = vmax.f32 %v6382_v31, 0.0  ;;  %v8152_v13 = vpop.f32.mrb[0].mxu1 }
 0x39e   : > { %v8246_v49 = vadd.f32 %v8152_v13, %v10545_v14  ;;  %v6267_v15 = vpop.f32.mrb[1].mxu1  ;;  %v6440_v51 = vpack.c.bf16 %v6416_v11, %v6415_v20 }
 0x39f   : > { %v8247_v33 = vadd.f32 %v6267_v15, %v10547_v62  ;;  %v8153_v59 = vpop.f32.mrb[2].mxu1  ;;  %v6439_v43 = vpack.c.bf16 %v6414_v44, %v6413_v45 }
 0x3a0   : > { %v6387_v18 = vadd.f32 %v8246_v49, %v10598_v54  ;;  %v8248_v47 = vadd.f32 %v8153_v59, %v10549_v36  ;;  %v6270_v1 = vpop.f32.mrb[3].mxu1 }
 0x3a1   : > { %v6385_v52 = vadd.f32 %v8247_v33, %v10598_v54  ;;  %v8249_v60 = vadd.f32 %v6270_v1, %v10551_v24  ;;  %8194 = vmatprep.mubr.bf16.mxu0 %v6439_v43 }
 0x3a2   : > { %v6388_v17 = vadd.f32 %v8248_v47, %v10598_v54  ;;  %8195 = vmatmul.mubr.bf16.gmra.mrb[76].mxu0 %v6440_v51  ;;  %v6419_v22 = vmax.f32 %v6387_v18, 0.0 }
 0x3a3   : > { %v6386_v14 = vadd.f32 %v8249_v60, %v10598_v54  ;;  %v6417_v62 = vmax.f32 %v6385_v52, 0.0 }
 0x3a4   : > { %v6420_v32 = vmax.f32 %v6388_v17, 0.0  ;;  %v8730_v17 = vld [vmem:[%s8844_s14 + $0x8] sm:$0xff]  }
 0x3a5   : > { %v6418_v40 = vmax.f32 %v6386_v14, 0.0  ;;  %v8156_v42 = vpop.f32.mrb[4].mxu1  ;;  %v6683_v14 = vunpack.c.l.bf16 %v8730_v17 }
 0x3a6   : > { %v8250_v25 = vadd.f32 %v8156_v42, %v10556_v28  ;;  %v6283_v57 = vpop.f32.mrb[5].mxu1  ;;  %v6442_v36 = vpack.c.bf16 %v6420_v32, %v6419_v22  ;;  %v8731_v22 = vld [vmem:[%s8844_s14] sm:$0xff]   ;;  %v6684_v42 = vunpack.c.h.bf16 %v8730_v17 }
 0x3a7   : > { %v8251_v61 = vadd.f32 %v6283_v57, %v10558_v8  ;;  %v8157_v21 = vpop.f32.mrb[6].mxu1  ;;  %v6441_v6 = vpack.c.bf16 %v6418_v40, %v6417_v62  ;;  %v6681_v32 = vunpack.c.l.bf16 %v8731_v22 }
 0x3a8   : > { %v6391_v24 = vadd.f32 %v8250_v25, %v10598_v54  ;;  %v8252_v48 = vadd.f32 %v8157_v21, %v10560_v9  ;;  %v6286_v5 = vpop.f32.mrb[7].mxu1  ;;  %v6682_v25 = vunpack.c.h.bf16 %v8731_v22  ;;  %v8736_v22 = vld [vmem:[%s8844_s14 + $0x38] sm:$0xff]  }
 0x3a9   : > { %v6389_v23 = vadd.f32 %v8251_v61, %v10598_v54  ;;  %v8253_v46 = vadd.f32 %v6286_v5, %v10562_v0  ;;  %8198 = vmatprep.mubr.bf16.mxu0 %v6441_v6 }
 0x3aa   : > { %v6392_v37 = vadd.f32 %v8252_v48, %v10598_v54  ;;  %8199 = vmatmul.mubr.bf16.gmra.mrb[80].mxu0 %v6442_v36  ;;  %v6423_v27 = vmax.f32 %v6391_v24, 0.0 }
 0x3ab   : > { %v6390_v28 = vadd.f32 %v8253_v46, %v10598_v54  ;;  %v6421_v8 = vmax.f32 %v6389_v23, 0.0 }
 0x3ac   : > { %v6424_v53 = vmax.f32 %v6392_v37, 0.0 }
 0x3ad   : > { %v6422_v38 = vmax.f32 %v6390_v28, 0.0  ;;  %v8160_v50 = vpop.f32.mrb[8].mxu1 }
 0x3ae   : > { %v8254_v7 = vadd.f32 %v8160_v50, %v10564_v35  ;;  %v6299_v26 = vpop.f32.mrb[9].mxu1  ;;  %v6444_v9 = vpack.c.bf16 %v6424_v53, %v6423_v27  ;;  %v8732_v27 = vld [vmem:[%s8844_s14 + $0x18] sm:$0xff]   ;;  %v8733_v50 = vld [vmem:[%s8844_s14 + $0x10] sm:$0xff]  }
 0x3af   : > { %v8255_v10 = vadd.f32 %v6299_v26, %v10566_v56  ;;  %v8161_v55 = vpop.f32.mrb[10].mxu1  ;;  %v6443_v34 = vpack.c.bf16 %v6422_v38, %v6421_v8  ;;  %v6687_v53 = vunpack.c.l.bf16 %v8732_v27 }
 0x3b0   : > { %v6395_v0 = vadd.f32 %v8254_v7, %v10598_v54  ;;  %v8256_v39 = vadd.f32 %v8161_v55, %v10568_v3  ;;  %v6302_v41 = vpop.f32.mrb[11].mxu1  ;;  %v6685_v7 = vunpack.c.l.bf16 %v8733_v50 }
 0x3b1   : > { %v6393_v63 = vadd.f32 %v8255_v10, %v10598_v54  ;;  %v8257_v4 = vadd.f32 %v6302_v41, %v10570_v29  ;;  %8202 = vmatprep.mubr.bf16.mxu0 %v6443_v34  ;;  %v6688_v10 = vunpack.c.h.bf16 %v8732_v27 }
 0x3b2   : > { %v6396_v2 = vadd.f32 %v8256_v39, %v10598_v54  ;;  %8203 = vmatmul.mubr.bf16.gmra.mrb[84].mxu0 %v6444_v9  ;;  %v6427_v30 = vmax.f32 %v6395_v0, 0.0  ;;  %v6686_v0 = vunpack.c.h.bf16 %v8733_v50 }
 0x3b3   : > { %v6394_v35 = vadd.f32 %v8257_v4, %v10598_v54  ;;  %v6425_v56 = vmax.f32 %v6393_v63, 0.0 }
 0x3b4   : > { %v6428_v31 = vmax.f32 %v6396_v2, 0.0 }
 0x3b5   : > { %v6426_v20 = vmax.f32 %v6394_v35, 0.0  ;;  %v8164_v11 = vpop.f32.mrb[12].mxu1 }
 0x3b6   : > { %v8258_v45 = vadd.f32 %v8164_v11, %v10572_v12  ;;  %v6315_v44 = vpop.f32.mrb[13].mxu1  ;;  %v6446_v3 = vpack.c.bf16 %v6428_v31, %v6427_v30  ;;  %v8734_v11 = vld [vmem:[%s8844_s14 + $0x28] sm:$0xff]  }
 0x3b7   : > { %v8259_v13 = vadd.f32 %v6315_v44, %v10574_v16  ;;  %v8165_v49 = vpop.f32.mrb[14].mxu1  ;;  %v6445_v15 = vpack.c.bf16 %v6426_v20, %v6425_v56 }
 0x3b8   : > { %v6399_v29 = vadd.f32 %v8258_v45, %v10598_v54  ;;  %v8260_v51 = vadd.f32 %v8165_v49, %v10576_v58  ;;  %v6318_v33 = vpop.f32.mrb[15].mxu1  ;;  %v6691_v45 = vunpack.c.l.bf16 %v8734_v11 }
 0x3b9   : > { %v6397_v59 = vadd.f32 %v8259_v13, %v10598_v54  ;;  %v8261_v43 = vadd.f32 %v6318_v33, %v10578_v19  ;;  %8206 = vmatprep.mubr.bf16.mxu0 %v6445_v15  ;;  %v10654_v19 = vld [vmem:[%s10757_s6] ss:$0 sm:$0xff] }
 0x3ba   : > { %v6400_v12 = vadd.f32 %v8260_v51, %v10598_v54  ;;  %8207 = vmatmul.mubr.bf16.gmra.mrb[88].mxu0 %v6446_v3  ;;  %v6431_v18 = vmax.f32 %v6399_v29, 0.0  ;;  %v8735_v13 = vld [vmem:[%s8844_s14 + $0x20] sm:$0xff]   ;;  %v6692_v51 = vunpack.c.h.bf16 %v8734_v11 }
 0x3bb   : > { %v6398_v16 = vadd.f32 %v8261_v43, %v10598_v54  ;;  %v6429_v1 = vmax.f32 %v6397_v59, 0.0  ;;  %v6689_v49 = vunpack.c.l.bf16 %v8735_v13  ;;  %v6690_v43 = vunpack.c.h.bf16 %v8735_v13 }
 0x3bc   : > { %v6432_v47 = vmax.f32 %v6400_v12, 0.0 }
 0x3bd   : > { %v6430_v52 = vmax.f32 %v6398_v16, 0.0 }
 0x3be   : > { %v6448_v60 = vpack.c.bf16 %v6432_v47, %v6431_v18 }
 0x3bf   : > { %v6447_v58 = vpack.c.bf16 %v6430_v52, %v6429_v1 }
 0x3c1   : > { %8210 = vmatprep.mubr.bf16.mxu0 %v6447_v58 }
 0x3c2   : > { %8211 = vmatmul.mubr.bf16.gmra.mrb[92].mxu0 %v6448_v60 }
 0x45d   : > { %v8184_v62 = vpop.f32.mrb[64].mxu0 }
 0x45e   : > { %v6563_v54 = vadd.f32 %v8184_v62, %v10654_v19  ;;  %v6554_v40 = vpop.f32.mrb[65].mxu0 }
 0x45f   : > { %v6555_v57 = vadd.f32 %v10654_v19, %v6554_v40  ;;  %v8185_v36 = vpop.f32.mrb[66].mxu0  ;;  %v8737_v40 = vld [vmem:[%s8844_s14 + $0x30] sm:$0xff]  }
 0x460   : > { %v6715_v61 = vadd.f32 %v6683_v14, %v6563_v54  ;;  %v6566_v21 = vadd.f32 %v8185_v36, %v10654_v19  ;;  %v6557_v6 = vpop.f32.mrb[67].mxu0  ;;  %v6696_v36 = vunpack.c.h.bf16 %v8736_v22 }
 0x461   : > { %v6713_v24 = vadd.f32 %v6681_v32, %v6555_v57  ;;  %v6558_v48 = vadd.f32 %v10654_v19, %v6557_v6  ;;  %v6695_v32 = vunpack.c.l.bf16 %v8736_v22  ;;  %v6694_v6 = vunpack.c.h.bf16 %v8737_v40 }
 0x462   : > { %v6747_v5 = vmax.f32 %v6715_v61, 0.0  ;;  %v6716_v23 = vadd.f32 %v6684_v42, %v6566_v21  ;;  %v6693_v42 = vunpack.c.l.bf16 %v8737_v40 }
 0x463   : > { %v6745_v46 = vmax.f32 %v6713_v24, 0.0  ;;  %v6714_v37 = vadd.f32 %v6682_v25, %v6558_v48 }
 0x464   : > { %6779 = vst [vmem:[%s10665_s13 + $0x10] sm:$0xff] %v6747_v5  ;;  %v6748_v28 = vmax.f32 %v6716_v23, 0.0 }
 0x465   : > { %6777 = vst [vmem:[%s10665_s13] sm:$0xff] %v6745_v46  ;;  %v6746_v8 = vmax.f32 %v6714_v37, 0.0  ;;  %v8188_v38 = vpop.f32.mrb[68].mxu0 }
 0x466   : > { %6780 = vst [vmem:[%s10665_s13 + $0x18] sm:$0xff] %v6748_v28  ;;  %v6579_v26 = vadd.f32 %v8188_v38, %v10654_v19  ;;  %v6570_v9 = vpop.f32.mrb[69].mxu0  ;;  %v8738_v38 = vld [vmem:[%s8844_s14 + $0x48] sm:$0xff]  }
 0x467   : > { %6778 = vst [vmem:[%s10665_s13 + $0x8] sm:$0xff] %v6746_v8  ;;  %v6571_v55 = vadd.f32 %v10654_v19, %v6570_v9  ;;  %v8189_v34 = vpop.f32.mrb[70].mxu0  ;;  %v6699_v50 = vunpack.c.l.bf16 %v8738_v38  ;;  %v8739_v9 = vld [vmem:[%s8844_s14 + $0x40] sm:$0xff]  }
 0x468   : > { %v6719_v39 = vadd.f32 %v6687_v53, %v6579_v26  ;;  %v6582_v41 = vadd.f32 %v8189_v34, %v10654_v19  ;;  %v6573_v63 = vpop.f32.mrb[71].mxu0 }
 0x469   : > { %v6717_v4 = vadd.f32 %v6685_v7, %v6571_v55  ;;  %v6574_v2 = vadd.f32 %v10654_v19, %v6573_v63  ;;  %v6698_v63 = vunpack.c.h.bf16 %v8739_v9 }
 0x46a   : > { %v6751_v35 = vmax.f32 %v6719_v39, 0.0  ;;  %v6720_v30 = vadd.f32 %v6688_v10, %v6582_v41  ;;  %v6697_v10 = vunpack.c.l.bf16 %v8739_v9 }
 0x46b   : > { %v6749_v31 = vmax.f32 %v6717_v4, 0.0  ;;  %v6718_v56 = vadd.f32 %v6686_v0, %v6574_v2  ;;  %v6700_v0 = vunpack.c.h.bf16 %v8738_v38 }
 0x46c   : > { %6783 = vst [vmem:[%s10665_s13 + $0x30] sm:$0xff] %v6751_v35  ;;  %v6752_v20 = vmax.f32 %v6720_v30, 0.0 }
 0x46d   : > { %6781 = vst [vmem:[%s10665_s13 + $0x20] sm:$0xff] %v6749_v31  ;;  %v6750_v44 = vmax.f32 %v6718_v56, 0.0  ;;  %v8192_v3 = vpop.f32.mrb[72].mxu0 }
 0x46e   : > { %6784 = vst [vmem:[%s10665_s13 + $0x38] sm:$0xff] %v6752_v20  ;;  %v6595_v15 = vadd.f32 %v8192_v3, %v10654_v19  ;;  %v6586_v29 = vpop.f32.mrb[73].mxu0  ;;  %v8740_v3 = vld [vmem:[%s8844_s14 + $0x58] sm:$0xff]  }
 0x46f   : > { %6782 = vst [vmem:[%s10665_s13 + $0x28] sm:$0xff] %v6750_v44  ;;  %v6587_v33 = vadd.f32 %v10654_v19, %v6586_v29  ;;  %v8193_v59 = vpop.f32.mrb[74].mxu0  ;;  %v6703_v13 = vunpack.c.l.bf16 %v8740_v3  ;;  %v8741_v29 = vld [vmem:[%s8844_s14 + $0x50] sm:$0xff]  }
 0x470   : > { %v6723_v12 = vadd.f32 %v6691_v45, %v6595_v15  ;;  %v6598_v16 = vadd.f32 %v8193_v59, %v10654_v19  ;;  %v6589_v18 = vpop.f32.mrb[75].mxu0 }
 0x471   : > { %v6721_v47 = vadd.f32 %v6689_v49, %v6587_v33  ;;  %v6590_v1 = vadd.f32 %v10654_v19, %v6589_v18  ;;  %v6702_v18 = vunpack.c.h.bf16 %v8741_v29 }
 0x472   : > { %v6755_v52 = vmax.f32 %v6723_v12, 0.0  ;;  %v6724_v60 = vadd.f32 %v6692_v51, %v6598_v16  ;;  %v6701_v51 = vunpack.c.l.bf16 %v8741_v29 }
 0x473   : > { %v6753_v58 = vmax.f32 %v6721_v47, 0.0  ;;  %v6722_v17 = vadd.f32 %v6690_v43, %v6590_v1  ;;  %v6704_v43 = vunpack.c.h.bf16 %v8740_v3 }
 0x474   : > { %6787 = vst [vmem:[%s10665_s13 + $0x50] sm:$0xff] %v6755_v52  ;;  %v6756_v14 = vmax.f32 %v6724_v60, 0.0 }
 0x475   : > { %6785 = vst [vmem:[%s10665_s13 + $0x40] sm:$0xff] %v6753_v58  ;;  %v6754_v62 = vmax.f32 %v6722_v17, 0.0  ;;  %v8196_v54 = vpop.f32.mrb[76].mxu0 }
 0x476   : > { %6788 = vst [vmem:[%s10665_s13 + $0x58] sm:$0xff] %v6756_v14  ;;  %v6611_v25 = vadd.f32 %v8196_v54, %v10654_v19  ;;  %v6602_v57 = vpop.f32.mrb[77].mxu0  ;;  %v8742_v54 = vld [vmem:[%s8844_s14 + $0x68] sm:$0xff]  }
 0x477   : > { %6786 = vst [vmem:[%s10665_s13 + $0x48] sm:$0xff] %v6754_v62  ;;  %v6603_v61 = vadd.f32 %v10654_v19, %v6602_v57  ;;  %v8197_v21 = vpop.f32.mrb[78].mxu0  ;;  %v6707_v40 = vunpack.c.l.bf16 %v8742_v54  ;;  %v8743_v57 = vld [vmem:[%s8844_s14 + $0x60] sm:$0xff]  }
 0x478   : > { %v6727_v24 = vadd.f32 %v6695_v32, %v6611_v25  ;;  %v6614_v48 = vadd.f32 %v8197_v21, %v10654_v19  ;;  %v6605_v5 = vpop.f32.mrb[79].mxu0 }
 0x479   : > { %v6725_v23 = vadd.f32 %v6693_v42, %v6603_v61  ;;  %v6606_v46 = vadd.f32 %v10654_v19, %v6605_v5  ;;  %v6706_v5 = vunpack.c.h.bf16 %v8743_v57 }
 0x47a   : > { %v6759_v37 = vmax.f32 %v6727_v24, 0.0  ;;  %v6728_v28 = vadd.f32 %v6696_v36, %v6614_v48  ;;  %v6705_v36 = vunpack.c.l.bf16 %v8743_v57 }
 0x47b   : > { %v6757_v27 = vmax.f32 %v6725_v23, 0.0  ;;  %v6726_v53 = vadd.f32 %v6694_v6, %v6606_v46  ;;  %v6708_v6 = vunpack.c.h.bf16 %v8742_v54 }
 0x47c   : > { %6791 = vst [vmem:[%s10665_s13 + $0x70] sm:$0xff] %v6759_v37  ;;  %v6760_v8 = vmax.f32 %v6728_v28, 0.0 }
 0x47d   : > { %6789 = vst [vmem:[%s10665_s13 + $0x60] sm:$0xff] %v6757_v27  ;;  %v6758_v7 = vmax.f32 %v6726_v53, 0.0  ;;  %v8200_v26 = vpop.f32.mrb[80].mxu0 }
 0x47e   : > { %6792 = vst [vmem:[%s10665_s13 + $0x78] sm:$0xff] %v6760_v8  ;;  %v6627_v55 = vadd.f32 %v8200_v26, %v10654_v19  ;;  %v6618_v34 = vpop.f32.mrb[81].mxu0  ;;  %v8744_v26 = vld [vmem:[%s8844_s14 + $0x78] sm:$0xff]  }
 0x47f   : > { %6790 = vst [vmem:[%s10665_s13 + $0x68] sm:$0xff] %v6758_v7  ;;  %v6619_v39 = vadd.f32 %v10654_v19, %v6618_v34  ;;  %v8201_v41 = vpop.f32.mrb[82].mxu0  ;;  %v6711_v9 = vunpack.c.l.bf16 %v8744_v26  ;;  %v8745_v34 = vld [vmem:[%s8844_s14 + $0x70] sm:$0xff]  }
 0x480   : > { %v6731_v4 = vadd.f32 %v6699_v50, %v6627_v55  ;;  %v6630_v2 = vadd.f32 %v8201_v41, %v10654_v19  ;;  %v6621_v35 = vpop.f32.mrb[83].mxu0 }
 0x481   : > { %v6729_v30 = vadd.f32 %v6697_v10, %v6619_v39  ;;  %v6622_v31 = vadd.f32 %v10654_v19, %v6621_v35  ;;  %v6710_v35 = vunpack.c.h.bf16 %v8745_v34 }
 0x482   : > { %v6763_v56 = vmax.f32 %v6731_v4, 0.0  ;;  %v6732_v20 = vadd.f32 %v6700_v0, %v6630_v2  ;;  %v6709_v0 = vunpack.c.l.bf16 %v8745_v34 }
 0x483   : > { %v6761_v11 = vmax.f32 %v6729_v30, 0.0  ;;  %v6730_v45 = vadd.f32 %v6698_v63, %v6622_v31  ;;  %v6712_v63 = vunpack.c.h.bf16 %v8744_v26 }
 0x484   : > { %6795 = vst [vmem:[%s10665_s13 + $0x90] sm:$0xff] %v6763_v56  ;;  %v6764_v44 = vmax.f32 %v6732_v20, 0.0 }
 0x485   : > { %6793 = vst [vmem:[%s10665_s13 + $0x80] sm:$0xff] %v6761_v11  ;;  %v6762_v49 = vmax.f32 %v6730_v45, 0.0  ;;  %v8204_v15 = vpop.f32.mrb[84].mxu0 }
 0x486   : > { %6796 = vst [vmem:[%s10665_s13 + $0x98] sm:$0xff] %v6764_v44  ;;  %v6643_v33 = vadd.f32 %v8204_v15, %v10654_v19  ;;  %v6634_v59 = vpop.f32.mrb[85].mxu0 }
 0x487   : > { %6794 = vst [vmem:[%s10665_s13 + $0x88] sm:$0xff] %v6762_v49  ;;  %v6635_v12 = vadd.f32 %v10654_v19, %v6634_v59  ;;  %v8205_v16 = vpop.f32.mrb[86].mxu0 }
 0x488   : > { %v6735_v47 = vadd.f32 %v6703_v13, %v6643_v33  ;;  %v6646_v1 = vadd.f32 %v8205_v16, %v10654_v19  ;;  %v6637_v52 = vpop.f32.mrb[87].mxu0 }
 0x489   : > { %v6733_v60 = vadd.f32 %v6701_v51, %v6635_v12  ;;  %v6638_v58 = vadd.f32 %v10654_v19, %v6637_v52 }
 0x48a   : > { %v6767_v17 = vmax.f32 %v6735_v47, 0.0  ;;  %v6736_v14 = vadd.f32 %v6704_v43, %v6646_v1 }
 0x48b   : > { %v6765_v22 = vmax.f32 %v6733_v60, 0.0  ;;  %v6734_v32 = vadd.f32 %v6702_v18, %v6638_v58 }
 0x48c   : > { %6799 = vst [vmem:[%s10665_s13 + $0xb0] sm:$0xff] %v6767_v17  ;;  %v6768_v62 = vmax.f32 %v6736_v14, 0.0 }
 0x48d   : > { %6797 = vst [vmem:[%s10665_s13 + $0xa0] sm:$0xff] %v6765_v22  ;;  %v6766_v42 = vmax.f32 %v6734_v32, 0.0  ;;  %v8208_v25 = vpop.f32.mrb[88].mxu0 }
 0x48e   : > { %6800 = vst [vmem:[%s10665_s13 + $0xb8] sm:$0xff] %v6768_v62  ;;  %v6659_v61 = vadd.f32 %v8208_v25, %v10654_v19  ;;  %v6650_v21 = vpop.f32.mrb[89].mxu0 }
 0x48f   : > { %6798 = vst [vmem:[%s10665_s13 + $0xa8] sm:$0xff] %v6766_v42  ;;  %v6651_v24 = vadd.f32 %v10654_v19, %v6650_v21  ;;  %v8209_v48 = vpop.f32.mrb[90].mxu0 }
 0x490   : > { %v6739_v23 = vadd.f32 %v6707_v40, %v6659_v61  ;;  %v6662_v46 = vadd.f32 %v8209_v48, %v10654_v19  ;;  %v6653_v37 = vpop.f32.mrb[91].mxu0 }
 0x491   : > { %v6737_v28 = vadd.f32 %v6705_v36, %v6651_v24  ;;  %v6654_v27 = vadd.f32 %v10654_v19, %v6653_v37 }
 0x492   : > { %v6771_v53 = vmax.f32 %v6739_v23, 0.0  ;;  %v6740_v8 = vadd.f32 %v6708_v6, %v6662_v46 }
 0x493   : > { %v6769_v38 = vmax.f32 %v6737_v28, 0.0  ;;  %v6738_v50 = vadd.f32 %v6706_v5, %v6654_v27 }
 0x494   : > { %6803 = vst [vmem:[%s10665_s13 + $0xd0] sm:$0xff] %v6771_v53  ;;  %v6772_v7 = vmax.f32 %v6740_v8, 0.0 }
 0x495   : > { %6801 = vst [vmem:[%s10665_s13 + $0xc0] sm:$0xff] %v6769_v38  ;;  %v6770_v10 = vmax.f32 %v6738_v50, 0.0  ;;  %v8212_v55 = vpop.f32.mrb[92].mxu0 }
 0x496   : > { %6804 = vst [vmem:[%s10665_s13 + $0xd8] sm:$0xff] %v6772_v7  ;;  %v6675_v39 = vadd.f32 %v8212_v55, %v10654_v19  ;;  %v6666_v41 = vpop.f32.mrb[93].mxu0 }
 0x497   : > { %6802 = vst [vmem:[%s10665_s13 + $0xc8] sm:$0xff] %v6770_v10  ;;  %v6667_v4 = vadd.f32 %v10654_v19, %v6666_v41  ;;  %v8213_v2 = vpop.f32.mrb[94].mxu0 }
 0x498   : > { %v6743_v30 = vadd.f32 %v6711_v9, %v6675_v39  ;;  %v6678_v31 = vadd.f32 %v8213_v2, %v10654_v19  ;;  %v6669_v56 = vpop.f32.mrb[95].mxu0 }
 0x499   : > { %v6741_v20 = vadd.f32 %v6709_v0, %v6667_v4  ;;  %v6670_v11 = vadd.f32 %v10654_v19, %v6669_v56 }
 0x49a   : > { %v6775_v45 = vmax.f32 %v6743_v30, 0.0  ;;  %v6744_v44 = vadd.f32 %v6712_v63, %v6678_v31 }
 0x49b   : > { %v6773_v3 = vmax.f32 %v6741_v20, 0.0  ;;  %v6742_v13 = vadd.f32 %v6710_v35, %v6670_v11 }
 0x49c   : > { %6807 = vst [vmem:[%s10665_s13 + $0xf0] sm:$0xff] %v6775_v45  ;;  %v6776_v49 = vmax.f32 %v6744_v44, 0.0 }
 0x49d   : > { %6805 = vst [vmem:[%s10665_s13 + $0xe0] sm:$0xff] %v6773_v3  ;;  %v6774_v15 = vmax.f32 %v6742_v13, 0.0 }
 0x49e   : > { %6808 = vst [vmem:[%s10665_s13 + $0xf8] sm:$0xff] %v6776_v49 }
 0x49f   : > { %6806 = vst [vmem:[%s10665_s13 + $0xe8] sm:$0xff] %v6774_v15 }
 0x4a0 PF: > { %s17_s26 = sadd.s32 1, %s8768_s26   ;;  %s10864_s24 = smov %s8764_s25 }
 0x4a1   : > { %p14_p5 = scmp.ge.s32.totalorder %s17_s26, 4   ;;  %s10865_s25 = smov %s10867_s27 }
 0x4a3   :  { %16 = sbr.rel (!%p14_p5) target bundleno = 2 (0x2), region = 109 }

</bundles_post_ra>
